<compile_context>
chip_gen: v6e
topology: v6e:2x2x1
jax: 0.10.0
libtpu: 0.0.40
codegen_flags: <defaults>
</compile_context>

<pallas_src>
import functools
import jax
import jax.numpy as jnp
from jax.experimental import pallas as pl
from jax.experimental.pallas import tpu as pltpu


MXU_DTYPE = jnp.bfloat16   # bf16-native MXU on all three generations.


def _pick_tile(dim, prefs):
    """Largest preferred tile dividing dim, preferring >=2 blocks (v7x megacore)."""
    for p in prefs:
        if dim % p == 0 and dim // p >= 2:
            return p
    for p in prefs:
        if dim % p == 0:
            return p
    return dim


# ----------------------------------------------------------------------------
# Kernel 1: fused embedding gather + hoisted input projection (parallel).
# ----------------------------------------------------------------------------
def _embed_proj_kernel(ids_ref, emb_ref, wih_ref, b_ref, o_ref):
    # In-kernel gather via one-hot matmul: exact (0/1 weights select bf16 rows
    # exactly with f32 accumulation) and fully MXU-friendly at small vocab.
    # TODO(synk): at real vocab sizes (table >> VMEM) replace the one-hot
    # matmul with a DMA gather / scalar-prefetch Element gather per tile.
    tm = ids_ref.shape[0]
    V = emb_ref.shape[0]
    ids = ids_ref[...]                                           # [tm, 1] int32
    iota = jax.lax.broadcasted_iota(jnp.int32, (tm, V), 1)
    onehot = (iota == ids).astype(emb_ref.dtype)                 # [tm, V] bf16
    x = jnp.dot(onehot, emb_ref[...],
                preferred_element_type=jnp.float32)              # [tm, E] f32
    gates = jnp.dot(x.astype(wih_ref.dtype), wih_ref[...],
                    preferred_element_type=jnp.float32) + b_ref[...]
    o_ref[...] = gates.astype(o_ref.dtype)


def embed_input_projection(ids_col, emb, w_ih, b):
    """out[M, 4H] = onehot(ids) @ emb @ W_ih + b, tiled over M (parallel)."""
    M = ids_col.shape[0]
    V, E = emb.shape
    G = w_ih.shape[1]
    tm = _pick_tile(M, (256, 128, 64, 32, 16, 8))   # >= 2 blocks when possible
    return pl.pallas_call(
        _embed_proj_kernel,
        out_shape=jax.ShapeDtypeStruct((M, G), jnp.float32),
        grid=(M // tm,),
        in_specs=[
            pl.BlockSpec((tm, 1), lambda i: (i, 0)),     # token ids (time-major)
            pl.BlockSpec((V, E), lambda i: (0, 0)),      # embedding table (bf16)
            pl.BlockSpec((E, G), lambda i: (0, 0)),      # W_ih (bf16)
            pl.BlockSpec((1, G), lambda i: (0, 0)),      # b_ih + b_hh (f32)
        ],
        out_specs=pl.BlockSpec((tm, G), lambda i: (i, 0)),
        compiler_params=pltpu.CompilerParams(
            dimension_semantics=("parallel",),
            vmem_limit_bytes=48 * 1024 * 1024),
    )(ids_col, emb, w_ih, b)


# ----------------------------------------------------------------------------
# Kernel 2: fused LSTM recurrence + decoder (sequential over T-blocks).
# ----------------------------------------------------------------------------
def _lstm_decode_kernel(gates_in_ref, h0_ref, c0_ref, whh_ref, wdec_ref, bdec_ref,
                        dec_ref, hn_ref, cn_ref,
                        h_s, c_s, h_blk):
    blk = pl.program_id(0)
    t_blk = gates_in_ref.shape[0]          # static timesteps per grid step
    B, H = h_s.shape
    V = wdec_ref.shape[1]

    @pl.when(blk == 0)
    def _():
        h_s[...] = h0_ref[0]
        c_s[...] = c0_ref[0]

    # Static Python loop: the step index is a compile-time constant, so every
    # ref access below is a static slice.  With small B/H the live ranges stay
    # tiny, and the fully unrolled chain gives the LLO scheduler visibility.
    # NOTE: the per-step matmul is [B, H] x [H, 4H] with B=8 rows -> MXU row
    # utilization is the latency-bound floor here; extra independent rows
    # (more sequences / layers folded into B) would be nearly free.
    for s in range(t_blk):
        h = h_s[...]                       # [B, H] f32
        c = c_s[...]                       # [B, H] f32
        # gates_in already contains x_t @ W_ih + b_ih + b_hh (hoisted matmul).
        gates = gates_in_ref[s] + jnp.dot(
            h.astype(whh_ref.dtype), whh_ref[...],
            preferred_element_type=jnp.float32)               # [B, 4H] f32

        # PyTorch gate order along the 4H axis: i, f, g, o.
        i_g = jax.nn.sigmoid(gates[:, 0 * H:1 * H])
        f_g = jax.nn.sigmoid(gates[:, 1 * H:2 * H])
        g_g = jnp.tanh(gates[:, 2 * H:3 * H])
        o_g = jax.nn.sigmoid(gates[:, 3 * H:4 * H])

        c_new = f_g * c + i_g * g_g
        h_new = o_g * jnp.tanh(c_new)

        h_s[...] = h_new
        c_s[...] = c_new
        # Batch-first block-local hidden history (VMEM only, never HBM).
        h_blk[:, pl.ds(s, 1), :] = h_new.reshape(B, 1, H)

    # Fused decoder: one lane-dense [B*t_blk, V] matmul per block with W_dec
    # resident in VMEM; output written batch-first so no V-wide transpose.
    hb = h_blk[...].reshape(B * t_blk, H).astype(wdec_ref.dtype)
    dec = jnp.dot(hb, wdec_ref[...], preferred_element_type=jnp.float32)
    dec = dec + bdec_ref[...]
    # TODO(synk): emit dec in bf16 (out_shape dtype) to halve the largest HBM
    # writeback on bandwidth-limited v5e if downstream tolerates it.
    dec_ref[...] = dec.reshape(B, t_blk, V).astype(dec_ref.dtype)

    # Write the final hidden state only once, on the last block.
    @pl.when(blk == pl.num_programs(0) - 1)
    def _():
        hn_ref[0] = h_s[...]
        cn_ref[0] = c_s[...]


# ----------------------------------------------------------------------------
# Full forward pass (equivalent to LSTMModel.forward(x, hidden)).
# ----------------------------------------------------------------------------
def lstm_model_forward(x_ids, hidden, params, t_block=None):
    """x_ids: int32 [B, T]; hidden: (h0, c0) each f32 [1, B, H].
    Returns (decoded [B, T, V] f32, (h_n [1, B, H], c_n [1, B, H]))."""
    emb = params["embedding"]              # [V, E]  bf16
    w_ih = params["w_ih"]                  # [E, 4H] bf16
    w_hh = params["w_hh"]                  # [H, 4H] bf16
    b = params["b"]                        # [1, 4H] f32 (b_ih + b_hh)
    w_dec = params["w_dec"]                # [H, V]  bf16
    b_dec = params["b_dec"]                # [1, V]  f32

    h0, c0 = hidden
    B, T = x_ids.shape
    V, E = emb.shape
    H = h0.shape[-1]

    # 1+2) Fused embedding gather + input projection over all T*B tokens,
    #      time-major token order (only the tiny int id tensor is transposed).
    ids_col = x_ids.T.reshape(T * B, 1).astype(jnp.int32)
    gates_in = embed_input_projection(ids_col, emb, w_ih, b).reshape(T, B, 4 * H)

    # 3+4) Sequential recurrence + fused decoder.  t_block = T for the demo
    #      (single grid step); at larger T size t_block so double-buffered
    #      gates_in/decoded blocks + resident W_hh/W_dec fit the per-generation
    #      VMEM budget (v7x: 64 MiB physical, v5e: 16 MiB default scoped).
    if t_block is None or T % t_block != 0:
        t_block = T
    n_blk = T // t_block

    grid_spec = pltpu.PrefetchScalarGridSpec(
        num_scalar_prefetch=0,
        grid=(n_blk,),
        in_specs=[
            pl.BlockSpec((t_block, B, 4 * H), lambda tb: (tb, 0, 0)),  # gates_in
            pl.BlockSpec((1, B, H), lambda tb: (0, 0, 0)),             # h0
            pl.BlockSpec((1, B, H), lambda tb: (0, 0, 0)),             # c0
            pl.BlockSpec((H, 4 * H), lambda tb: (0, 0)),               # W_hh (bf16)
            pl.BlockSpec((H, V), lambda tb: (0, 0)),                   # W_dec (bf16)
            pl.BlockSpec((1, V), lambda tb: (0, 0)),                   # b_dec
        ],
        out_specs=[
            pl.BlockSpec((B, t_block, V), lambda tb: (0, tb, 0)),      # decoded
            pl.BlockSpec((1, B, H), lambda tb: (0, 0, 0)),             # h_n
            pl.BlockSpec((1, B, H), lambda tb: (0, 0, 0)),             # c_n
        ],
        scratch_shapes=[
            pltpu.VMEM((B, H), jnp.float32),                           # running h
            pltpu.VMEM((B, H), jnp.float32),                           # running c
            pltpu.VMEM((B, t_block, H), jnp.float32),                  # block h hist
        ],
    )

    decoded, h_n, c_n = pl.pallas_call(
        _lstm_decode_kernel,
        out_shape=(
            jax.ShapeDtypeStruct((B, T, V), jnp.float32),
            jax.ShapeDtypeStruct((1, B, H), jnp.float32),
            jax.ShapeDtypeStruct((1, B, H), jnp.float32),
        ),
        grid_spec=grid_spec,
        compiler_params=pltpu.CompilerParams(
            dimension_semantics=("arbitrary",),     # recurrence is sequential
            vmem_limit_bytes=48 * 1024 * 1024),     # explicit; safe on v5e/v6e/v7x
    )(gates_in, h0, c0, w_hh, w_dec, b_dec)

    return decoded, (h_n, c_n)


# ----------------------------------------------------------------------------
# Parameter init mimicking the PyTorch module's effective defaults
# (no ortho / ghazi / xavier applied; forget-gate bias slice of BOTH b_ih and
# b_hh filled with 2.0, matching the reference loop over _all_weights -> +4.0
# total on the summed forget-gate bias).  Weights stored in bf16 once, so no
# per-call astype at the pallas_call boundary.
# ----------------------------------------------------------------------------
def init_params(key, vocab_size, embedding_dim, hidden_dim):
    kE, k1, k2, k3, k4, k5, k6 = jax.random.split(key, 7)
    H, E, V = hidden_dim, embedding_dim, vocab_size
    bound = 1.0 / jnp.sqrt(jnp.float32(H))

    emb = jax.random.normal(kE, (V, E), dtype=jnp.float32)   # nn.Embedding ~ N(0,1)

    w_ih = jax.random.uniform(k1, (4 * H, E), jnp.float32, -bound, bound)
    w_hh = jax.random.uniform(k2, (4 * H, H), jnp.float32, -bound, bound)
    b_ih = jax.random.uniform(k3, (4 * H,), jnp.float32, -bound, bound)
    b_hh = jax.random.uniform(k4, (4 * H,), jnp.float32, -bound, bound)
    b_ih = b_ih.at[H:2 * H].set(2.0)       # forget-gate bias fill (both biases)
    b_hh = b_hh.at[H:2 * H].set(2.0)

    w_dec = jax.random.uniform(k5, (V, H), jnp.float32, -bound, bound)
    b_dec = jax.random.uniform(k6, (V,), jnp.float32, -bound, bound)

    return {
        "embedding": emb.astype(MXU_DTYPE),                     # [V, E]
        "w_ih": jnp.transpose(w_ih).astype(MXU_DTYPE),          # [E, 4H]
        "w_hh": jnp.transpose(w_hh).astype(MXU_DTYPE),          # [H, 4H]
        "b": (b_ih + b_hh).reshape(1, 4 * H),                   # [1, 4H] f32
        "w_dec": jnp.transpose(w_dec).astype(MXU_DTYPE),        # [H, V]
        "b_dec": b_dec.reshape(1, V),                           # [1, V] f32
    }


if __name__ == "__main__":
    # (8,128)-friendly small shapes: batch multiple of 8, H/E multiple of 128,
    # V multiple of 128 (lane-dense decoder output).
    VOCAB, EMB, HID = 256, 128, 128
    B, T = 8, 16

    key = jax.random.PRNGKey(0)
    kp, kx = jax.random.split(key)
    params = init_params(kp, VOCAB, EMB, HID)

    x_ids = jax.random.randint(kx, (B, T), 0, VOCAB, dtype=jnp.int32)
    # init_hidden: zeros (n_layers, B, H)
    hidden = (jnp.zeros((1, B, HID), jnp.float32),
              jnp.zeros((1, B, HID), jnp.float32))

    fwd = jax.jit(functools.partial(lstm_model_forward, params=params))
    decoded, (h_n, c_n) = fwd(x_ids, hidden)
    jax.block_until_ready((decoded, h_n, c_n))

    assert decoded.shape == (B, T, VOCAB)
    assert h_n.shape == (1, B, HID) and c_n.shape == (1, B, HID)
    assert bool(jnp.all(jnp.isfinite(decoded)))
    assert bool(jnp.all(jnp.isfinite(h_n))) and bool(jnp.all(jnp.isfinite(c_n)))
    print("KERNEL_OK")
</pallas_src>

<mosaic_0001>
module attributes {stable_mosaic.version = 11 : i64} {
  func.func @_embed_proj_kernel(%arg0: i32, %arg1: memref<64x1xi32, #tpu.memory_space<vmem>>, %arg2: memref<256x128xbf16, #tpu.memory_space<vmem>>, %arg3: memref<128x512xbf16, #tpu.memory_space<vmem>>, %arg4: memref<1x512xf32, #tpu.memory_space<vmem>>, %arg5: memref<64x512xf32, #tpu.memory_space<vmem>>) attributes {dimension_semantics = [#tpu.dimension_semantics<parallel>], iteration_bounds = array<i64: 2>, scalar_prefetch = 0 : i64, scratch_operands = 0 : i64, tpu.core_type = #tpu.core_type<tc>, window_params = [{transform_indices = @transform_0, window_bounds = array<i64: 64, 1>}, {pipeline_mode = #tpu.pipeline_mode<synchronous>, transform_indices = @transform_1, window_bounds = array<i64: 256, 128>}, {pipeline_mode = #tpu.pipeline_mode<synchronous>, transform_indices = @transform_2, window_bounds = array<i64: 128, 512>}, {pipeline_mode = #tpu.pipeline_mode<synchronous>, transform_indices = @transform_3, window_bounds = array<i64: 1, 512>}, {transform_indices = @transform_4, window_bounds = array<i64: 64, 512>}]} {
    %c0 = arith.constant 0 : index
    %c0_0 = arith.constant 0 : index
    %0 = vector.load %arg1[%c0, %c0_0] : memref<64x1xi32, #tpu.memory_space<vmem>>, vector<64x1xi32>
    %1 = tpu.iota {dimensions = array<i32: 1>} : vector<64x256xi32>
    %2 = vector.broadcast %0 : vector<64x1xi32> to vector<64x256xi32>
    %3 = arith.cmpi eq, %1, %2 : vector<64x256xi32>
    %4 = arith.extui %3 : vector<64x256xi1> to vector<64x256xi32>
    %5 = arith.sitofp %4 : vector<64x256xi32> to vector<64x256xf32>
    %6 = arith.truncf %5 : vector<64x256xf32> to vector<64x256xbf16>
    %c0_1 = arith.constant 0 : index
    %c0_2 = arith.constant 0 : index
    %7 = vector.load %arg2[%c0_1, %c0_2] : memref<256x128xbf16, #tpu.memory_space<vmem>>, vector<256x128xbf16>
    %cst = arith.constant dense<0.000000e+00> : vector<64x128xf32>
    %8 = tpu.matmul %6, %7, %cst {dimension_numbers = #tpu.dot_dimension_numbers<[1], [0], [0], [1], [0, 0, 1, 1], [], []>} : vector<64x256xbf16>, vector<256x128xbf16>, vector<64x128xf32> -> vector<64x128xf32>
    %9 = arith.truncf %8 : vector<64x128xf32> to vector<64x128xbf16>
    %c0_3 = arith.constant 0 : index
    %c0_4 = arith.constant 0 : index
    %10 = vector.load %arg3[%c0_3, %c0_4] : memref<128x512xbf16, #tpu.memory_space<vmem>>, vector<128x512xbf16>
    %cst_5 = arith.constant dense<0.000000e+00> : vector<64x512xf32>
    %11 = tpu.matmul %9, %10, %cst_5 {dimension_numbers = #tpu.dot_dimension_numbers<[1], [0], [0], [1], [0, 0, 1, 1], [], []>} : vector<64x128xbf16>, vector<128x512xbf16>, vector<64x512xf32> -> vector<64x512xf32>
    %c0_6 = arith.constant 0 : index
    %c0_7 = arith.constant 0 : index
    %12 = vector.load %arg4[%c0_6, %c0_7] : memref<1x512xf32, #tpu.memory_space<vmem>>, vector<1x512xf32>
    %13 = vector.broadcast %12 : vector<1x512xf32> to vector<64x512xf32>
    %14 = arith.addf %11, %13 : vector<64x512xf32>
    %c0_8 = arith.constant 0 : index
    %c0_9 = arith.constant 0 : index
    %15 = vector.load %arg5[%c0_8, %c0_9] : memref<64x512xf32, #tpu.memory_space<vmem>>, vector<64x512xf32>
    tpu.vector_store %arg5[%c0_8, %c0_9], %14 {strides = array<i32>} : memref<64x512xf32, #tpu.memory_space<vmem>>, vector<64x512xf32>,
    return
  }
  func.func @transform_0(%arg0: i32) -> (i32, i32) {
    %c0_i32 = arith.constant 0 : i32
    %c0_i32_0 = arith.constant 0 : i32
    return %arg0, %c0_i32 : i32, i32
  }
  func.func @transform_1(%arg0: i32) -> (i32, i32) {
    %c0_i32 = arith.constant 0 : i32
    %c0_i32_0 = arith.constant 0 : i32
    %c0_i32_1 = arith.constant 0 : i32
    return %c0_i32, %c0_i32_0 : i32, i32
  }
  func.func @transform_2(%arg0: i32) -> (i32, i32) {
    %c0_i32 = arith.constant 0 : i32
    %c0_i32_0 = arith.constant 0 : i32
    %c0_i32_1 = arith.constant 0 : i32
    return %c0_i32, %c0_i32_0 : i32, i32
  }
  func.func @transform_3(%arg0: i32) -> (i32, i32) {
    %c0_i32 = arith.constant 0 : i32
    %c0_i32_0 = arith.constant 0 : i32
    %c0_i32_1 = arith.constant 0 : i32
    return %c0_i32, %c0_i32_0 : i32, i32
  }
  func.func @transform_4(%arg0: i32) -> (i32, i32) {
    %c0_i32 = arith.constant 0 : i32
    %c0_i32_0 = arith.constant 0 : i32
    return %arg0, %c0_i32 : i32, i32
  }
}

module attributes {stable_mosaic.version = 11 : i64} {
  func.func @_lstm_decode_kernel(%arg0: i32, %arg1: memref<16x8x512xf32, #tpu.memory_space<vmem>>, %arg2: memref<1x8x128xf32, #tpu.memory_space<vmem>>, %arg3: memref<1x8x128xf32, #tpu.memory_space<vmem>>, %arg4: memref<128x512xbf16, #tpu.memory_space<vmem>>, %arg5: memref<128x256xbf16, #tpu.memory_space<vmem>>, %arg6: memref<1x256xf32, #tpu.memory_space<vmem>>, %arg7: memref<8x16x256xf32, #tpu.memory_space<vmem>>, %arg8: memref<1x8x128xf32, #tpu.memory_space<vmem>>, %arg9: memref<1x8x128xf32, #tpu.memory_space<vmem>>, %arg10: memref<8x128xf32, #tpu.memory_space<vmem>>, %arg11: memref<8x128xf32, #tpu.memory_space<vmem>>, %arg12: memref<8x16x128xf32, #tpu.memory_space<vmem>>) attributes {dimension_semantics = [#tpu.dimension_semantics<arbitrary>], iteration_bounds = array<i64: 1>, scalar_prefetch = 0 : i64, scratch_operands = 3 : i64, tpu.core_type = #tpu.core_type<tc>, window_params = [{transform_indices = @transform_0, window_bounds = array<i64: 16, 8, 512>}, {pipeline_mode = #tpu.pipeline_mode<synchronous>, transform_indices = @transform_1, window_bounds = array<i64: 1, 8, 128>}, {pipeline_mode = #tpu.pipeline_mode<synchronous>, transform_indices = @transform_2, window_bounds = array<i64: 1, 8, 128>}, {pipeline_mode = #tpu.pipeline_mode<synchronous>, transform_indices = @transform_3, window_bounds = array<i64: 128, 512>}, {pipeline_mode = #tpu.pipeline_mode<synchronous>, transform_indices = @transform_4, window_bounds = array<i64: 128, 256>}, {pipeline_mode = #tpu.pipeline_mode<synchronous>, transform_indices = @transform_5, window_bounds = array<i64: 1, 256>}, {transform_indices = @transform_6, window_bounds = array<i64: 8, 16, 256>}, {pipeline_mode = #tpu.pipeline_mode<synchronous>, transform_indices = @transform_7, window_bounds = array<i64: 1, 8, 128>}, {pipeline_mode = #tpu.pipeline_mode<synchronous>, transform_indices = @transform_8, window_bounds = array<i64: 1, 8, 128>}]} {
    %c0_i32 = arith.constant 0 : i32
    %0 = arith.cmpi eq, %arg0, %c0_i32 : i32
    %1 = arith.extui %0 : i1 to i32
    %c0_i32_0 = arith.constant 0 : i32
    %2 = arith.cmpi ne, %1, %c0_i32_0 : i32
    scf.if %2 {
      %c0_317 = arith.constant 0 : index
      %c0_318 = arith.constant 0 : index
      %c0_319 = arith.constant 0 : index
      %608 = vector.load %arg2[%c0_317, %c0_318, %c0_319] : memref<1x8x128xf32, #tpu.memory_space<vmem>>, vector<1x8x128xf32>
      %609 = vector.shape_cast %608 : vector<1x8x128xf32> to vector<8x128xf32>
      %c0_320 = arith.constant 0 : index
      %c0_321 = arith.constant 0 : index
      %610 = vector.load %arg10[%c0_320, %c0_321] : memref<8x128xf32, #tpu.memory_space<vmem>>, vector<8x128xf32>
      tpu.vector_store %arg10[%c0_320, %c0_321], %609 {strides = array<i32>} : memref<8x128xf32, #tpu.memory_space<vmem>>, vector<8x128xf32>,
      %c0_322 = arith.constant 0 : index
      %c0_323 = arith.constant 0 : index
      %c0_324 = arith.constant 0 : index
      %611 = vector.load %arg3[%c0_322, %c0_323, %c0_324] : memref<1x8x128xf32, #tpu.memory_space<vmem>>, vector<1x8x128xf32>
      %612 = vector.shape_cast %611 : vector<1x8x128xf32> to vector<8x128xf32>
      %c0_325 = arith.constant 0 : index
      %c0_326 = arith.constant 0 : index
      %613 = vector.load %arg11[%c0_325, %c0_326] : memref<8x128xf32, #tpu.memory_space<vmem>>, vector<8x128xf32>
      tpu.vector_store %arg11[%c0_325, %c0_326], %612 {strides = array<i32>} : memref<8x128xf32, #tpu.memory_space<vmem>>, vector<8x128xf32>,
    } else {
    }
    %c0 = arith.constant 0 : index
    %c0_1 = arith.constant 0 : index
    %3 = vector.load %arg10[%c0, %c0_1] : memref<8x128xf32, #tpu.memory_space<vmem>>, vector<8x128xf32>
    %c0_2 = arith.constant 0 : index
    %c0_3 = arith.constant 0 : index
    %4 = vector.load %arg11[%c0_2, %c0_3] : memref<8x128xf32, #tpu.memory_space<vmem>>, vector<8x128xf32>
    %c0_4 = arith.constant 0 : index
    %c0_5 = arith.constant 0 : index
    %c0_6 = arith.constant 0 : index
    %5 = vector.load %arg1[%c0_4, %c0_5, %c0_6] : memref<16x8x512xf32, #tpu.memory_space<vmem>>, vector<1x8x512xf32>
    %6 = vector.shape_cast %5 : vector<1x8x512xf32> to vector<8x512xf32>
    %7 = arith.truncf %3 : vector<8x128xf32> to vector<8x128xbf16>
    %c0_7 = arith.constant 0 : index
    %c0_8 = arith.constant 0 : index
    %8 = vector.load %arg4[%c0_7, %c0_8] : memref<128x512xbf16, #tpu.memory_space<vmem>>, vector<128x512xbf16>
    %cst = arith.constant dense<0.000000e+00> : vector<8x512xf32>
    %9 = tpu.matmul %7, %8, %cst {dimension_numbers = #tpu.dot_dimension_numbers<[1], [0], [0], [1], [0, 0, 1, 1], [], []>} : vector<8x128xbf16>, vector<128x512xbf16>, vector<8x512xf32> -> vector<8x512xf32>
    %10 = arith.addf %6, %9 : vector<8x512xf32>
    %11 = vector.extract_strided_slice %10 {offsets = [0, 0], sizes = [8, 128], strides = [1, 1]} : vector<8x512xf32> to vector<8x128xf32>
    %12 = arith.negf %11 : vector<8x128xf32>
    %13 = math.exp %12 : vector<8x128xf32>
    %cst_9 = arith.constant 1.000000e+00 : f32
    %14 = vector.broadcast %cst_9 : f32 to vector<8x128xf32>
    %15 = arith.addf %14, %13 : vector<8x128xf32>
    %16 = arith.divf %14, %15 : vector<8x128xf32>
    %17 = vector.extract_strided_slice %10 {offsets = [0, 128], sizes = [8, 128], strides = [1, 1]} : vector<8x512xf32> to vector<8x128xf32>
    %18 = arith.negf %17 : vector<8x128xf32>
    %19 = math.exp %18 : vector<8x128xf32>
    %cst_10 = arith.constant 1.000000e+00 : f32
    %20 = vector.broadcast %cst_10 : f32 to vector<8x128xf32>
    %21 = arith.addf %20, %19 : vector<8x128xf32>
    %22 = arith.divf %20, %21 : vector<8x128xf32>
    %23 = vector.extract_strided_slice %10 {offsets = [0, 256], sizes = [8, 128], strides = [1, 1]} : vector<8x512xf32> to vector<8x128xf32>
    %24 = math.tanh %23 : vector<8x128xf32>
    %25 = vector.extract_strided_slice %10 {offsets = [0, 384], sizes = [8, 128], strides = [1, 1]} : vector<8x512xf32> to vector<8x128xf32>
    %26 = arith.negf %25 : vector<8x128xf32>
    %27 = math.exp %26 : vector<8x128xf32>
    %cst_11 = arith.constant 1.000000e+00 : f32
    %28 = vector.broadcast %cst_11 : f32 to vector<8x128xf32>
    %29 = arith.addf %28, %27 : vector<8x128xf32>
    %30 = arith.divf %28, %29 : vector<8x128xf32>
    %31 = arith.mulf %22, %4 : vector<8x128xf32>
    %32 = arith.mulf %16, %24 : vector<8x128xf32>
    %33 = arith.addf %31, %32 : vector<8x128xf32>
    %34 = math.tanh %33 : vector<8x128xf32>
    %35 = arith.mulf %30, %34 : vector<8x128xf32>
    %c0_12 = arith.constant 0 : index
    %c0_13 = arith.constant 0 : index
    %36 = vector.load %arg10[%c0_12, %c0_13] : memref<8x128xf32, #tpu.memory_space<vmem>>, vector<8x128xf32>
    tpu.vector_store %arg10[%c0_12, %c0_13], %35 {strides = array<i32>} : memref<8x128xf32, #tpu.memory_space<vmem>>, vector<8x128xf32>,
    %c0_14 = arith.constant 0 : index
    %c0_15 = arith.constant 0 : index
    %37 = vector.load %arg11[%c0_14, %c0_15] : memref<8x128xf32, #tpu.memory_space<vmem>>, vector<8x128xf32>
    tpu.vector_store %arg11[%c0_14, %c0_15], %33 {strides = array<i32>} : memref<8x128xf32, #tpu.memory_space<vmem>>, vector<8x128xf32>,
    %38 = vector.shape_cast %35 : vector<8x128xf32> to vector<8x1x128xf32>
    %c0_16 = arith.constant 0 : index
    %c0_17 = arith.constant 0 : index
    %c0_18 = arith.constant 0 : index
    %39 = vector.load %arg12[%c0_16, %c0_17, %c0_18] : memref<8x16x128xf32, #tpu.memory_space<vmem>>, vector<8x1x128xf32>
    tpu.vector_store %arg12[%c0_16, %c0_17, %c0_18], %38 {strides = array<i32>} : memref<8x16x128xf32, #tpu.memory_space<vmem>>, vector<8x1x128xf32>,
    %c0_19 = arith.constant 0 : index
    %c0_20 = arith.constant 0 : index
    %40 = vector.load %arg10[%c0_19, %c0_20] : memref<8x128xf32, #tpu.memory_space<vmem>>, vector<8x128xf32>
    %c0_21 = arith.constant 0 : index
    %c0_22 = arith.constant 0 : index
    %41 = vector.load %arg11[%c0_21, %c0_22] : memref<8x128xf32, #tpu.memory_space<vmem>>, vector<8x128xf32>
    %c1 = arith.constant 1 : index
    %c0_23 = arith.constant 0 : index
    %c0_24 = arith.constant 0 : index
    %42 = vector.load %arg1[%c1, %c0_23, %c0_24] : memref<16x8x512xf32, #tpu.memory_space<vmem>>, vector<1x8x512xf32>
    %43 = vector.shape_cast %42 : vector<1x8x512xf32> to vector<8x512xf32>
    %44 = arith.truncf %40 : vector<8x128xf32> to vector<8x128xbf16>
    %c0_25 = arith.constant 0 : index
    %c0_26 = arith.constant 0 : index
    %45 = vector.load %arg4[%c0_25, %c0_26] : memref<128x512xbf16, #tpu.memory_space<vmem>>, vector<128x512xbf16>
    %cst_27 = arith.constant dense<0.000000e+00> : vector<8x512xf32>
    %46 = tpu.matmul %44, %45, %cst_27 {dimension_numbers = #tpu.dot_dimension_numbers<[1], [0], [0], [1], [0, 0, 1, 1], [], []>} : vector<8x128xbf16>, vector<128x512xbf16>, vector<8x512xf32> -> vector<8x512xf32>
    %47 = arith.addf %43, %46 : vector<8x512xf32>
    %48 = vector.extract_strided_slice %47 {offsets = [0, 0], sizes = [8, 128], strides = [1, 1]} : vector<8x512xf32> to vector<8x128xf32>
    %49 = arith.negf %48 : vector<8x128xf32>
    %50 = math.exp %49 : vector<8x128xf32>
    %cst_28 = arith.constant 1.000000e+00 : f32
    %51 = vector.broadcast %cst_28 : f32 to vector<8x128xf32>
    %52 = arith.addf %51, %50 : vector<8x128xf32>
    %53 = arith.divf %51, %52 : vector<8x128xf32>
    %54 = vector.extract_strided_slice %47 {offsets = [0, 128], sizes = [8, 128], strides = [1, 1]} : vector<8x512xf32> to vector<8x128xf32>
    %55 = arith.negf %54 : vector<8x128xf32>
    %56 = math.exp %55 : vector<8x128xf32>
    %cst_29 = arith.constant 1.000000e+00 : f32
    %57 = vector.broadcast %cst_29 : f32 to vector<8x128xf32>
    %58 = arith.addf %57, %56 : vector<8x128xf32>
    %59 = arith.divf %57, %58 : vector<8x128xf32>
    %60 = vector.extract_strided_slice %47 {offsets = [0, 256], sizes = [8, 128], strides = [1, 1]} : vector<8x512xf32> to vector<8x128xf32>
    %61 = math.tanh %60 : vector<8x128xf32>
    %62 = vector.extract_strided_slice %47 {offsets = [0, 384], sizes = [8, 128], strides = [1, 1]} : vector<8x512xf32> to vector<8x128xf32>
    %63 = arith.negf %62 : vector<8x128xf32>
    %64 = math.exp %63 : vector<8x128xf32>
    %cst_30 = arith.constant 1.000000e+00 : f32
    %65 = vector.broadcast %cst_30 : f32 to vector<8x128xf32>
    %66 = arith.addf %65, %64 : vector<8x128xf32>
    %67 = arith.divf %65, %66 : vector<8x128xf32>
    %68 = arith.mulf %59, %41 : vector<8x128xf32>
    %69 = arith.mulf %53, %61 : vector<8x128xf32>
    %70 = arith.addf %68, %69 : vector<8x128xf32>
    %71 = math.tanh %70 : vector<8x128xf32>
    %72 = arith.mulf %67, %71 : vector<8x128xf32>
    %c0_31 = arith.constant 0 : index
    %c0_32 = arith.constant 0 : index
    %73 = vector.load %arg10[%c0_31, %c0_32] : memref<8x128xf32, #tpu.memory_space<vmem>>, vector<8x128xf32>
    tpu.vector_store %arg10[%c0_31, %c0_32], %72 {strides = array<i32>} : memref<8x128xf32, #tpu.memory_space<vmem>>, vector<8x128xf32>,
    %c0_33 = arith.constant 0 : index
    %c0_34 = arith.constant 0 : index
    %74 = vector.load %arg11[%c0_33, %c0_34] : memref<8x128xf32, #tpu.memory_space<vmem>>, vector<8x128xf32>
    tpu.vector_store %arg11[%c0_33, %c0_34], %70 {strides = array<i32>} : memref<8x128xf32, #tpu.memory_space<vmem>>, vector<8x128xf32>,
    %75 = vector.shape_cast %72 : vector<8x128xf32> to vector<8x1x128xf32>
    %c0_35 = arith.constant 0 : index
    %c1_36 = arith.constant 1 : index
    %c0_37 = arith.constant 0 : index
    %76 = vector.load %arg12[%c0_35, %c1_36, %c0_37] : memref<8x16x128xf32, #tpu.memory_space<vmem>>, vector<8x1x128xf32>
    tpu.vector_store %arg12[%c0_35, %c1_36, %c0_37], %75 {strides = array<i32>} : memref<8x16x128xf32, #tpu.memory_space<vmem>>, vector<8x1x128xf32>,
    %c0_38 = arith.constant 0 : index
    %c0_39 = arith.constant 0 : index
    %77 = vector.load %arg10[%c0_38, %c0_39] : memref<8x128xf32, #tpu.memory_space<vmem>>, vector<8x128xf32>
    %c0_40 = arith.constant 0 : index
    %c0_41 = arith.constant 0 : index
    %78 = vector.load %arg11[%c0_40, %c0_41] : memref<8x128xf32, #tpu.memory_space<vmem>>, vector<8x128xf32>
    %c2 = arith.constant 2 : index
    %c0_42 = arith.constant 0 : index
    %c0_43 = arith.constant 0 : index
    %79 = vector.load %arg1[%c2, %c0_42, %c0_43] : memref<16x8x512xf32, #tpu.memory_space<vmem>>, vector<1x8x512xf32>
    %80 = vector.shape_cast %79 : vector<1x8x512xf32> to vector<8x512xf32>
    %81 = arith.truncf %77 : vector<8x128xf32> to vector<8x128xbf16>
    %c0_44 = arith.constant 0 : index
    %c0_45 = arith.constant 0 : index
    %82 = vector.load %arg4[%c0_44, %c0_45] : memref<128x512xbf16, #tpu.memory_space<vmem>>, vector<128x512xbf16>
    %cst_46 = arith.constant dense<0.000000e+00> : vector<8x512xf32>
    %83 = tpu.matmul %81, %82, %cst_46 {dimension_numbers = #tpu.dot_dimension_numbers<[1], [0], [0], [1], [0, 0, 1, 1], [], []>} : vector<8x128xbf16>, vector<128x512xbf16>, vector<8x512xf32> -> vector<8x512xf32>
    %84 = arith.addf %80, %83 : vector<8x512xf32>
    %85 = vector.extract_strided_slice %84 {offsets = [0, 0], sizes = [8, 128], strides = [1, 1]} : vector<8x512xf32> to vector<8x128xf32>
    %86 = arith.negf %85 : vector<8x128xf32>
    %87 = math.exp %86 : vector<8x128xf32>
    %cst_47 = arith.constant 1.000000e+00 : f32
    %88 = vector.broadcast %cst_47 : f32 to vector<8x128xf32>
    %89 = arith.addf %88, %87 : vector<8x128xf32>
    %90 = arith.divf %88, %89 : vector<8x128xf32>
    %91 = vector.extract_strided_slice %84 {offsets = [0, 128], sizes = [8, 128], strides = [1, 1]} : vector<8x512xf32> to vector<8x128xf32>
    %92 = arith.negf %91 : vector<8x128xf32>
    %93 = math.exp %92 : vector<8x128xf32>
    %cst_48 = arith.constant 1.000000e+00 : f32
    %94 = vector.broadcast %cst_48 : f32 to vector<8x128xf32>
    %95 = arith.addf %94, %93 : vector<8x128xf32>
    %96 = arith.divf %94, %95 : vector<8x128xf32>
    %97 = vector.extract_strided_slice %84 {offsets = [0, 256], sizes = [8, 128], strides = [1, 1]} : vector<8x512xf32> to vector<8x128xf32>
    %98 = math.tanh %97 : vector<8x128xf32>
    %99 = vector.extract_strided_slice %84 {offsets = [0, 384], sizes = [8, 128], strides = [1, 1]} : vector<8x512xf32> to vector<8x128xf32>
    %100 = arith.negf %99 : vector<8x128xf32>
    %101 = math.exp %100 : vector<8x128xf32>
    %cst_49 = arith.constant 1.000000e+00 : f32
    %102 = vector.broadcast %cst_49 : f32 to vector<8x128xf32>
    %103 = arith.addf %102, %101 : vector<8x128xf32>
    %104 = arith.divf %102, %103 : vector<8x128xf32>
    %105 = arith.mulf %96, %78 : vector<8x128xf32>
    %106 = arith.mulf %90, %98 : vector<8x128xf32>
    %107 = arith.addf %105, %106 : vector<8x128xf32>
    %108 = math.tanh %107 : vector<8x128xf32>
    %109 = arith.mulf %104, %108 : vector<8x128xf32>
    %c0_50 = arith.constant 0 : index
    %c0_51 = arith.constant 0 : index
    %110 = vector.load %arg10[%c0_50, %c0_51] : memref<8x128xf32, #tpu.memory_space<vmem>>, vector<8x128xf32>
    tpu.vector_store %arg10[%c0_50, %c0_51], %109 {strides = array<i32>} : memref<8x128xf32, #tpu.memory_space<vmem>>, vector<8x128xf32>,
    %c0_52 = arith.constant 0 : index
    %c0_53 = arith.constant 0 : index
    %111 = vector.load %arg11[%c0_52, %c0_53] : memref<8x128xf32, #tpu.memory_space<vmem>>, vector<8x128xf32>
    tpu.vector_store %arg11[%c0_52, %c0_53], %107 {strides = array<i32>} : memref<8x128xf32, #tpu.memory_space<vmem>>, vector<8x128xf32>,
    %112 = vector.shape_cast %109 : vector<8x128xf32> to vector<8x1x128xf32>
    %c0_54 = arith.constant 0 : index
    %c2_55 = arith.constant 2 : index
    %c0_56 = arith.constant 0 : index
    %113 = vector.load %arg12[%c0_54, %c2_55, %c0_56] : memref<8x16x128xf32, #tpu.memory_space<vmem>>, vector<8x1x128xf32>
    tpu.vector_store %arg12[%c0_54, %c2_55, %c0_56], %112 {strides = array<i32>} : memref<8x16x128xf32, #tpu.memory_space<vmem>>, vector<8x1x128xf32>,
    %c0_57 = arith.constant 0 : index
    %c0_58 = arith.constant 0 : index
    %114 = vector.load %arg10[%c0_57, %c0_58] : memref<8x128xf32, #tpu.memory_space<vmem>>, vector<8x128xf32>
    %c0_59 = arith.constant 0 : index
    %c0_60 = arith.constant 0 : index
    %115 = vector.load %arg11[%c0_59, %c0_60] : memref<8x128xf32, #tpu.memory_space<vmem>>, vector<8x128xf32>
    %c3 = arith.constant 3 : index
    %c0_61 = arith.constant 0 : index
    %c0_62 = arith.constant 0 : index
    %116 = vector.load %arg1[%c3, %c0_61, %c0_62] : memref<16x8x512xf32, #tpu.memory_space<vmem>>, vector<1x8x512xf32>
    %117 = vector.shape_cast %116 : vector<1x8x512xf32> to vector<8x512xf32>
    %118 = arith.truncf %114 : vector<8x128xf32> to vector<8x128xbf16>
    %c0_63 = arith.constant 0 : index
    %c0_64 = arith.constant 0 : index
    %119 = vector.load %arg4[%c0_63, %c0_64] : memref<128x512xbf16, #tpu.memory_space<vmem>>, vector<128x512xbf16>
    %cst_65 = arith.constant dense<0.000000e+00> : vector<8x512xf32>
    %120 = tpu.matmul %118, %119, %cst_65 {dimension_numbers = #tpu.dot_dimension_numbers<[1], [0], [0], [1], [0, 0, 1, 1], [], []>} : vector<8x128xbf16>, vector<128x512xbf16>, vector<8x512xf32> -> vector<8x512xf32>
    %121 = arith.addf %117, %120 : vector<8x512xf32>
    %122 = vector.extract_strided_slice %121 {offsets = [0, 0], sizes = [8, 128], strides = [1, 1]} : vector<8x512xf32> to vector<8x128xf32>
    %123 = arith.negf %122 : vector<8x128xf32>
    %124 = math.exp %123 : vector<8x128xf32>
    %cst_66 = arith.constant 1.000000e+00 : f32
    %125 = vector.broadcast %cst_66 : f32 to vector<8x128xf32>
    %126 = arith.addf %125, %124 : vector<8x128xf32>
    %127 = arith.divf %125, %126 : vector<8x128xf32>
    %128 = vector.extract_strided_slice %121 {offsets = [0, 128], sizes = [8, 128], strides = [1, 1]} : vector<8x512xf32> to vector<8x128xf32>
    %129 = arith.negf %128 : vector<8x128xf32>
    %130 = math.exp %129 : vector<8x128xf32>
    %cst_67 = arith.constant 1.000000e+00 : f32
    %131 = vector.broadcast %cst_67 : f32 to vector<8x128xf32>
    %132 = arith.addf %131, %130 : vector<8x128xf32>
    %133 = arith.divf %131, %132 : vector<8x128xf32>
    %134 = vector.extract_strided_slice %121 {offsets = [0, 256], sizes = [8, 128], strides = [1, 1]} : vector<8x512xf32> to vector<8x128xf32>
    %135 = math.tanh %134 : vector<8x128xf32>
    %136 = vector.extract_strided_slice %121 {offsets = [0, 384], sizes = [8, 128], strides = [1, 1]} : vector<8x512xf32> to vector<8x128xf32>
    %137 = arith.negf %136 : vector<8x128xf32>
    %138 = math.exp %137 : vector<8x128xf32>
    %cst_68 = arith.constant 1.000000e+00 : f32
    %139 = vector.broadcast %cst_68 : f32 to vector<8x128xf32>
    %140 = arith.addf %139, %138 : vector<8x128xf32>
    %141 = arith.divf %139, %140 : vector<8x128xf32>
    %142 = arith.mulf %133, %115 : vector<8x128xf32>
    %143 = arith.mulf %127, %135 : vector<8x128xf32>
    %144 = arith.addf %142, %143 : vector<8x128xf32>
    %145 = math.tanh %144 : vector<8x128xf32>
    %146 = arith.mulf %141, %145 : vector<8x128xf32>
    %c0_69 = arith.constant 0 : index
    %c0_70 = arith.constant 0 : index
    %147 = vector.load %arg10[%c0_69, %c0_70] : memref<8x128xf32, #tpu.memory_space<vmem>>, vector<8x128xf32>
    tpu.vector_store %arg10[%c0_69, %c0_70], %146 {strides = array<i32>} : memref<8x128xf32, #tpu.memory_space<vmem>>, vector<8x128xf32>,
    %c0_71 = arith.constant 0 : index
    %c0_72 = arith.constant 0 : index
    %148 = vector.load %arg11[%c0_71, %c0_72] : memref<8x128xf32, #tpu.memory_space<vmem>>, vector<8x128xf32>
    tpu.vector_store %arg11[%c0_71, %c0_72], %144 {strides = array<i32>} : memref<8x128xf32, #tpu.memory_space<vmem>>, vector<8x128xf32>,
    %149 = vector.shape_cast %146 : vector<8x128xf32> to vector<8x1x128xf32>
    %c0_73 = arith.constant 0 : index
    %c3_74 = arith.constant 3 : index
    %c0_75 = arith.constant 0 : index
    %150 = vector.load %arg12[%c0_73, %c3_74, %c0_75] : memref<8x16x128xf32, #tpu.memory_space<vmem>>, vector<8x1x128xf32>
    tpu.vector_store %arg12[%c0_73, %c3_74, %c0_75], %149 {strides = array<i32>} : memref<8x16x128xf32, #tpu.memory_space<vmem>>, vector<8x1x128xf32>,
    %c0_76 = arith.constant 0 : index
    %c0_77 = arith.constant 0 : index
    %151 = vector.load %arg10[%c0_76, %c0_77] : memref<8x128xf32, #tpu.memory_space<vmem>>, vector<8x128xf32>
    %c0_78 = arith.constant 0 : index
    %c0_79 = arith.constant 0 : index
    %152 = vector.load %arg11[%c0_78, %c0_79] : memref<8x128xf32, #tpu.memory_space<vmem>>, vector<8x128xf32>
    %c4 = arith.constant 4 : index
    %c0_80 = arith.constant 0 : index
    %c0_81 = arith.constant 0 : index
    %153 = vector.load %arg1[%c4, %c0_80, %c0_81] : memref<16x8x512xf32, #tpu.memory_space<vmem>>, vector<1x8x512xf32>
    %154 = vector.shape_cast %153 : vector<1x8x512xf32> to vector<8x512xf32>
    %155 = arith.truncf %151 : vector<8x128xf32> to vector<8x128xbf16>
    %c0_82 = arith.constant 0 : index
    %c0_83 = arith.constant 0 : index
    %156 = vector.load %arg4[%c0_82, %c0_83] : memref<128x512xbf16, #tpu.memory_space<vmem>>, vector<128x512xbf16>
    %cst_84 = arith.constant dense<0.000000e+00> : vector<8x512xf32>
    %157 = tpu.matmul %155, %156, %cst_84 {dimension_numbers = #tpu.dot_dimension_numbers<[1], [0], [0], [1], [0, 0, 1, 1], [], []>} : vector<8x128xbf16>, vector<128x512xbf16>, vector<8x512xf32> -> vector<8x512xf32>
    %158 = arith.addf %154, %157 : vector<8x512xf32>
    %159 = vector.extract_strided_slice %158 {offsets = [0, 0], sizes = [8, 128], strides = [1, 1]} : vector<8x512xf32> to vector<8x128xf32>
    %160 = arith.negf %159 : vector<8x128xf32>
    %161 = math.exp %160 : vector<8x128xf32>
    %cst_85 = arith.constant 1.000000e+00 : f32
    %162 = vector.broadcast %cst_85 : f32 to vector<8x128xf32>
    %163 = arith.addf %162, %161 : vector<8x128xf32>
    %164 = arith.divf %162, %163 : vector<8x128xf32>
    %165 = vector.extract_strided_slice %158 {offsets = [0, 128], sizes = [8, 128], strides = [1, 1]} : vector<8x512xf32> to vector<8x128xf32>
    %166 = arith.negf %165 : vector<8x128xf32>
    %167 = math.exp %166 : vector<8x128xf32>
    %cst_86 = arith.constant 1.000000e+00 : f32
    %168 = vector.broadcast %cst_86 : f32 to vector<8x128xf32>
    %169 = arith.addf %168, %167 : vector<8x128xf32>
    %170 = arith.divf %168, %169 : vector<8x128xf32>
    %171 = vector.extract_strided_slice %158 {offsets = [0, 256], sizes = [8, 128], strides = [1, 1]} : vector<8x512xf32> to vector<8x128xf32>
    %172 = math.tanh %171 : vector<8x128xf32>
    %173 = vector.extract_strided_slice %158 {offsets = [0, 384], sizes = [8, 128], strides = [1, 1]} : vector<8x512xf32> to vector<8x128xf32>
    %174 = arith.negf %173 : vector<8x128xf32>
    %175 = math.exp %174 : vector<8x128xf32>
    %cst_87 = arith.constant 1.000000e+00 : f32
    %176 = vector.broadcast %cst_87 : f32 to vector<8x128xf32>
    %177 = arith.addf %176, %175 : vector<8x128xf32>
    %178 = arith.divf %176, %177 : vector<8x128xf32>
    %179 = arith.mulf %170, %152 : vector<8x128xf32>
    %180 = arith.mulf %164, %172 : vector<8x128xf32>
    %181 = arith.addf %179, %180 : vector<8x128xf32>
    %182 = math.tanh %181 : vector<8x128xf32>
    %183 = arith.mulf %178, %182 : vector<8x128xf32>
    %c0_88 = arith.constant 0 : index
    %c0_89 = arith.constant 0 : index
    %184 = vector.load %arg10[%c0_88, %c0_89] : memref<8x128xf32, #tpu.memory_space<vmem>>, vector<8x128xf32>
    tpu.vector_store %arg10[%c0_88, %c0_89], %183 {strides = array<i32>} : memref<8x128xf32, #tpu.memory_space<vmem>>, vector<8x128xf32>,
    %c0_90 = arith.constant 0 : index
    %c0_91 = arith.constant 0 : index
    %185 = vector.load %arg11[%c0_90, %c0_91] : memref<8x128xf32, #tpu.memory_space<vmem>>, vector<8x128xf32>
    tpu.vector_store %arg11[%c0_90, %c0_91], %181 {strides = array<i32>} : memref<8x128xf32, #tpu.memory_space<vmem>>, vector<8x128xf32>,
    %186 = vector.shape_cast %183 : vector<8x128xf32> to vector<8x1x128xf32>
    %c0_92 = arith.constant 0 : index
    %c4_93 = arith.constant 4 : index
    %c0_94 = arith.constant 0 : index
    %187 = vector.load %arg12[%c0_92, %c4_93, %c0_94] : memref<8x16x128xf32, #tpu.memory_space<vmem>>, vector<8x1x128xf32>
    tpu.vector_store %arg12[%c0_92, %c4_93, %c0_94], %186 {strides = array<i32>} : memref<8x16x128xf32, #tpu.memory_space<vmem>>, vector<8x1x128xf32>,
    %c0_95 = arith.constant 0 : index
    %c0_96 = arith.constant 0 : index
    %188 = vector.load %arg10[%c0_95, %c0_96] : memref<8x128xf32, #tpu.memory_space<vmem>>, vector<8x128xf32>
    %c0_97 = arith.constant 0 : index
    %c0_98 = arith.constant 0 : index
    %189 = vector.load %arg11[%c0_97, %c0_98] : memref<8x128xf32, #tpu.memory_space<vmem>>, vector<8x128xf32>
    %c5 = arith.constant 5 : index
    %c0_99 = arith.constant 0 : index
    %c0_100 = arith.constant 0 : index
    %190 = vector.load %arg1[%c5, %c0_99, %c0_100] : memref<16x8x512xf32, #tpu.memory_space<vmem>>, vector<1x8x512xf32>
    %191 = vector.shape_cast %190 : vector<1x8x512xf32> to vector<8x512xf32>
    %192 = arith.truncf %188 : vector<8x128xf32> to vector<8x128xbf16>
    %c0_101 = arith.constant 0 : index
    %c0_102 = arith.constant 0 : index
    %193 = vector.load %arg4[%c0_101, %c0_102] : memref<128x512xbf16, #tpu.memory_space<vmem>>, vector<128x512xbf16>
    %cst_103 = arith.constant dense<0.000000e+00> : vector<8x512xf32>
    %194 = tpu.matmul %192, %193, %cst_103 {dimension_numbers = #tpu.dot_dimension_numbers<[1], [0], [0], [1], [0, 0, 1, 1], [], []>} : vector<8x128xbf16>, vector<128x512xbf16>, vector<8x512xf32> -> vector<8x512xf32>
    %195 = arith.addf %191, %194 : vector<8x512xf32>
    %196 = vector.extract_strided_slice %195 {offsets = [0, 0], sizes = [8, 128], strides = [1, 1]} : vector<8x512xf32> to vector<8x128xf32>
    %197 = arith.negf %196 : vector<8x128xf32>
    %198 = math.exp %197 : vector<8x128xf32>
    %cst_104 = arith.constant 1.000000e+00 : f32
    %199 = vector.broadcast %cst_104 : f32 to vector<8x128xf32>
    %200 = arith.addf %199, %198 : vector<8x128xf32>
    %201 = arith.divf %199, %200 : vector<8x128xf32>
    %202 = vector.extract_strided_slice %195 {offsets = [0, 128], sizes = [8, 128], strides = [1, 1]} : vector<8x512xf32> to vector<8x128xf32>
    %203 = arith.negf %202 : vector<8x128xf32>
    %204 = math.exp %203 : vector<8x128xf32>
    %cst_105 = arith.constant 1.000000e+00 : f32
    %205 = vector.broadcast %cst_105 : f32 to vector<8x128xf32>
    %206 = arith.addf %205, %204 : vector<8x128xf32>
    %207 = arith.divf %205, %206 : vector<8x128xf32>
    %208 = vector.extract_strided_slice %195 {offsets = [0, 256], sizes = [8, 128], strides = [1, 1]} : vector<8x512xf32> to vector<8x128xf32>
    %209 = math.tanh %208 : vector<8x128xf32>
    %210 = vector.extract_strided_slice %195 {offsets = [0, 384], sizes = [8, 128], strides = [1, 1]} : vector<8x512xf32> to vector<8x128xf32>
    %211 = arith.negf %210 : vector<8x128xf32>
    %212 = math.exp %211 : vector<8x128xf32>
    %cst_106 = arith.constant 1.000000e+00 : f32
    %213 = vector.broadcast %cst_106 : f32 to vector<8x128xf32>
    %214 = arith.addf %213, %212 : vector<8x128xf32>
    %215 = arith.divf %213, %214 : vector<8x128xf32>
    %216 = arith.mulf %207, %189 : vector<8x128xf32>
    %217 = arith.mulf %201, %209 : vector<8x128xf32>
    %218 = arith.addf %216, %217 : vector<8x128xf32>
    %219 = math.tanh %218 : vector<8x128xf32>
    %220 = arith.mulf %215, %219 : vector<8x128xf32>
    %c0_107 = arith.constant 0 : index
    %c0_108 = arith.constant 0 : index
    %221 = vector.load %arg10[%c0_107, %c0_108] : memref<8x128xf32, #tpu.memory_space<vmem>>, vector<8x128xf32>
    tpu.vector_store %arg10[%c0_107, %c0_108], %220 {strides = array<i32>} : memref<8x128xf32, #tpu.memory_space<vmem>>, vector<8x128xf32>,
    %c0_109 = arith.constant 0 : index
    %c0_110 = arith.constant 0 : index
    %222 = vector.load %arg11[%c0_109, %c0_110] : memref<8x128xf32, #tpu.memory_space<vmem>>, vector<8x128xf32>
    tpu.vector_store %arg11[%c0_109, %c0_110], %218 {strides = array<i32>} : memref<8x128xf32, #tpu.memory_space<vmem>>, vector<8x128xf32>,
    %223 = vector.shape_cast %220 : vector<8x128xf32> to vector<8x1x128xf32>
    %c0_111 = arith.constant 0 : index
    %c5_112 = arith.constant 5 : index
    %c0_113 = arith.constant 0 : index
    %224 = vector.load %arg12[%c0_111, %c5_112, %c0_113] : memref<8x16x128xf32, #tpu.memory_space<vmem>>, vector<8x1x128xf32>
    tpu.vector_store %arg12[%c0_111, %c5_112, %c0_113], %223 {strides = array<i32>} : memref<8x16x128xf32, #tpu.memory_space<vmem>>, vector<8x1x128xf32>,
    %c0_114 = arith.constant 0 : index
    %c0_115 = arith.constant 0 : index
    %225 = vector.load %arg10[%c0_114, %c0_115] : memref<8x128xf32, #tpu.memory_space<vmem>>, vector<8x128xf32>
    %c0_116 = arith.constant 0 : index
    %c0_117 = arith.constant 0 : index
    %226 = vector.load %arg11[%c0_116, %c0_117] : memref<8x128xf32, #tpu.memory_space<vmem>>, vector<8x128xf32>
    %c6 = arith.constant 6 : index
    %c0_118 = arith.constant 0 : index
    %c0_119 = arith.constant 0 : index
    %227 = vector.load %arg1[%c6, %c0_118, %c0_119] : memref<16x8x512xf32, #tpu.memory_space<vmem>>, vector<1x8x512xf32>
    %228 = vector.shape_cast %227 : vector<1x8x512xf32> to vector<8x512xf32>
    %229 = arith.truncf %225 : vector<8x128xf32> to vector<8x128xbf16>
    %c0_120 = arith.constant 0 : index
    %c0_121 = arith.constant 0 : index
    %230 = vector.load %arg4[%c0_120, %c0_121] : memref<128x512xbf16, #tpu.memory_space<vmem>>, vector<128x512xbf16>
    %cst_122 = arith.constant dense<0.000000e+00> : vector<8x512xf32>
    %231 = tpu.matmul %229, %230, %cst_122 {dimension_numbers = #tpu.dot_dimension_numbers<[1], [0], [0], [1], [0, 0, 1, 1], [], []>} : vector<8x128xbf16>, vector<128x512xbf16>, vector<8x512xf32> -> vector<8x512xf32>
    %232 = arith.addf %228, %231 : vector<8x512xf32>
    %233 = vector.extract_strided_slice %232 {offsets = [0, 0], sizes = [8, 128], strides = [1, 1]} : vector<8x512xf32> to vector<8x128xf32>
    %234 = arith.negf %233 : vector<8x128xf32>
    %235 = math.exp %234 : vector<8x128xf32>
    %cst_123 = arith.constant 1.000000e+00 : f32
    %236 = vector.broadcast %cst_123 : f32 to vector<8x128xf32>
    %237 = arith.addf %236, %235 : vector<8x128xf32>
    %238 = arith.divf %236, %237 : vector<8x128xf32>
    %239 = vector.extract_strided_slice %232 {offsets = [0, 128], sizes = [8, 128], strides = [1, 1]} : vector<8x512xf32> to vector<8x128xf32>
    %240 = arith.negf %239 : vector<8x128xf32>
    %241 = math.exp %240 : vector<8x128xf32>
    %cst_124 = arith.constant 1.000000e+00 : f32
    %242 = vector.broadcast %cst_124 : f32 to vector<8x128xf32>
    %243 = arith.addf %242, %241 : vector<8x128xf32>
    %244 = arith.divf %242, %243 : vector<8x128xf32>
    %245 = vector.extract_strided_slice %232 {offsets = [0, 256], sizes = [8, 128], strides = [1, 1]} : vector<8x512xf32> to vector<8x128xf32>
    %246 = math.tanh %245 : vector<8x128xf32>
    %247 = vector.extract_strided_slice %232 {offsets = [0, 384], sizes = [8, 128], strides = [1, 1]} : vector<8x512xf32> to vector<8x128xf32>
    %248 = arith.negf %247 : vector<8x128xf32>
    %249 = math.exp %248 : vector<8x128xf32>
    %cst_125 = arith.constant 1.000000e+00 : f32
    %250 = vector.broadcast %cst_125 : f32 to vector<8x128xf32>
    %251 = arith.addf %250, %249 : vector<8x128xf32>
    %252 = arith.divf %250, %251 : vector<8x128xf32>
    %253 = arith.mulf %244, %226 : vector<8x128xf32>
    %254 = arith.mulf %238, %246 : vector<8x128xf32>
    %255 = arith.addf %253, %254 : vector<8x128xf32>
    %256 = math.tanh %255 : vector<8x128xf32>
    %257 = arith.mulf %252, %256 : vector<8x128xf32>
    %c0_126 = arith.constant 0 : index
    %c0_127 = arith.constant 0 : index
    %258 = vector.load %arg10[%c0_126, %c0_127] : memref<8x128xf32, #tpu.memory_space<vmem>>, vector<8x128xf32>
    tpu.vector_store %arg10[%c0_126, %c0_127], %257 {strides = array<i32>} : memref<8x128xf32, #tpu.memory_space<vmem>>, vector<8x128xf32>,
    %c0_128 = arith.constant 0 : index
    %c0_129 = arith.constant 0 : index
    %259 = vector.load %arg11[%c0_128, %c0_129] : memref<8x128xf32, #tpu.memory_space<vmem>>, vector<8x128xf32>
    tpu.vector_store %arg11[%c0_128, %c0_129], %255 {strides = array<i32>} : memref<8x128xf32, #tpu.memory_space<vmem>>, vector<8x128xf32>,
    %260 = vector.shape_cast %257 : vector<8x128xf32> to vector<8x1x128xf32>
    %c0_130 = arith.constant 0 : index
    %c6_131 = arith.constant 6 : index
    %c0_132 = arith.constant 0 : index
    %261 = vector.load %arg12[%c0_130, %c6_131, %c0_132] : memref<8x16x128xf32, #tpu.memory_space<vmem>>, vector<8x1x128xf32>
    tpu.vector_store %arg12[%c0_130, %c6_131, %c0_132], %260 {strides = array<i32>} : memref<8x16x128xf32, #tpu.memory_space<vmem>>, vector<8x1x128xf32>,
    %c0_133 = arith.constant 0 : index
    %c0_134 = arith.constant 0 : index
    %262 = vector.load %arg10[%c0_133, %c0_134] : memref<8x128xf32, #tpu.memory_space<vmem>>, vector<8x128xf32>
    %c0_135 = arith.constant 0 : index
    %c0_136 = arith.constant 0 : index
    %263 = vector.load %arg11[%c0_135, %c0_136] : memref<8x128xf32, #tpu.memory_space<vmem>>, vector<8x128xf32>
    %c7 = arith.constant 7 : index
    %c0_137 = arith.constant 0 : index
    %c0_138 = arith.constant 0 : index
    %264 = vector.load %arg1[%c7, %c0_137, %c0_138] : memref<16x8x512xf32, #tpu.memory_space<vmem>>, vector<1x8x512xf32>
    %265 = vector.shape_cast %264 : vector<1x8x512xf32> to vector<8x512xf32>
    %266 = arith.truncf %262 : vector<8x128xf32> to vector<8x128xbf16>
    %c0_139 = arith.constant 0 : index
    %c0_140 = arith.constant 0 : index
    %267 = vector.load %arg4[%c0_139, %c0_140] : memref<128x512xbf16, #tpu.memory_space<vmem>>, vector<128x512xbf16>
    %cst_141 = arith.constant dense<0.000000e+00> : vector<8x512xf32>
    %268 = tpu.matmul %266, %267, %cst_141 {dimension_numbers = #tpu.dot_dimension_numbers<[1], [0], [0], [1], [0, 0, 1, 1], [], []>} : vector<8x128xbf16>, vector<128x512xbf16>, vector<8x512xf32> -> vector<8x512xf32>
    %269 = arith.addf %265, %268 : vector<8x512xf32>
    %270 = vector.extract_strided_slice %269 {offsets = [0, 0], sizes = [8, 128], strides = [1, 1]} : vector<8x512xf32> to vector<8x128xf32>
    %271 = arith.negf %270 : vector<8x128xf32>
    %272 = math.exp %271 : vector<8x128xf32>
    %cst_142 = arith.constant 1.000000e+00 : f32
    %273 = vector.broadcast %cst_142 : f32 to vector<8x128xf32>
    %274 = arith.addf %273, %272 : vector<8x128xf32>
    %275 = arith.divf %273, %274 : vector<8x128xf32>
    %276 = vector.extract_strided_slice %269 {offsets = [0, 128], sizes = [8, 128], strides = [1, 1]} : vector<8x512xf32> to vector<8x128xf32>
    %277 = arith.negf %276 : vector<8x128xf32>
    %278 = math.exp %277 : vector<8x128xf32>
    %cst_143 = arith.constant 1.000000e+00 : f32
    %279 = vector.broadcast %cst_143 : f32 to vector<8x128xf32>
    %280 = arith.addf %279, %278 : vector<8x128xf32>
    %281 = arith.divf %279, %280 : vector<8x128xf32>
    %282 = vector.extract_strided_slice %269 {offsets = [0, 256], sizes = [8, 128], strides = [1, 1]} : vector<8x512xf32> to vector<8x128xf32>
    %283 = math.tanh %282 : vector<8x128xf32>
    %284 = vector.extract_strided_slice %269 {offsets = [0, 384], sizes = [8, 128], strides = [1, 1]} : vector<8x512xf32> to vector<8x128xf32>
    %285 = arith.negf %284 : vector<8x128xf32>
    %286 = math.exp %285 : vector<8x128xf32>
    %cst_144 = arith.constant 1.000000e+00 : f32
    %287 = vector.broadcast %cst_144 : f32 to vector<8x128xf32>
    %288 = arith.addf %287, %286 : vector<8x128xf32>
    %289 = arith.divf %287, %288 : vector<8x128xf32>
    %290 = arith.mulf %281, %263 : vector<8x128xf32>
    %291 = arith.mulf %275, %283 : vector<8x128xf32>
    %292 = arith.addf %290, %291 : vector<8x128xf32>
    %293 = math.tanh %292 : vector<8x128xf32>
    %294 = arith.mulf %289, %293 : vector<8x128xf32>
    %c0_145 = arith.constant 0 : index
    %c0_146 = arith.constant 0 : index
    %295 = vector.load %arg10[%c0_145, %c0_146] : memref<8x128xf32, #tpu.memory_space<vmem>>, vector<8x128xf32>
    tpu.vector_store %arg10[%c0_145, %c0_146], %294 {strides = array<i32>} : memref<8x128xf32, #tpu.memory_space<vmem>>, vector<8x128xf32>,
    %c0_147 = arith.constant 0 : index
    %c0_148 = arith.constant 0 : index
    %296 = vector.load %arg11[%c0_147, %c0_148] : memref<8x128xf32, #tpu.memory_space<vmem>>, vector<8x128xf32>
    tpu.vector_store %arg11[%c0_147, %c0_148], %292 {strides = array<i32>} : memref<8x128xf32, #tpu.memory_space<vmem>>, vector<8x128xf32>,
    %297 = vector.shape_cast %294 : vector<8x128xf32> to vector<8x1x128xf32>
    %c0_149 = arith.constant 0 : index
    %c7_150 = arith.constant 7 : index
    %c0_151 = arith.constant 0 : index
    %298 = vector.load %arg12[%c0_149, %c7_150, %c0_151] : memref<8x16x128xf32, #tpu.memory_space<vmem>>, vector<8x1x128xf32>
    tpu.vector_store %arg12[%c0_149, %c7_150, %c0_151], %297 {strides = array<i32>} : memref<8x16x128xf32, #tpu.memory_space<vmem>>, vector<8x1x128xf32>,
    %c0_152 = arith.constant 0 : index
    %c0_153 = arith.constant 0 : index
    %299 = vector.load %arg10[%c0_152, %c0_153] : memref<8x128xf32, #tpu.memory_space<vmem>>, vector<8x128xf32>
    %c0_154 = arith.constant 0 : index
    %c0_155 = arith.constant 0 : index
    %300 = vector.load %arg11[%c0_154, %c0_155] : memref<8x128xf32, #tpu.memory_space<vmem>>, vector<8x128xf32>
    %c8 = arith.constant 8 : index
    %c0_156 = arith.constant 0 : index
    %c0_157 = arith.constant 0 : index
    %301 = vector.load %arg1[%c8, %c0_156, %c0_157] : memref<16x8x512xf32, #tpu.memory_space<vmem>>, vector<1x8x512xf32>
    %302 = vector.shape_cast %301 : vector<1x8x512xf32> to vector<8x512xf32>
    %303 = arith.truncf %299 : vector<8x128xf32> to vector<8x128xbf16>
    %c0_158 = arith.constant 0 : index
    %c0_159 = arith.constant 0 : index
    %304 = vector.load %arg4[%c0_158, %c0_159] : memref<128x512xbf16, #tpu.memory_space<vmem>>, vector<128x512xbf16>
    %cst_160 = arith.constant dense<0.000000e+00> : vector<8x512xf32>
    %305 = tpu.matmul %303, %304, %cst_160 {dimension_numbers = #tpu.dot_dimension_numbers<[1], [0], [0], [1], [0, 0, 1, 1], [], []>} : vector<8x128xbf16>, vector<128x512xbf16>, vector<8x512xf32> -> vector<8x512xf32>
    %306 = arith.addf %302, %305 : vector<8x512xf32>
    %307 = vector.extract_strided_slice %306 {offsets = [0, 0], sizes = [8, 128], strides = [1, 1]} : vector<8x512xf32> to vector<8x128xf32>
    %308 = arith.negf %307 : vector<8x128xf32>
    %309 = math.exp %308 : vector<8x128xf32>
    %cst_161 = arith.constant 1.000000e+00 : f32
    %310 = vector.broadcast %cst_161 : f32 to vector<8x128xf32>
    %311 = arith.addf %310, %309 : vector<8x128xf32>
    %312 = arith.divf %310, %311 : vector<8x128xf32>
    %313 = vector.extract_strided_slice %306 {offsets = [0, 128], sizes = [8, 128], strides = [1, 1]} : vector<8x512xf32> to vector<8x128xf32>
    %314 = arith.negf %313 : vector<8x128xf32>
    %315 = math.exp %314 : vector<8x128xf32>
    %cst_162 = arith.constant 1.000000e+00 : f32
    %316 = vector.broadcast %cst_162 : f32 to vector<8x128xf32>
    %317 = arith.addf %316, %315 : vector<8x128xf32>
    %318 = arith.divf %316, %317 : vector<8x128xf32>
    %319 = vector.extract_strided_slice %306 {offsets = [0, 256], sizes = [8, 128], strides = [1, 1]} : vector<8x512xf32> to vector<8x128xf32>
    %320 = math.tanh %319 : vector<8x128xf32>
    %321 = vector.extract_strided_slice %306 {offsets = [0, 384], sizes = [8, 128], strides = [1, 1]} : vector<8x512xf32> to vector<8x128xf32>
    %322 = arith.negf %321 : vector<8x128xf32>
    %323 = math.exp %322 : vector<8x128xf32>
    %cst_163 = arith.constant 1.000000e+00 : f32
    %324 = vector.broadcast %cst_163 : f32 to vector<8x128xf32>
    %325 = arith.addf %324, %323 : vector<8x128xf32>
    %326 = arith.divf %324, %325 : vector<8x128xf32>
    %327 = arith.mulf %318, %300 : vector<8x128xf32>
    %328 = arith.mulf %312, %320 : vector<8x128xf32>
    %329 = arith.addf %327, %328 : vector<8x128xf32>
    %330 = math.tanh %329 : vector<8x128xf32>
    %331 = arith.mulf %326, %330 : vector<8x128xf32>
    %c0_164 = arith.constant 0 : index
    %c0_165 = arith.constant 0 : index
    %332 = vector.load %arg10[%c0_164, %c0_165] : memref<8x128xf32, #tpu.memory_space<vmem>>, vector<8x128xf32>
    tpu.vector_store %arg10[%c0_164, %c0_165], %331 {strides = array<i32>} : memref<8x128xf32, #tpu.memory_space<vmem>>, vector<8x128xf32>,
    %c0_166 = arith.constant 0 : index
    %c0_167 = arith.constant 0 : index
    %333 = vector.load %arg11[%c0_166, %c0_167] : memref<8x128xf32, #tpu.memory_space<vmem>>, vector<8x128xf32>
    tpu.vector_store %arg11[%c0_166, %c0_167], %329 {strides = array<i32>} : memref<8x128xf32, #tpu.memory_space<vmem>>, vector<8x128xf32>,
    %334 = vector.shape_cast %331 : vector<8x128xf32> to vector<8x1x128xf32>
    %c0_168 = arith.constant 0 : index
    %c8_169 = arith.constant 8 : index
    %c0_170 = arith.constant 0 : index
    %335 = vector.load %arg12[%c0_168, %c8_169, %c0_170] : memref<8x16x128xf32, #tpu.memory_space<vmem>>, vector<8x1x128xf32>
    tpu.vector_store %arg12[%c0_168, %c8_169, %c0_170], %334 {strides = array<i32>} : memref<8x16x128xf32, #tpu.memory_space<vmem>>, vector<8x1x128xf32>,
    %c0_171 = arith.constant 0 : index
    %c0_172 = arith.constant 0 : index
    %336 = vector.load %arg10[%c0_171, %c0_172] : memref<8x128xf32, #tpu.memory_space<vmem>>, vector<8x128xf32>
    %c0_173 = arith.constant 0 : index
    %c0_174 = arith.constant 0 : index
    %337 = vector.load %arg11[%c0_173, %c0_174] : memref<8x128xf32, #tpu.memory_space<vmem>>, vector<8x128xf32>
    %c9 = arith.constant 9 : index
    %c0_175 = arith.constant 0 : index
    %c0_176 = arith.constant 0 : index
    %338 = vector.load %arg1[%c9, %c0_175, %c0_176] : memref<16x8x512xf32, #tpu.memory_space<vmem>>, vector<1x8x512xf32>
    %339 = vector.shape_cast %338 : vector<1x8x512xf32> to vector<8x512xf32>
    %340 = arith.truncf %336 : vector<8x128xf32> to vector<8x128xbf16>
    %c0_177 = arith.constant 0 : index
    %c0_178 = arith.constant 0 : index
    %341 = vector.load %arg4[%c0_177, %c0_178] : memref<128x512xbf16, #tpu.memory_space<vmem>>, vector<128x512xbf16>
    %cst_179 = arith.constant dense<0.000000e+00> : vector<8x512xf32>
    %342 = tpu.matmul %340, %341, %cst_179 {dimension_numbers = #tpu.dot_dimension_numbers<[1], [0], [0], [1], [0, 0, 1, 1], [], []>} : vector<8x128xbf16>, vector<128x512xbf16>, vector<8x512xf32> -> vector<8x512xf32>
    %343 = arith.addf %339, %342 : vector<8x512xf32>
    %344 = vector.extract_strided_slice %343 {offsets = [0, 0], sizes = [8, 128], strides = [1, 1]} : vector<8x512xf32> to vector<8x128xf32>
    %345 = arith.negf %344 : vector<8x128xf32>
    %346 = math.exp %345 : vector<8x128xf32>
    %cst_180 = arith.constant 1.000000e+00 : f32
    %347 = vector.broadcast %cst_180 : f32 to vector<8x128xf32>
    %348 = arith.addf %347, %346 : vector<8x128xf32>
    %349 = arith.divf %347, %348 : vector<8x128xf32>
    %350 = vector.extract_strided_slice %343 {offsets = [0, 128], sizes = [8, 128], strides = [1, 1]} : vector<8x512xf32> to vector<8x128xf32>
    %351 = arith.negf %350 : vector<8x128xf32>
    %352 = math.exp %351 : vector<8x128xf32>
    %cst_181 = arith.constant 1.000000e+00 : f32
    %353 = vector.broadcast %cst_181 : f32 to vector<8x128xf32>
    %354 = arith.addf %353, %352 : vector<8x128xf32>
    %355 = arith.divf %353, %354 : vector<8x128xf32>
    %356 = vector.extract_strided_slice %343 {offsets = [0, 256], sizes = [8, 128], strides = [1, 1]} : vector<8x512xf32> to vector<8x128xf32>
    %357 = math.tanh %356 : vector<8x128xf32>
    %358 = vector.extract_strided_slice %343 {offsets = [0, 384], sizes = [8, 128], strides = [1, 1]} : vector<8x512xf32> to vector<8x128xf32>
    %359 = arith.negf %358 : vector<8x128xf32>
    %360 = math.exp %359 : vector<8x128xf32>
    %cst_182 = arith.constant 1.000000e+00 : f32
    %361 = vector.broadcast %cst_182 : f32 to vector<8x128xf32>
    %362 = arith.addf %361, %360 : vector<8x128xf32>
    %363 = arith.divf %361, %362 : vector<8x128xf32>
    %364 = arith.mulf %355, %337 : vector<8x128xf32>
    %365 = arith.mulf %349, %357 : vector<8x128xf32>
    %366 = arith.addf %364, %365 : vector<8x128xf32>
    %367 = math.tanh %366 : vector<8x128xf32>
    %368 = arith.mulf %363, %367 : vector<8x128xf32>
    %c0_183 = arith.constant 0 : index
    %c0_184 = arith.constant 0 : index
    %369 = vector.load %arg10[%c0_183, %c0_184] : memref<8x128xf32, #tpu.memory_space<vmem>>, vector<8x128xf32>
    tpu.vector_store %arg10[%c0_183, %c0_184], %368 {strides = array<i32>} : memref<8x128xf32, #tpu.memory_space<vmem>>, vector<8x128xf32>,
    %c0_185 = arith.constant 0 : index
    %c0_186 = arith.constant 0 : index
    %370 = vector.load %arg11[%c0_185, %c0_186] : memref<8x128xf32, #tpu.memory_space<vmem>>, vector<8x128xf32>
    tpu.vector_store %arg11[%c0_185, %c0_186], %366 {strides = array<i32>} : memref<8x128xf32, #tpu.memory_space<vmem>>, vector<8x128xf32>,
    %371 = vector.shape_cast %368 : vector<8x128xf32> to vector<8x1x128xf32>
    %c0_187 = arith.constant 0 : index
    %c9_188 = arith.constant 9 : index
    %c0_189 = arith.constant 0 : index
    %372 = vector.load %arg12[%c0_187, %c9_188, %c0_189] : memref<8x16x128xf32, #tpu.memory_space<vmem>>, vector<8x1x128xf32>
    tpu.vector_store %arg12[%c0_187, %c9_188, %c0_189], %371 {strides = array<i32>} : memref<8x16x128xf32, #tpu.memory_space<vmem>>, vector<8x1x128xf32>,
    %c0_190 = arith.constant 0 : index
    %c0_191 = arith.constant 0 : index
    %373 = vector.load %arg10[%c0_190, %c0_191] : memref<8x128xf32, #tpu.memory_space<vmem>>, vector<8x128xf32>
    %c0_192 = arith.constant 0 : index
    %c0_193 = arith.constant 0 : index
    %374 = vector.load %arg11[%c0_192, %c0_193] : memref<8x128xf32, #tpu.memory_space<vmem>>, vector<8x128xf32>
    %c10 = arith.constant 10 : index
    %c0_194 = arith.constant 0 : index
    %c0_195 = arith.constant 0 : index
    %375 = vector.load %arg1[%c10, %c0_194, %c0_195] : memref<16x8x512xf32, #tpu.memory_space<vmem>>, vector<1x8x512xf32>
    %376 = vector.shape_cast %375 : vector<1x8x512xf32> to vector<8x512xf32>
    %377 = arith.truncf %373 : vector<8x128xf32> to vector<8x128xbf16>
    %c0_196 = arith.constant 0 : index
    %c0_197 = arith.constant 0 : index
    %378 = vector.load %arg4[%c0_196, %c0_197] : memref<128x512xbf16, #tpu.memory_space<vmem>>, vector<128x512xbf16>
    %cst_198 = arith.constant dense<0.000000e+00> : vector<8x512xf32>
    %379 = tpu.matmul %377, %378, %cst_198 {dimension_numbers = #tpu.dot_dimension_numbers<[1], [0], [0], [1], [0, 0, 1, 1], [], []>} : vector<8x128xbf16>, vector<128x512xbf16>, vector<8x512xf32> -> vector<8x512xf32>
    %380 = arith.addf %376, %379 : vector<8x512xf32>
    %381 = vector.extract_strided_slice %380 {offsets = [0, 0], sizes = [8, 128], strides = [1, 1]} : vector<8x512xf32> to vector<8x128xf32>
    %382 = arith.negf %381 : vector<8x128xf32>
    %383 = math.exp %382 : vector<8x128xf32>
    %cst_199 = arith.constant 1.000000e+00 : f32
    %384 = vector.broadcast %cst_199 : f32 to vector<8x128xf32>
    %385 = arith.addf %384, %383 : vector<8x128xf32>
    %386 = arith.divf %384, %385 : vector<8x128xf32>
    %387 = vector.extract_strided_slice %380 {offsets = [0, 128], sizes = [8, 128], strides = [1, 1]} : vector<8x512xf32> to vector<8x128xf32>
    %388 = arith.negf %387 : vector<8x128xf32>
    %389 = math.exp %388 : vector<8x128xf32>
    %cst_200 = arith.constant 1.000000e+00 : f32
    %390 = vector.broadcast %cst_200 : f32 to vector<8x128xf32>
    %391 = arith.addf %390, %389 : vector<8x128xf32>
    %392 = arith.divf %390, %391 : vector<8x128xf32>
    %393 = vector.extract_strided_slice %380 {offsets = [0, 256], sizes = [8, 128], strides = [1, 1]} : vector<8x512xf32> to vector<8x128xf32>
    %394 = math.tanh %393 : vector<8x128xf32>
    %395 = vector.extract_strided_slice %380 {offsets = [0, 384], sizes = [8, 128], strides = [1, 1]} : vector<8x512xf32> to vector<8x128xf32>
    %396 = arith.negf %395 : vector<8x128xf32>
    %397 = math.exp %396 : vector<8x128xf32>
    %cst_201 = arith.constant 1.000000e+00 : f32
    %398 = vector.broadcast %cst_201 : f32 to vector<8x128xf32>
    %399 = arith.addf %398, %397 : vector<8x128xf32>
    %400 = arith.divf %398, %399 : vector<8x128xf32>
    %401 = arith.mulf %392, %374 : vector<8x128xf32>
    %402 = arith.mulf %386, %394 : vector<8x128xf32>
    %403 = arith.addf %401, %402 : vector<8x128xf32>
    %404 = math.tanh %403 : vector<8x128xf32>
    %405 = arith.mulf %400, %404 : vector<8x128xf32>
    %c0_202 = arith.constant 0 : index
    %c0_203 = arith.constant 0 : index
    %406 = vector.load %arg10[%c0_202, %c0_203] : memref<8x128xf32, #tpu.memory_space<vmem>>, vector<8x128xf32>
    tpu.vector_store %arg10[%c0_202, %c0_203], %405 {strides = array<i32>} : memref<8x128xf32, #tpu.memory_space<vmem>>, vector<8x128xf32>,
    %c0_204 = arith.constant 0 : index
    %c0_205 = arith.constant 0 : index
    %407 = vector.load %arg11[%c0_204, %c0_205] : memref<8x128xf32, #tpu.memory_space<vmem>>, vector<8x128xf32>
    tpu.vector_store %arg11[%c0_204, %c0_205], %403 {strides = array<i32>} : memref<8x128xf32, #tpu.memory_space<vmem>>, vector<8x128xf32>,
    %408 = vector.shape_cast %405 : vector<8x128xf32> to vector<8x1x128xf32>
    %c0_206 = arith.constant 0 : index
    %c10_207 = arith.constant 10 : index
    %c0_208 = arith.constant 0 : index
    %409 = vector.load %arg12[%c0_206, %c10_207, %c0_208] : memref<8x16x128xf32, #tpu.memory_space<vmem>>, vector<8x1x128xf32>
    tpu.vector_store %arg12[%c0_206, %c10_207, %c0_208], %408 {strides = array<i32>} : memref<8x16x128xf32, #tpu.memory_space<vmem>>, vector<8x1x128xf32>,
    %c0_209 = arith.constant 0 : index
    %c0_210 = arith.constant 0 : index
    %410 = vector.load %arg10[%c0_209, %c0_210] : memref<8x128xf32, #tpu.memory_space<vmem>>, vector<8x128xf32>
    %c0_211 = arith.constant 0 : index
    %c0_212 = arith.constant 0 : index
    %411 = vector.load %arg11[%c0_211, %c0_212] : memref<8x128xf32, #tpu.memory_space<vmem>>, vector<8x128xf32>
    %c11 = arith.constant 11 : index
    %c0_213 = arith.constant 0 : index
    %c0_214 = arith.constant 0 : index
    %412 = vector.load %arg1[%c11, %c0_213, %c0_214] : memref<16x8x512xf32, #tpu.memory_space<vmem>>, vector<1x8x512xf32>
    %413 = vector.shape_cast %412 : vector<1x8x512xf32> to vector<8x512xf32>
    %414 = arith.truncf %410 : vector<8x128xf32> to vector<8x128xbf16>
    %c0_215 = arith.constant 0 : index
    %c0_216 = arith.constant 0 : index
    %415 = vector.load %arg4[%c0_215, %c0_216] : memref<128x512xbf16, #tpu.memory_space<vmem>>, vector<128x512xbf16>
    %cst_217 = arith.constant dense<0.000000e+00> : vector<8x512xf32>
    %416 = tpu.matmul %414, %415, %cst_217 {dimension_numbers = #tpu.dot_dimension_numbers<[1], [0], [0], [1], [0, 0, 1, 1], [], []>} : vector<8x128xbf16>, vector<128x512xbf16>, vector<8x512xf32> -> vector<8x512xf32>
    %417 = arith.addf %413, %416 : vector<8x512xf32>
    %418 = vector.extract_strided_slice %417 {offsets = [0, 0], sizes = [8, 128], strides = [1, 1]} : vector<8x512xf32> to vector<8x128xf32>
    %419 = arith.negf %418 : vector<8x128xf32>
    %420 = math.exp %419 : vector<8x128xf32>
    %cst_218 = arith.constant 1.000000e+00 : f32
    %421 = vector.broadcast %cst_218 : f32 to vector<8x128xf32>
    %422 = arith.addf %421, %420 : vector<8x128xf32>
    %423 = arith.divf %421, %422 : vector<8x128xf32>
    %424 = vector.extract_strided_slice %417 {offsets = [0, 128], sizes = [8, 128], strides = [1, 1]} : vector<8x512xf32> to vector<8x128xf32>
    %425 = arith.negf %424 : vector<8x128xf32>
    %426 = math.exp %425 : vector<8x128xf32>
    %cst_219 = arith.constant 1.000000e+00 : f32
    %427 = vector.broadcast %cst_219 : f32 to vector<8x128xf32>
    %428 = arith.addf %427, %426 : vector<8x128xf32>
    %429 = arith.divf %427, %428 : vector<8x128xf32>
    %430 = vector.extract_strided_slice %417 {offsets = [0, 256], sizes = [8, 128], strides = [1, 1]} : vector<8x512xf32> to vector<8x128xf32>
    %431 = math.tanh %430 : vector<8x128xf32>
    %432 = vector.extract_strided_slice %417 {offsets = [0, 384], sizes = [8, 128], strides = [1, 1]} : vector<8x512xf32> to vector<8x128xf32>
    %433 = arith.negf %432 : vector<8x128xf32>
    %434 = math.exp %433 : vector<8x128xf32>
    %cst_220 = arith.constant 1.000000e+00 : f32
    %435 = vector.broadcast %cst_220 : f32 to vector<8x128xf32>
    %436 = arith.addf %435, %434 : vector<8x128xf32>
    %437 = arith.divf %435, %436 : vector<8x128xf32>
    %438 = arith.mulf %429, %411 : vector<8x128xf32>
    %439 = arith.mulf %423, %431 : vector<8x128xf32>
    %440 = arith.addf %438, %439 : vector<8x128xf32>
    %441 = math.tanh %440 : vector<8x128xf32>
    %442 = arith.mulf %437, %441 : vector<8x128xf32>
    %c0_221 = arith.constant 0 : index
    %c0_222 = arith.constant 0 : index
    %443 = vector.load %arg10[%c0_221, %c0_222] : memref<8x128xf32, #tpu.memory_space<vmem>>, vector<8x128xf32>
    tpu.vector_store %arg10[%c0_221, %c0_222], %442 {strides = array<i32>} : memref<8x128xf32, #tpu.memory_space<vmem>>, vector<8x128xf32>,
    %c0_223 = arith.constant 0 : index
    %c0_224 = arith.constant 0 : index
    %444 = vector.load %arg11[%c0_223, %c0_224] : memref<8x128xf32, #tpu.memory_space<vmem>>, vector<8x128xf32>
    tpu.vector_store %arg11[%c0_223, %c0_224], %440 {strides = array<i32>} : memref<8x128xf32, #tpu.memory_space<vmem>>, vector<8x128xf32>,
    %445 = vector.shape_cast %442 : vector<8x128xf32> to vector<8x1x128xf32>
    %c0_225 = arith.constant 0 : index
    %c11_226 = arith.constant 11 : index
    %c0_227 = arith.constant 0 : index
    %446 = vector.load %arg12[%c0_225, %c11_226, %c0_227] : memref<8x16x128xf32, #tpu.memory_space<vmem>>, vector<8x1x128xf32>
    tpu.vector_store %arg12[%c0_225, %c11_226, %c0_227], %445 {strides = array<i32>} : memref<8x16x128xf32, #tpu.memory_space<vmem>>, vector<8x1x128xf32>,
    %c0_228 = arith.constant 0 : index
    %c0_229 = arith.constant 0 : index
    %447 = vector.load %arg10[%c0_228, %c0_229] : memref<8x128xf32, #tpu.memory_space<vmem>>, vector<8x128xf32>
    %c0_230 = arith.constant 0 : index
    %c0_231 = arith.constant 0 : index
    %448 = vector.load %arg11[%c0_230, %c0_231] : memref<8x128xf32, #tpu.memory_space<vmem>>, vector<8x128xf32>
    %c12 = arith.constant 12 : index
    %c0_232 = arith.constant 0 : index
    %c0_233 = arith.constant 0 : index
    %449 = vector.load %arg1[%c12, %c0_232, %c0_233] : memref<16x8x512xf32, #tpu.memory_space<vmem>>, vector<1x8x512xf32>
    %450 = vector.shape_cast %449 : vector<1x8x512xf32> to vector<8x512xf32>
    %451 = arith.truncf %447 : vector<8x128xf32> to vector<8x128xbf16>
    %c0_234 = arith.constant 0 : index
    %c0_235 = arith.constant 0 : index
    %452 = vector.load %arg4[%c0_234, %c0_235] : memref<128x512xbf16, #tpu.memory_space<vmem>>, vector<128x512xbf16>
    %cst_236 = arith.constant dense<0.000000e+00> : vector<8x512xf32>
    %453 = tpu.matmul %451, %452, %cst_236 {dimension_numbers = #tpu.dot_dimension_numbers<[1], [0], [0], [1], [0, 0, 1, 1], [], []>} : vector<8x128xbf16>, vector<128x512xbf16>, vector<8x512xf32> -> vector<8x512xf32>
    %454 = arith.addf %450, %453 : vector<8x512xf32>
    %455 = vector.extract_strided_slice %454 {offsets = [0, 0], sizes = [8, 128], strides = [1, 1]} : vector<8x512xf32> to vector<8x128xf32>
    %456 = arith.negf %455 : vector<8x128xf32>
    %457 = math.exp %456 : vector<8x128xf32>
    %cst_237 = arith.constant 1.000000e+00 : f32
    %458 = vector.broadcast %cst_237 : f32 to vector<8x128xf32>
    %459 = arith.addf %458, %457 : vector<8x128xf32>
    %460 = arith.divf %458, %459 : vector<8x128xf32>
    %461 = vector.extract_strided_slice %454 {offsets = [0, 128], sizes = [8, 128], strides = [1, 1]} : vector<8x512xf32> to vector<8x128xf32>
    %462 = arith.negf %461 : vector<8x128xf32>
    %463 = math.exp %462 : vector<8x128xf32>
    %cst_238 = arith.constant 1.000000e+00 : f32
    %464 = vector.broadcast %cst_238 : f32 to vector<8x128xf32>
    %465 = arith.addf %464, %463 : vector<8x128xf32>
    %466 = arith.divf %464, %465 : vector<8x128xf32>
    %467 = vector.extract_strided_slice %454 {offsets = [0, 256], sizes = [8, 128], strides = [1, 1]} : vector<8x512xf32> to vector<8x128xf32>
    %468 = math.tanh %467 : vector<8x128xf32>
    %469 = vector.extract_strided_slice %454 {offsets = [0, 384], sizes = [8, 128], strides = [1, 1]} : vector<8x512xf32> to vector<8x128xf32>
    %470 = arith.negf %469 : vector<8x128xf32>
    %471 = math.exp %470 : vector<8x128xf32>
    %cst_239 = arith.constant 1.000000e+00 : f32
    %472 = vector.broadcast %cst_239 : f32 to vector<8x128xf32>
    %473 = arith.addf %472, %471 : vector<8x128xf32>
    %474 = arith.divf %472, %473 : vector<8x128xf32>
    %475 = arith.mulf %466, %448 : vector<8x128xf32>
    %476 = arith.mulf %460, %468 : vector<8x128xf32>
    %477 = arith.addf %475, %476 : vector<8x128xf32>
    %478 = math.tanh %477 : vector<8x128xf32>
    %479 = arith.mulf %474, %478 : vector<8x128xf32>
    %c0_240 = arith.constant 0 : index
    %c0_241 = arith.constant 0 : index
    %480 = vector.load %arg10[%c0_240, %c0_241] : memref<8x128xf32, #tpu.memory_space<vmem>>, vector<8x128xf32>
    tpu.vector_store %arg10[%c0_240, %c0_241], %479 {strides = array<i32>} : memref<8x128xf32, #tpu.memory_space<vmem>>, vector<8x128xf32>,
    %c0_242 = arith.constant 0 : index
    %c0_243 = arith.constant 0 : index
    %481 = vector.load %arg11[%c0_242, %c0_243] : memref<8x128xf32, #tpu.memory_space<vmem>>, vector<8x128xf32>
    tpu.vector_store %arg11[%c0_242, %c0_243], %477 {strides = array<i32>} : memref<8x128xf32, #tpu.memory_space<vmem>>, vector<8x128xf32>,
    %482 = vector.shape_cast %479 : vector<8x128xf32> to vector<8x1x128xf32>
    %c0_244 = arith.constant 0 : index
    %c12_245 = arith.constant 12 : index
    %c0_246 = arith.constant 0 : index
    %483 = vector.load %arg12[%c0_244, %c12_245, %c0_246] : memref<8x16x128xf32, #tpu.memory_space<vmem>>, vector<8x1x128xf32>
    tpu.vector_store %arg12[%c0_244, %c12_245, %c0_246], %482 {strides = array<i32>} : memref<8x16x128xf32, #tpu.memory_space<vmem>>, vector<8x1x128xf32>,
    %c0_247 = arith.constant 0 : index
    %c0_248 = arith.constant 0 : index
    %484 = vector.load %arg10[%c0_247, %c0_248] : memref<8x128xf32, #tpu.memory_space<vmem>>, vector<8x128xf32>
    %c0_249 = arith.constant 0 : index
    %c0_250 = arith.constant 0 : index
    %485 = vector.load %arg11[%c0_249, %c0_250] : memref<8x128xf32, #tpu.memory_space<vmem>>, vector<8x128xf32>
    %c13 = arith.constant 13 : index
    %c0_251 = arith.constant 0 : index
    %c0_252 = arith.constant 0 : index
    %486 = vector.load %arg1[%c13, %c0_251, %c0_252] : memref<16x8x512xf32, #tpu.memory_space<vmem>>, vector<1x8x512xf32>
    %487 = vector.shape_cast %486 : vector<1x8x512xf32> to vector<8x512xf32>
    %488 = arith.truncf %484 : vector<8x128xf32> to vector<8x128xbf16>
    %c0_253 = arith.constant 0 : index
    %c0_254 = arith.constant 0 : index
    %489 = vector.load %arg4[%c0_253, %c0_254] : memref<128x512xbf16, #tpu.memory_space<vmem>>, vector<128x512xbf16>
    %cst_255 = arith.constant dense<0.000000e+00> : vector<8x512xf32>
    %490 = tpu.matmul %488, %489, %cst_255 {dimension_numbers = #tpu.dot_dimension_numbers<[1], [0], [0], [1], [0, 0, 1, 1], [], []>} : vector<8x128xbf16>, vector<128x512xbf16>, vector<8x512xf32> -> vector<8x512xf32>
    %491 = arith.addf %487, %490 : vector<8x512xf32>
    %492 = vector.extract_strided_slice %491 {offsets = [0, 0], sizes = [8, 128], strides = [1, 1]} : vector<8x512xf32> to vector<8x128xf32>
    %493 = arith.negf %492 : vector<8x128xf32>
    %494 = math.exp %493 : vector<8x128xf32>
    %cst_256 = arith.constant 1.000000e+00 : f32
    %495 = vector.broadcast %cst_256 : f32 to vector<8x128xf32>
    %496 = arith.addf %495, %494 : vector<8x128xf32>
    %497 = arith.divf %495, %496 : vector<8x128xf32>
    %498 = vector.extract_strided_slice %491 {offsets = [0, 128], sizes = [8, 128], strides = [1, 1]} : vector<8x512xf32> to vector<8x128xf32>
    %499 = arith.negf %498 : vector<8x128xf32>
    %500 = math.exp %499 : vector<8x128xf32>
    %cst_257 = arith.constant 1.000000e+00 : f32
    %501 = vector.broadcast %cst_257 : f32 to vector<8x128xf32>
    %502 = arith.addf %501, %500 : vector<8x128xf32>
    %503 = arith.divf %501, %502 : vector<8x128xf32>
    %504 = vector.extract_strided_slice %491 {offsets = [0, 256], sizes = [8, 128], strides = [1, 1]} : vector<8x512xf32> to vector<8x128xf32>
    %505 = math.tanh %504 : vector<8x128xf32>
    %506 = vector.extract_strided_slice %491 {offsets = [0, 384], sizes = [8, 128], strides = [1, 1]} : vector<8x512xf32> to vector<8x128xf32>
    %507 = arith.negf %506 : vector<8x128xf32>
    %508 = math.exp %507 : vector<8x128xf32>
    %cst_258 = arith.constant 1.000000e+00 : f32
    %509 = vector.broadcast %cst_258 : f32 to vector<8x128xf32>
    %510 = arith.addf %509, %508 : vector<8x128xf32>
    %511 = arith.divf %509, %510 : vector<8x128xf32>
    %512 = arith.mulf %503, %485 : vector<8x128xf32>
    %513 = arith.mulf %497, %505 : vector<8x128xf32>
    %514 = arith.addf %512, %513 : vector<8x128xf32>
    %515 = math.tanh %514 : vector<8x128xf32>
    %516 = arith.mulf %511, %515 : vector<8x128xf32>
    %c0_259 = arith.constant 0 : index
    %c0_260 = arith.constant 0 : index
    %517 = vector.load %arg10[%c0_259, %c0_260] : memref<8x128xf32, #tpu.memory_space<vmem>>, vector<8x128xf32>
    tpu.vector_store %arg10[%c0_259, %c0_260], %516 {strides = array<i32>} : memref<8x128xf32, #tpu.memory_space<vmem>>, vector<8x128xf32>,
    %c0_261 = arith.constant 0 : index
    %c0_262 = arith.constant 0 : index
    %518 = vector.load %arg11[%c0_261, %c0_262] : memref<8x128xf32, #tpu.memory_space<vmem>>, vector<8x128xf32>
    tpu.vector_store %arg11[%c0_261, %c0_262], %514 {strides = array<i32>} : memref<8x128xf32, #tpu.memory_space<vmem>>, vector<8x128xf32>,
    %519 = vector.shape_cast %516 : vector<8x128xf32> to vector<8x1x128xf32>
    %c0_263 = arith.constant 0 : index
    %c13_264 = arith.constant 13 : index
    %c0_265 = arith.constant 0 : index
    %520 = vector.load %arg12[%c0_263, %c13_264, %c0_265] : memref<8x16x128xf32, #tpu.memory_space<vmem>>, vector<8x1x128xf32>
    tpu.vector_store %arg12[%c0_263, %c13_264, %c0_265], %519 {strides = array<i32>} : memref<8x16x128xf32, #tpu.memory_space<vmem>>, vector<8x1x128xf32>,
    %c0_266 = arith.constant 0 : index
    %c0_267 = arith.constant 0 : index
    %521 = vector.load %arg10[%c0_266, %c0_267] : memref<8x128xf32, #tpu.memory_space<vmem>>, vector<8x128xf32>
    %c0_268 = arith.constant 0 : index
    %c0_269 = arith.constant 0 : index
    %522 = vector.load %arg11[%c0_268, %c0_269] : memref<8x128xf32, #tpu.memory_space<vmem>>, vector<8x128xf32>
    %c14 = arith.constant 14 : index
    %c0_270 = arith.constant 0 : index
    %c0_271 = arith.constant 0 : index
    %523 = vector.load %arg1[%c14, %c0_270, %c0_271] : memref<16x8x512xf32, #tpu.memory_space<vmem>>, vector<1x8x512xf32>
    %524 = vector.shape_cast %523 : vector<1x8x512xf32> to vector<8x512xf32>
    %525 = arith.truncf %521 : vector<8x128xf32> to vector<8x128xbf16>
    %c0_272 = arith.constant 0 : index
    %c0_273 = arith.constant 0 : index
    %526 = vector.load %arg4[%c0_272, %c0_273] : memref<128x512xbf16, #tpu.memory_space<vmem>>, vector<128x512xbf16>
    %cst_274 = arith.constant dense<0.000000e+00> : vector<8x512xf32>
    %527 = tpu.matmul %525, %526, %cst_274 {dimension_numbers = #tpu.dot_dimension_numbers<[1], [0], [0], [1], [0, 0, 1, 1], [], []>} : vector<8x128xbf16>, vector<128x512xbf16>, vector<8x512xf32> -> vector<8x512xf32>
    %528 = arith.addf %524, %527 : vector<8x512xf32>
    %529 = vector.extract_strided_slice %528 {offsets = [0, 0], sizes = [8, 128], strides = [1, 1]} : vector<8x512xf32> to vector<8x128xf32>
    %530 = arith.negf %529 : vector<8x128xf32>
    %531 = math.exp %530 : vector<8x128xf32>
    %cst_275 = arith.constant 1.000000e+00 : f32
    %532 = vector.broadcast %cst_275 : f32 to vector<8x128xf32>
    %533 = arith.addf %532, %531 : vector<8x128xf32>
    %534 = arith.divf %532, %533 : vector<8x128xf32>
    %535 = vector.extract_strided_slice %528 {offsets = [0, 128], sizes = [8, 128], strides = [1, 1]} : vector<8x512xf32> to vector<8x128xf32>
    %536 = arith.negf %535 : vector<8x128xf32>
    %537 = math.exp %536 : vector<8x128xf32>
    %cst_276 = arith.constant 1.000000e+00 : f32
    %538 = vector.broadcast %cst_276 : f32 to vector<8x128xf32>
    %539 = arith.addf %538, %537 : vector<8x128xf32>
    %540 = arith.divf %538, %539 : vector<8x128xf32>
    %541 = vector.extract_strided_slice %528 {offsets = [0, 256], sizes = [8, 128], strides = [1, 1]} : vector<8x512xf32> to vector<8x128xf32>
    %542 = math.tanh %541 : vector<8x128xf32>
    %543 = vector.extract_strided_slice %528 {offsets = [0, 384], sizes = [8, 128], strides = [1, 1]} : vector<8x512xf32> to vector<8x128xf32>
    %544 = arith.negf %543 : vector<8x128xf32>
    %545 = math.exp %544 : vector<8x128xf32>
    %cst_277 = arith.constant 1.000000e+00 : f32
    %546 = vector.broadcast %cst_277 : f32 to vector<8x128xf32>
    %547 = arith.addf %546, %545 : vector<8x128xf32>
    %548 = arith.divf %546, %547 : vector<8x128xf32>
    %549 = arith.mulf %540, %522 : vector<8x128xf32>
    %550 = arith.mulf %534, %542 : vector<8x128xf32>
    %551 = arith.addf %549, %550 : vector<8x128xf32>
    %552 = math.tanh %551 : vector<8x128xf32>
    %553 = arith.mulf %548, %552 : vector<8x128xf32>
    %c0_278 = arith.constant 0 : index
    %c0_279 = arith.constant 0 : index
    %554 = vector.load %arg10[%c0_278, %c0_279] : memref<8x128xf32, #tpu.memory_space<vmem>>, vector<8x128xf32>
    tpu.vector_store %arg10[%c0_278, %c0_279], %553 {strides = array<i32>} : memref<8x128xf32, #tpu.memory_space<vmem>>, vector<8x128xf32>,
    %c0_280 = arith.constant 0 : index
    %c0_281 = arith.constant 0 : index
    %555 = vector.load %arg11[%c0_280, %c0_281] : memref<8x128xf32, #tpu.memory_space<vmem>>, vector<8x128xf32>
    tpu.vector_store %arg11[%c0_280, %c0_281], %551 {strides = array<i32>} : memref<8x128xf32, #tpu.memory_space<vmem>>, vector<8x128xf32>,
    %556 = vector.shape_cast %553 : vector<8x128xf32> to vector<8x1x128xf32>
    %c0_282 = arith.constant 0 : index
    %c14_283 = arith.constant 14 : index
    %c0_284 = arith.constant 0 : index
    %557 = vector.load %arg12[%c0_282, %c14_283, %c0_284] : memref<8x16x128xf32, #tpu.memory_space<vmem>>, vector<8x1x128xf32>
    tpu.vector_store %arg12[%c0_282, %c14_283, %c0_284], %556 {strides = array<i32>} : memref<8x16x128xf32, #tpu.memory_space<vmem>>, vector<8x1x128xf32>,
    %c0_285 = arith.constant 0 : index
    %c0_286 = arith.constant 0 : index
    %558 = vector.load %arg10[%c0_285, %c0_286] : memref<8x128xf32, #tpu.memory_space<vmem>>, vector<8x128xf32>
    %c0_287 = arith.constant 0 : index
    %c0_288 = arith.constant 0 : index
    %559 = vector.load %arg11[%c0_287, %c0_288] : memref<8x128xf32, #tpu.memory_space<vmem>>, vector<8x128xf32>
    %c15 = arith.constant 15 : index
    %c0_289 = arith.constant 0 : index
    %c0_290 = arith.constant 0 : index
    %560 = vector.load %arg1[%c15, %c0_289, %c0_290] : memref<16x8x512xf32, #tpu.memory_space<vmem>>, vector<1x8x512xf32>
    %561 = vector.shape_cast %560 : vector<1x8x512xf32> to vector<8x512xf32>
    %562 = arith.truncf %558 : vector<8x128xf32> to vector<8x128xbf16>
    %c0_291 = arith.constant 0 : index
    %c0_292 = arith.constant 0 : index
    %563 = vector.load %arg4[%c0_291, %c0_292] : memref<128x512xbf16, #tpu.memory_space<vmem>>, vector<128x512xbf16>
    %cst_293 = arith.constant dense<0.000000e+00> : vector<8x512xf32>
    %564 = tpu.matmul %562, %563, %cst_293 {dimension_numbers = #tpu.dot_dimension_numbers<[1], [0], [0], [1], [0, 0, 1, 1], [], []>} : vector<8x128xbf16>, vector<128x512xbf16>, vector<8x512xf32> -> vector<8x512xf32>
    %565 = arith.addf %561, %564 : vector<8x512xf32>
    %566 = vector.extract_strided_slice %565 {offsets = [0, 0], sizes = [8, 128], strides = [1, 1]} : vector<8x512xf32> to vector<8x128xf32>
    %567 = arith.negf %566 : vector<8x128xf32>
    %568 = math.exp %567 : vector<8x128xf32>
    %cst_294 = arith.constant 1.000000e+00 : f32
    %569 = vector.broadcast %cst_294 : f32 to vector<8x128xf32>
    %570 = arith.addf %569, %568 : vector<8x128xf32>
    %571 = arith.divf %569, %570 : vector<8x128xf32>
    %572 = vector.extract_strided_slice %565 {offsets = [0, 128], sizes = [8, 128], strides = [1, 1]} : vector<8x512xf32> to vector<8x128xf32>
    %573 = arith.negf %572 : vector<8x128xf32>
    %574 = math.exp %573 : vector<8x128xf32>
    %cst_295 = arith.constant 1.000000e+00 : f32
    %575 = vector.broadcast %cst_295 : f32 to vector<8x128xf32>
    %576 = arith.addf %575, %574 : vector<8x128xf32>
    %577 = arith.divf %575, %576 : vector<8x128xf32>
    %578 = vector.extract_strided_slice %565 {offsets = [0, 256], sizes = [8, 128], strides = [1, 1]} : vector<8x512xf32> to vector<8x128xf32>
    %579 = math.tanh %578 : vector<8x128xf32>
    %580 = vector.extract_strided_slice %565 {offsets = [0, 384], sizes = [8, 128], strides = [1, 1]} : vector<8x512xf32> to vector<8x128xf32>
    %581 = arith.negf %580 : vector<8x128xf32>
    %582 = math.exp %581 : vector<8x128xf32>
    %cst_296 = arith.constant 1.000000e+00 : f32
    %583 = vector.broadcast %cst_296 : f32 to vector<8x128xf32>
    %584 = arith.addf %583, %582 : vector<8x128xf32>
    %585 = arith.divf %583, %584 : vector<8x128xf32>
    %586 = arith.mulf %577, %559 : vector<8x128xf32>
    %587 = arith.mulf %571, %579 : vector<8x128xf32>
    %588 = arith.addf %586, %587 : vector<8x128xf32>
    %589 = math.tanh %588 : vector<8x128xf32>
    %590 = arith.mulf %585, %589 : vector<8x128xf32>
    %c0_297 = arith.constant 0 : index
    %c0_298 = arith.constant 0 : index
    %591 = vector.load %arg10[%c0_297, %c0_298] : memref<8x128xf32, #tpu.memory_space<vmem>>, vector<8x128xf32>
    tpu.vector_store %arg10[%c0_297, %c0_298], %590 {strides = array<i32>} : memref<8x128xf32, #tpu.memory_space<vmem>>, vector<8x128xf32>,
    %c0_299 = arith.constant 0 : index
    %c0_300 = arith.constant 0 : index
    %592 = vector.load %arg11[%c0_299, %c0_300] : memref<8x128xf32, #tpu.memory_space<vmem>>, vector<8x128xf32>
    tpu.vector_store %arg11[%c0_299, %c0_300], %588 {strides = array<i32>} : memref<8x128xf32, #tpu.memory_space<vmem>>, vector<8x128xf32>,
    %593 = vector.shape_cast %590 : vector<8x128xf32> to vector<8x1x128xf32>
    %c0_301 = arith.constant 0 : index
    %c15_302 = arith.constant 15 : index
    %c0_303 = arith.constant 0 : index
    %594 = vector.load %arg12[%c0_301, %c15_302, %c0_303] : memref<8x16x128xf32, #tpu.memory_space<vmem>>, vector<8x1x128xf32>
    tpu.vector_store %arg12[%c0_301, %c15_302, %c0_303], %593 {strides = array<i32>} : memref<8x16x128xf32, #tpu.memory_space<vmem>>, vector<8x1x128xf32>,
    %c0_304 = arith.constant 0 : index
    %c0_305 = arith.constant 0 : index
    %c0_306 = arith.constant 0 : index
    %595 = vector.load %arg12[%c0_304, %c0_305, %c0_306] : memref<8x16x128xf32, #tpu.memory_space<vmem>>, vector<8x16x128xf32>
    %596 = vector.shape_cast %595 : vector<8x16x128xf32> to vector<128x128xf32>
    %597 = arith.truncf %596 : vector<128x128xf32> to vector<128x128xbf16>
    %c0_307 = arith.constant 0 : index
    %c0_308 = arith.constant 0 : index
    %598 = vector.load %arg5[%c0_307, %c0_308] : memref<128x256xbf16, #tpu.memory_space<vmem>>, vector<128x256xbf16>
    %cst_309 = arith.constant dense<0.000000e+00> : vector<128x256xf32>
    %599 = tpu.matmul %597, %598, %cst_309 {dimension_numbers = #tpu.dot_dimension_numbers<[1], [0], [0], [1], [0, 0, 1, 1], [], []>} : vector<128x128xbf16>, vector<128x256xbf16>, vector<128x256xf32> -> vector<128x256xf32>
    %c0_310 = arith.constant 0 : index
    %c0_311 = arith.constant 0 : index
    %600 = vector.load %arg6[%c0_310, %c0_311] : memref<1x256xf32, #tpu.memory_space<vmem>>, vector<1x256xf32>
    %601 = vector.broadcast %600 : vector<1x256xf32> to vector<128x256xf32>
    %602 = arith.addf %599, %601 : vector<128x256xf32>
    %603 = vector.shape_cast %602 : vector<128x256xf32> to vector<8x16x256xf32>
    %c0_312 = arith.constant 0 : index
    %c0_313 = arith.constant 0 : index
    %c0_314 = arith.constant 0 : index
    %604 = vector.load %arg7[%c0_312, %c0_313, %c0_314] : memref<8x16x256xf32, #tpu.memory_space<vmem>>, vector<8x16x256xf32>
    tpu.vector_store %arg7[%c0_312, %c0_313, %c0_314], %603 {strides = array<i32>} : memref<8x16x256xf32, #tpu.memory_space<vmem>>, vector<8x16x256xf32>,
    %c0_i32_315 = arith.constant 0 : i32
    %605 = arith.cmpi eq, %arg0, %c0_i32_315 : i32
    %606 = arith.extui %605 : i1 to i32
    %c0_i32_316 = arith.constant 0 : i32
    %607 = arith.cmpi ne, %606, %c0_i32_316 : i32
    scf.if %607 {
      %c0_317 = arith.constant 0 : index
      %c0_318 = arith.constant 0 : index
      %608 = vector.load %arg10[%c0_317, %c0_318] : memref<8x128xf32, #tpu.memory_space<vmem>>, vector<8x128xf32>
      %c0_319 = arith.constant 0 : index
      %c0_320 = arith.constant 0 : index
      %c0_321 = arith.constant 0 : index
      %609 = vector.load %arg8[%c0_319, %c0_320, %c0_321] : memref<1x8x128xf32, #tpu.memory_space<vmem>>, vector<1x8x128xf32>
      %610 = vector.shape_cast %609 : vector<1x8x128xf32> to vector<8x128xf32>
      %611 = vector.shape_cast %608 : vector<8x128xf32> to vector<1x8x128xf32>
      tpu.vector_store %arg8[%c0_319, %c0_320, %c0_321], %611 {strides = array<i32>} : memref<1x8x128xf32, #tpu.memory_space<vmem>>, vector<1x8x128xf32>,
      %c0_322 = arith.constant 0 : index
      %c0_323 = arith.constant 0 : index
      %612 = vector.load %arg11[%c0_322, %c0_323] : memref<8x128xf32, #tpu.memory_space<vmem>>, vector<8x128xf32>
      %c0_324 = arith.constant 0 : index
      %c0_325 = arith.constant 0 : index
      %c0_326 = arith.constant 0 : index
      %613 = vector.load %arg9[%c0_324, %c0_325, %c0_326] : memref<1x8x128xf32, #tpu.memory_space<vmem>>, vector<1x8x128xf32>
      %614 = vector.shape_cast %613 : vector<1x8x128xf32> to vector<8x128xf32>
      %615 = vector.shape_cast %612 : vector<8x128xf32> to vector<1x8x128xf32>
      tpu.vector_store %arg9[%c0_324, %c0_325, %c0_326], %615 {strides = array<i32>} : memref<1x8x128xf32, #tpu.memory_space<vmem>>, vector<1x8x128xf32>,
    } else {
    }
    return
  }
  func.func @transform_0(%arg0: i32) -> (i32, i32, i32) {
    %c0_i32 = arith.constant 0 : i32
    %c0_i32_0 = arith.constant 0 : i32
    %c0_i32_1 = arith.constant 0 : i32
    return %arg0, %c0_i32, %c0_i32_0 : i32, i32, i32
  }
  func.func @transform_1(%arg0: i32) -> (i32, i32, i32) {
    %c0_i32 = arith.constant 0 : i32
    %c0_i32_0 = arith.constant 0 : i32
    %c0_i32_1 = arith.constant 0 : i32
    %c0_i32_2 = arith.constant 0 : i32
    return %c0_i32, %c0_i32_0, %c0_i32_1 : i32, i32, i32
  }
  func.func @transform_2(%arg0: i32) -> (i32, i32, i32) {
    %c0_i32 = arith.constant 0 : i32
    %c0_i32_0 = arith.constant 0 : i32
    %c0_i32_1 = arith.constant 0 : i32
    %c0_i32_2 = arith.constant 0 : i32
    return %c0_i32, %c0_i32_0, %c0_i32_1 : i32, i32, i32
  }
  func.func @transform_3(%arg0: i32) -> (i32, i32) {
    %c0_i32 = arith.constant 0 : i32
    %c0_i32_0 = arith.constant 0 : i32
    %c0_i32_1 = arith.constant 0 : i32
    return %c0_i32, %c0_i32_0 : i32, i32
  }
  func.func @transform_4(%arg0: i32) -> (i32, i32) {
    %c0_i32 = arith.constant 0 : i32
    %c0_i32_0 = arith.constant 0 : i32
    %c0_i32_1 = arith.constant 0 : i32
    return %c0_i32, %c0_i32_0 : i32, i32
  }
  func.func @transform_5(%arg0: i32) -> (i32, i32) {
    %c0_i32 = arith.constant 0 : i32
    %c0_i32_0 = arith.constant 0 : i32
    %c0_i32_1 = arith.constant 0 : i32
    return %c0_i32, %c0_i32_0 : i32, i32
  }
  func.func @transform_6(%arg0: i32) -> (i32, i32, i32) {
    %c0_i32 = arith.constant 0 : i32
    %c0_i32_0 = arith.constant 0 : i32
    %c0_i32_1 = arith.constant 0 : i32
    return %c0_i32, %arg0, %c0_i32_0 : i32, i32, i32
  }
  func.func @transform_7(%arg0: i32) -> (i32, i32, i32) {
    %c0_i32 = arith.constant 0 : i32
    %c0_i32_0 = arith.constant 0 : i32
    %c0_i32_1 = arith.constant 0 : i32
    %c0_i32_2 = arith.constant 0 : i32
    return %c0_i32, %c0_i32_0, %c0_i32_1 : i32, i32, i32
  }
  func.func @transform_8(%arg0: i32) -> (i32, i32, i32) {
    %c0_i32 = arith.constant 0 : i32
    %c0_i32_0 = arith.constant 0 : i32
    %c0_i32_1 = arith.constant 0 : i32
    %c0_i32_2 = arith.constant 0 : i32
    return %c0_i32, %c0_i32_0, %c0_i32_1 : i32, i32, i32
  }
}

</mosaic_0001>

<bundles_post_ra>
// kernel: lstm_model_forward.2
= control target key start
LH: loop header
LB: loop body
LE: loop exit
PB: predicated region body
PF: predicated region fallthrough
CT: control target
= control target key end

     0   :  { %9 = vsyncpa [#allocation3], 0  ;;  %s1277_s15 = smov 0   ;;  %s1523_s0 = inlined_call_operand.vmem [shape: s32[128,1], index: 0, kind: input, shape index: {}]   ;;  %s1524_s1 = inlined_call_operand.vmem [shape: bf16[256,128], index: 1, kind: input, shape index: {}]   ;;  %s1525_s2 = inlined_call_operand.hbm [shape: bf16[128,512], index: 2, kind: input, shape index: {}]   ;;  %s1526_s3 = inlined_call_operand.vmem [shape: f32[1,512], index: 3, kind: input, shape index: {}]   ;;  %s1527_s4 = inlined_call_operand.vmem [shape: f32[128,512], index: 4, kind: output, shape index: {}]  }
   0x1 LB: > { %s969_s16 = sadd.s32 4294967295, %s1245_s15   ;;  %p971_p0 = scmp.ge.s32.totalorder %s1245_s15, 1  ;;  %s1245_s15 = sphi %s1277_s15, %s15_s15  }
   0x2   : > { %p135_p1 = scmp.lt.s32.totalorder %s1245_s15, 3  ;;  %s1247_s17 = smov [#allocation2]  }
   0x3   : > { %s150_s18 = sshll.u32 %s1247_s17, 4  ;;  %p1289_p3 = scmp.eq.s32.totalorder %s969_s16, 0  ;;  %s151_s18 = int_to_ptr.vmem [resolvable:$true] %s150_s18 }
   0x4   : > { %p1285_p2 = pnand %p971_p0, %p135_p1  ;;  %s1220_s21 = scalar_lea.vmem %s151_s18, 4096 }
   0x5   : > { %p1221_p7 = scmp.ne.s32.totalorder %s151_s18, %s1220_s21  ;;  %p1228_p10 = scmp.lt.s32.totalorder %s151_s18, %s151_s18 }
   0x6   : > { %p1124_p4 = pneg %p1285_p2  ;;  %p1229_p11 = scmp.lt.s32.totalorder %s1220_s21, %s1220_s21 }
   0x8   : > { %p1125_p5 = pnand %p1289_p3, %p1124_p4  ;;  %p1230_p12 = por %p1229_p11, %p1228_p10 }
   0xa   : > { %p1211_p6 = pneg %p1125_p5 }
   0xc   : > { %p1223_p8 = pnand %p1221_p7, %p1211_p6 }
   0xe   : > { %p1224_p9 = pneg %p1223_p8 }
  0x10   : > { %p1231_p13 = pnand %p1230_p12, %p1224_p9 }
  0x12   : > { %1234 = shalt.err (!%p1231_p13)
}
  0x13   : > { %s1248_s22 = smov 256   ;;  %s1249_s23 = smov 16  }
  0x14   : > { %1127 = dma.hbm_to_vmem [thread:$0]  (!%p1125_p5), %s1525_s2, 4096, %s151_s18, [#allocation3], %s1248_s22, %s1248_s22, %s1249_s23  }
  0x15   : > { %178 = sbr.rel (%p1285_p2) target bundleno = 612 (0x264), region = 36 }
  0x1a   : > { %1240 = dma.done.wait (%p1289_p3), [#allocation3], 4096  }
  0x1b   : > { %1242 = vsyncadd (%p1289_p3), [#allocation3], 4294963200  ;;  %s976_s26 = sshll.u32 %s969_s16, 3  ;;  %v1250_v0 = vmov 0   ;;  %v1145_v5 = vld [vmem:[%s1524_s1 + $0x78] sm:$0xff]   ;;  %v1147_v8 = vld [vmem:[%s1524_s1 + $0x70] sm:$0xff]   ;;  %v227_v38 = vlaneseq }
  0x1c   : > { %1144 = vset.pattern.permute.xlu1 %v1250_v0  ;;  %1143 = vset.pattern.permute.xlu0 %v1250_v0  ;;  %p206_p0 = scmp.lt.s32.totalorder %s976_s26, 15  ;;  %v1146_v7 = vld [vmem:[%s1524_s1 + $0x38] sm:$0xff]   ;;  %v1148_v10 = vld [vmem:[%s1524_s1 + $0x30] sm:$0xff]   ;;  %v1149_v11 = vld [vmem:[%s1524_s1 + $0x68] sm:$0xff]   ;;  %v1251_v47 = vmov 1.0|1.0  }
  0x1d   : > { %753 = vmatprep.mubr.bf16.mxu1 %v1250_v0  ;;  %1064 = vmatprep.subr.bf16.mxu0 %v1145_v5  ;;  %v1150_v14 = vld [vmem:[%s1524_s1 + $0x28] sm:$0xff]   ;;  %v1151_v15 = vld [vmem:[%s1524_s1 + $0x60] sm:$0xff]   ;;  %v1153_v17 = vld [vmem:[%s1524_s1 + $0x58] sm:$0xff]   ;;  %v1367_v39 = vand.u32 127, %v227_v38 }
  0x1e   : > { %s1531_s26 = smov (!%p206_p0, %s976_s26), 15  ;;  %1065 = vmatpush3.bf16.msra.mxu0 %v1146_v7  ;;  %v1152_v16 = vld [vmem:[%s1524_s1 + $0x20] sm:$0xff]   ;;  %v1154_v18 = vld [vmem:[%s1524_s1 + $0x18] sm:$0xff]   ;;  %v1155_v19 = vld [vmem:[%s1524_s1 + $0x50] sm:$0xff]  }
  0x1f   : > { %s977_s27 = sshll.u32 %s1531_s26, 3  ;;  %1066 = vmatprep.subr.bf16.mxu0 %v1147_v8  ;;  %v1156_v20 = vld [vmem:[%s1524_s1 + $0x10] sm:$0xff]   ;;  %v1157_v21 = vld [vmem:[%s1524_s1 + $0x48] sm:$0xff]   ;;  %v1159_v23 = vld [vmem:[%s1524_s1 + $0x40] sm:$0xff]   ;;  %v229_v42 = vadd.s32 128, %v1367_v39  ;;  %s1063_s16 = sshll.u32 %s1531_s26, 5 }
  0x20   : > { %s209_s30 = scalar_lea.vmem %s1523_s0, %s977_s27  ;;  %v1158_v22 = vld [vmem:[%s1524_s1 + $0x8] sm:$0xff]   ;;  %v1160_v24 = vld [vmem:[%s1524_s1] sm:$0xff]   ;;  %s1454_s19 = scalar_lea.vmem %s1527_s4, %s1063_s16 }
  0x21   : > { %v221_v1 = vld [vmem:[%s209_s30 + $0x10] sm:$0xff]  ;;  %v219_v2 = vld [vmem:[%s209_s30] sm:$0xff]  ;;  %v222_v3 = vld [vmem:[%s209_s30 + $0x18] sm:$0xff] }
  0x22   : > { %237 = vperm.xlu1 %1144, %v221_v1   ;;  %231 = vperm.xlu0 %1143, %v219_v2   ;;  %v220_v4 = vld [vmem:[%s209_s30 + $0x8] sm:$0xff]  ;;  %v223_v9 = vld [vmem:[%s209_s30 + $0x20] sm:$0xff]  ;;  %v226_v12 = vld [vmem:[%s209_s30 + $0x38] sm:$0xff] }
  0x23   : > { %v224_v6 = vld [vmem:[%s209_s30 + $0x28] sm:$0xff]  ;;  %v225_v13 = vld [vmem:[%s209_s30 + $0x30] sm:$0xff]  ;;  %1067 = vmatpush3.bf16.msra.mxu0 %v1148_v10 }
  0x24   : > { %1068 = vmatprep.subr.bf16.mxu0 %v1149_v11  ;;  %v1161_v25 = vld [vmem:[#allocation2 + $0xe4] ss:$16 sps:$4 sm:$0xff]   ;;  %v1163_v26 = vld [vmem:[#allocation2 + $0xe0] ss:$16 sps:$4 sm:$0xff]   ;;  %v1363_v27 = vld [vmem:[#allocation2 + $0xec] ss:$16 sps:$4 sm:$0xff]  }
  0x25   : > { %v1167_v28 = vld [vmem:[#allocation2 + $0xc4] ss:$16 sps:$4 sm:$0xff]   ;;  %721 = vmatprep.subr.bf16.mxu1 %v1161_v25  ;;  %v1169_v29 = vld [vmem:[#allocation2 + $0xc0] ss:$16 sps:$4 sm:$0xff]   ;;  %v1372_v45 = vld [vmem:[#allocation2 + $0xe8] ss:$16 sps:$4 sm:$0xff]  }
  0x26   : > { %240 = vperm.xlu1 %1144, %v222_v3   ;;  %234 = vperm.xlu0 %1143, %v220_v4   ;;  %v1173_v30 = vld [vmem:[#allocation2 + $0xa4] ss:$16 sps:$4 sm:$0xff]   ;;  %v1175_v31 = vld [vmem:[#allocation2 + $0xa0] ss:$16 sps:$4 sm:$0xff]   ;;  %v1374_v46 = vld [vmem:[#allocation2 + $0xcc] ss:$16 sps:$4 sm:$0xff]  }
  0x27   : > { %1069 = vmatpush3.bf16.msra.mxu0 %v1150_v14  ;;  %722 = vmatpush1.bf16.msra.mxu1 %v1163_v26  ;;  %v1179_v32 = vld [vmem:[#allocation2 + $0x84] ss:$16 sps:$4 sm:$0xff]   ;;  %v1181_v33 = vld [vmem:[#allocation2 + $0x80] ss:$16 sps:$4 sm:$0xff]   ;;  %v1377_v48 = vld [vmem:[#allocation2 + $0xc8] ss:$16 sps:$4 sm:$0xff]  }
  0x28   : > { %1070 = vmatprep.subr.bf16.mxu0 %v1151_v15  ;;  %723 = vmatprep.subr.bf16.mxu1 %v1167_v28  ;;  %v1185_v34 = vld [vmem:[#allocation2 + $0x64] ss:$16 sps:$4 sm:$0xff]   ;;  %v1187_v35 = vld [vmem:[#allocation2 + $0x60] ss:$16 sps:$4 sm:$0xff]   ;;  %v1380_v51 = vld [vmem:[#allocation2 + $0xac] ss:$16 sps:$4 sm:$0xff]  }
  0x29   : > { %v1191_v36 = vld [vmem:[#allocation2 + $0x44] ss:$16 sps:$4 sm:$0xff]   ;;  %v1193_v37 = vld [vmem:[#allocation2 + $0x40] ss:$16 sps:$4 sm:$0xff]   ;;  %v1385_v52 = vld [vmem:[#allocation2 + $0xa8] ss:$16 sps:$4 sm:$0xff]  }
  0x2a   : > { %246 = vperm.xlu1 %1144, %v224_v6   ;;  %243 = vperm.xlu0 %1143, %v223_v9   ;;  %v1388_v53 = vld [vmem:[#allocation2 + $0x8c] ss:$16 sps:$4 sm:$0xff]   ;;  %v1391_v54 = vld [vmem:[#allocation2 + $0x88] ss:$16 sps:$4 sm:$0xff]   ;;  %v1197_v61 = vld [vmem:[#allocation2 + $0x24] ss:$16 sps:$4 sm:$0xff]  }
  0x2b   : > { %1071 = vmatpush3.bf16.msra.mxu0 %v1152_v16  ;;  %724 = vmatpush1.bf16.msra.mxu1 %v1169_v29  ;;  %v1394_v57 = vld [vmem:[#allocation2 + $0x6c] ss:$16 sps:$4 sm:$0xff]   ;;  %v1399_v58 = vld [vmem:[#allocation2 + $0x68] ss:$16 sps:$4 sm:$0xff]   ;;  %v1199_v63 = vld [vmem:[#allocation2 + $0x20] ss:$16 sps:$4 sm:$0xff]  }
  0x2c   : > { %1072 = vmatprep.subr.bf16.mxu0 %v1153_v17  ;;  %725 = vmatprep.subr.bf16.mxu1 %v1173_v30  ;;  %v1402_v59 = vld [vmem:[#allocation2 + $0x4c] ss:$16 sps:$4 sm:$0xff]   ;;  %v1405_v60 = vld [vmem:[#allocation2 + $0x48] ss:$16 sps:$4 sm:$0xff]   ;;  %v1203_v2 = vld [vmem:[#allocation2 + $0x4] ss:$16 sps:$4 sm:$0xff]  }
  0x2d   : > { %v1412_v62 = vld [vmem:[#allocation2 + $0x2c] ss:$16 sps:$4 sm:$0xff]   ;;  %v1414_v1 = vld [vmem:[#allocation2 + $0x28] ss:$16 sps:$4 sm:$0xff]   ;;  %v1205_v4 = vld [vmem:[#allocation2] ss:$16 sps:$4 sm:$0xff]  }
  0x2e   : > { %252 = vperm.xlu1 %1144, %v226_v12   ;;  %249 = vperm.xlu0 %1143, %v225_v13   ;;  %v1208_v3 = vld [vmem:[#allocation2 + $0xc] ss:$16 sps:$4 sm:$0xff]   ;;  %v1206_v5 = vld [vmem:[#allocation2 + $0x8] ss:$16 sps:$4 sm:$0xff]  }
  0x2f   : > { %1073 = vmatpush3.bf16.msra.mxu0 %v1154_v18  ;;  %726 = vmatpush1.bf16.msra.mxu1 %v1175_v31 }
  0x30   : > { %1074 = vmatprep.subr.bf16.mxu0 %v1155_v19  ;;  %727 = vmatprep.subr.bf16.mxu1 %v1179_v32 }
  0x33   : > { %1075 = vmatpush3.bf16.msra.mxu0 %v1156_v20  ;;  %728 = vmatpush1.bf16.msra.mxu1 %v1181_v33 }
  0x34   : > { %1076 = vmatprep.subr.bf16.mxu0 %v1157_v21  ;;  %729 = vmatprep.subr.bf16.mxu1 %v1185_v34  ;;  %v542_v34 = vshrl.u32 %v227_v38, 7 }
  0x37   : > { %1077 = vmatpush3.bf16.msra.mxu0 %v1158_v22  ;;  %730 = vmatpush1.bf16.msra.mxu1 %v1187_v35  ;;  %v543_v35 = vsub.s32 0, %v542_v34 }
  0x38   : > { %1078 = vmatprep.subr.bf16.mxu0 %v1159_v23  ;;  %731 = vmatprep.subr.bf16.mxu1 %v1191_v36  ;;  %v551_v36 = vsub.s32 2, %v542_v34 }
  0x3b   : > { %1079 = vmatpush3.bf16.msra.mxu0 %v1160_v24  ;;  %732 = vmatpush1.bf16.msra.mxu1 %v1193_v37  ;;  %v539_v37 = vld [vmem:[%s1526_s3] sm:$0xf] }
  0x3c   : > { %794 = vmatprep.subr.bf16.mxu0 %v1363_v27  ;;  %733 = vmatprep.subr.bf16.mxu1 %v1197_v61 }
  0x3f   : > { %734 = vmatpush1.bf16.msra.mxu1 %v1199_v63 }
  0x40   : > { %735 = vmatprep.subr.bf16.mxu1 %v1203_v2 }
  0x43   : > { %736 = vmatpush1.bf16.msra.mxu1 %v1205_v4 }
  0x44   : > { %1104 = vmatprep.subr.bf16.mxu1 %v1363_v27 }
  0x9d   : > { %v238_v40 = vpop.permute.xlu1 %237  ;;  %v232_v41 = vpop.permute.xlu0 %231 }
  0x9e   : > { %vm259_vm0 = vcmp.eq.s32.totalorder %v229_v42, %v238_v40  ;;  %vm254_vm4 = vcmp.eq.s32.totalorder %v1367_v39, %v232_v41  ;;  %vm255_vm7 = vcmp.eq.s32.totalorder %v229_v42, %v232_v41  ;;  %vm258_vm9 = vcmp.eq.s32.totalorder %v1367_v39, %v238_v40 }
  0x9f   : > { %v555_v40 = vsub.s32 3, %v542_v34  ;;  %v1443_v41 = vrot.slane %v539_v37, %v543_v35 }
  0xa1   : > { %v241_v43 = vpop.permute.xlu1 %240  ;;  %v235_v44 = vpop.permute.xlu0 %234 }
  0xa2   : > { %vm261_vm1 = vcmp.eq.s32.totalorder %v229_v42, %v241_v43  ;;  %vm256_vm2 = vcmp.eq.s32.totalorder %v1367_v39, %v235_v44  ;;  %vm257_vm3 = vcmp.eq.s32.totalorder %v229_v42, %v235_v44  ;;  %vm260_vm10 = vcmp.eq.s32.totalorder %v1367_v39, %v241_v43 }
  0xa3   : > { %vm1017_vm5 = vmpackc.low %vm261_vm1, %vm259_vm0  ;;  %v1449_v44 = vrot.slane %v539_v37, %v555_v40 }
  0xa4   : > { %vm1015_vm6 = vmpackc.low %vm256_vm2, %vm254_vm4 }
  0xa5   : > { %vm1013_vm8 = vmpackc.low %vm257_vm3, %vm255_vm7  ;;  %v247_v49 = vpop.permute.xlu1 %246  ;;  %v244_v50 = vpop.permute.xlu0 %243 }
  0xa6   : > { %1014 = vmatprep.mubr.msk.bf16.mxu0 %vm1013_vm8, %v1251_v47  ;;  %vm265_vm11 = vcmp.eq.s32.totalorder %v229_v42, %v247_v49  ;;  %vm263_vm12 = vcmp.eq.s32.totalorder %v229_v42, %v244_v50  ;;  %vm1019_vm13 = vmpackc.low %vm260_vm10, %vm258_vm9  ;;  %vm264_vm15 = vcmp.eq.s32.totalorder %v1367_v39, %v247_v49  ;;  %vm262_vm0 = vcmp.eq.s32.totalorder %v1367_v39, %v244_v50 }
  0xa7   : > { %1016 = vmatmul.mubr.msk.bf16.vlgmr.msra.gmra.mxu0 %vm1015_vm6, %v1251_v47  ;;  %vm1021_vm14 = vmpackc.low %vm265_vm11, %vm263_vm12 }
  0xa8   : > { %1018 = vmatprep.mubr.msk.bf16.mxu0 %vm1017_vm5, %v1251_v47  ;;  %795 = vmatpush1.bf16.msra.mxu0 %v1372_v45  ;;  %vm1023_vm3 = vmpackc.low %vm264_vm15, %vm262_vm0 }
  0xa9   : > { %796 = vmatprep.subr.bf16.mxu0 %v1374_v46  ;;  %v253_v55 = vpop.permute.xlu1 %252  ;;  %v250_v56 = vpop.permute.xlu0 %249 }
  0xaa   : > { %vm269_vm1 = vcmp.eq.s32.totalorder %v229_v42, %v253_v55  ;;  %vm267_vm2 = vcmp.eq.s32.totalorder %v229_v42, %v250_v56  ;;  %vm268_vm5 = vcmp.eq.s32.totalorder %v1367_v39, %v253_v55  ;;  %vm266_vm6 = vcmp.eq.s32.totalorder %v1367_v39, %v250_v56 }
  0xab   : > { %vm1025_vm4 = vmpackc.low %vm269_vm1, %vm267_vm2  ;;  %v547_v39 = vsub.s32 1, %v542_v34  ;;  %v1445_v42 = vrot.slane %v539_v37, %v551_v36 }
  0xac   : > { %797 = vmatpush1.bf16.msra.mxu0 %v1377_v48  ;;  %vm1027_vm7 = vmpackc.low %vm268_vm5, %vm266_vm6 }
  0xad   : > { %798 = vmatprep.subr.bf16.mxu0 %v1380_v51  ;;  %v1447_v43 = vrot.slane %v539_v37, %v547_v39 }
  0xaf   : > { %1020 = vmatmul.mubr.msk.bf16.gmra.mxu0 %vm1019_vm13, %v1251_v47 }
  0xb0   : > { %1022 = vmatprep.mubr.msk.bf16.mxu0 %vm1021_vm14, %v1251_v47  ;;  %799 = vmatpush1.bf16.msra.mxu0 %v1385_v52 }
  0xb1   : > { %800 = vmatprep.subr.bf16.mxu0 %v1388_v53 }
  0xb4   : > { %801 = vmatpush1.bf16.msra.mxu0 %v1391_v54 }
  0xb5   : > { %802 = vmatprep.subr.bf16.mxu0 %v1394_v57 }
  0xb7   : > { %1024 = vmatmul.mubr.msk.bf16.gmra.mxu0 %vm1023_vm3, %v1251_v47 }
  0xb8   : > { %1026 = vmatprep.mubr.msk.bf16.mxu0 %vm1025_vm4, %v1251_v47  ;;  %803 = vmatpush1.bf16.msra.mxu0 %v1399_v58 }
  0xb9   : > { %804 = vmatprep.subr.bf16.mxu0 %v1402_v59 }
  0xbc   : > { %805 = vmatpush1.bf16.msra.mxu0 %v1405_v60 }
  0xbd   : > { %806 = vmatprep.subr.bf16.mxu0 %v1412_v62 }
  0xbf   : > { %1028 = vmatmul.mubr.msk.bf16.gmra.mxu0 %vm1027_vm7, %v1251_v47 }
  0xc0   : > { %826 = vmatprep.mubr.bf16.mxu0 %v1250_v0  ;;  %807 = vmatpush1.bf16.msra.mxu0 %v1414_v1 }
  0xc1   : > { %808 = vmatprep.subr.bf16.mxu0 %v1208_v3 }
  0xc4   : > { %809 = vmatpush1.bf16.msra.mxu0 %v1206_v5 }
 0x167   : > { %v1080_v6 = vpop.f32.mrf.mxu0 }
 0x169   : > { %v1081_v7 = vpop.f32.mrf.mxu0 }
 0x16a   : > { %v1082_v10 = vadd.f32 %v1081_v7, %v1080_v6 }
 0x16b   : > { %v1083_v8 = vpop.f32.mrf.mxu0 }
 0x16d   : > { %v1084_v9 = vpop.f32.mrf.mxu0 }
 0x16e   : > { %v1085_v11 = vadd.f32 %v1084_v9, %v1083_v8 }
 0x16f   : > { %v1086_v12 = vpop.f32.mrf.mxu0 }
 0x170   : > { %v503_v13 = vpack.c.bf16 %v1085_v11, %v1082_v10 }
 0x171   : > { %v1087_v14 = vpop.f32.mrf.mxu0 }
 0x172   : > { %754 = vmatmul.mubr.bf16.vlgmr.msra.gmra.mxu1 %v503_v13  ;;  %827 = vmatmul.mubr.bf16.vlgmr.msra.gmra.mxu0 %v503_v13  ;;  %v1088_v17 = vadd.f32 %v1087_v14, %v1086_v12 }
 0x173   : > { %1112 = vmatpush1.bf16.msra.mxu1 %v1372_v45  ;;  %v1089_v15 = vpop.f32.mrf.mxu0  ;;  %763 = vmatprep.mubr.bf16.mxu1 %v1250_v0 }
 0x174   : > { %1105 = vmatprep.subr.bf16.mxu1 %v1374_v46  ;;  %836 = vmatprep.mubr.bf16.mxu0 %v1250_v0 }
 0x175   : > { %v1090_v16 = vpop.f32.mrf.mxu0 }
 0x176   : > { %v1091_v18 = vadd.f32 %v1090_v16, %v1089_v15 }
 0x177   : > { %1113 = vmatpush1.bf16.msra.mxu1 %v1377_v48  ;;  %v1092_v19 = vpop.f32.mrf.mxu0 }
 0x178   : > { %v504_v20 = vpack.c.bf16 %v1091_v18, %v1088_v17  ;;  %1106 = vmatprep.subr.bf16.mxu1 %v1380_v51 }
 0x179   : > { %v1093_v21 = vpop.f32.mrf.mxu0 }
 0x17a   : > { %764 = vmatmul.mubr.bf16.gmra.mxu1 %v504_v20  ;;  %837 = vmatmul.mubr.bf16.gmra.mxu0 %v504_v20  ;;  %v1094_v24 = vadd.f32 %v1093_v21, %v1092_v19 }
 0x17b   : > { %1114 = vmatpush1.bf16.msra.mxu1 %v1385_v52  ;;  %v1095_v22 = vpop.f32.mrf.mxu0  ;;  %773 = vmatprep.mubr.bf16.mxu1 %v1250_v0 }
 0x17c   : > { %1107 = vmatprep.subr.bf16.mxu1 %v1388_v53 }
 0x17d   : > { %v1096_v23 = vpop.f32.mrf.mxu0 }
 0x17e   : > { %v1097_v25 = vadd.f32 %v1096_v23, %v1095_v22 }
 0x17f   : > { %1115 = vmatpush1.bf16.msra.mxu1 %v1391_v54  ;;  %v1098_v26 = vpop.f32.mrf.mxu0 }
 0x180   : > { %v505_v27 = vpack.c.bf16 %v1097_v25, %v1094_v24  ;;  %1108 = vmatprep.subr.bf16.mxu1 %v1394_v57 }
 0x181   : > { %v1099_v28 = vpop.f32.mrf.mxu0 }
 0x182   : > { %774 = vmatmul.mubr.bf16.gmra.mxu1 %v505_v27  ;;  %v1100_v31 = vadd.f32 %v1099_v28, %v1098_v26 }
 0x183   : > { %1116 = vmatpush1.bf16.msra.mxu1 %v1399_v58  ;;  %v1101_v29 = vpop.f32.mrf.mxu0  ;;  %783 = vmatprep.mubr.bf16.mxu1 %v1250_v0 }
 0x184   : > { %1109 = vmatprep.subr.bf16.mxu1 %v1402_v59 }
 0x185   : > { %v1102_v30 = vpop.f32.mrf.mxu0 }
 0x186   : > { %v1103_v32 = vadd.f32 %v1102_v30, %v1101_v29 }
 0x187   : > { %1117 = vmatpush1.bf16.msra.mxu1 %v1405_v60 }
 0x188   : > { %v506_v33 = vpack.c.bf16 %v1103_v32, %v1100_v31  ;;  %1110 = vmatprep.subr.bf16.mxu1 %v1412_v62 }
 0x18a   : > { %784 = vmatmul.mubr.bf16.gmra.mxu1 %v506_v33 }
 0x18b   : > { %1118 = vmatpush1.bf16.msra.mxu1 %v1414_v1  ;;  %846 = vmatprep.mubr.bf16.mxu1 %v1250_v0 }
 0x18c   : > { %1111 = vmatprep.subr.bf16.mxu1 %v1208_v3 }
 0x18f   : > { %1119 = vmatpush1.bf16.msra.mxu1 %v1206_v5 }
 0x192   : > { %847 = vmatmul.mubr.bf16.vlgmr.msra.gmra.mxu1 %v505_v27 }
 0x193   : > { %856 = vmatprep.mubr.bf16.mxu1 %v1250_v0 }
 0x19a   : > { %857 = vmatmul.mubr.bf16.gmra.mxu1 %v506_v33 }
 0x232   : > { %v755_v0 = vpop.f32.mrf.mxu1  ;;  %v828_v38 = vpop.f32.mrf.mxu0 }
 0x233   : > { %v756_v45 = vadd.f32 %v755_v0, %v1443_v41  ;;  %v829_v46 = vadd.f32 %v828_v38, %v1445_v42 }
 0x234   : > { %v757_v47 = vpop.f32.mrf.mxu1  ;;  %v830_v48 = vpop.f32.mrf.mxu0 }
 0x235   : > { %867 = vst [vmem:[%s1454_s19] sm:$0xff] %v756_v45  ;;  %869 = vst [vmem:[%s1454_s19 + $0x10] sm:$0xff] %v829_v46  ;;  %v758_v49 = vadd.f32 %v757_v47, %v1447_v43  ;;  %v831_v50 = vadd.f32 %v830_v48, %v1449_v44 }
 0x236   : > { %v759_v51 = vpop.f32.mrf.mxu1  ;;  %v832_v52 = vpop.f32.mrf.mxu0 }
 0x237   : > { %868 = vst [vmem:[%s1454_s19 + $0x8] sm:$0xff] %v758_v49  ;;  %870 = vst [vmem:[%s1454_s19 + $0x18] sm:$0xff] %v831_v50  ;;  %v760_v53 = vadd.f32 %v759_v51, %v1443_v41  ;;  %v833_v54 = vadd.f32 %v832_v52, %v1445_v42 }
 0x238   : > { %v761_v55 = vpop.f32.mrf.mxu1  ;;  %v834_v56 = vpop.f32.mrf.mxu0 }
 0x239   : > { %871 = vst [vmem:[%s1454_s19 + $0x20] sm:$0xff] %v760_v53  ;;  %873 = vst [vmem:[%s1454_s19 + $0x30] sm:$0xff] %v833_v54  ;;  %v762_v57 = vadd.f32 %v761_v55, %v1447_v43  ;;  %v835_v58 = vadd.f32 %v834_v56, %v1449_v44 }
 0x23a   : > { %v765_v59 = vpop.f32.mrf.mxu1  ;;  %v838_v60 = vpop.f32.mrf.mxu0 }
 0x23b   : > { %872 = vst [vmem:[%s1454_s19 + $0x28] sm:$0xff] %v762_v57  ;;  %874 = vst [vmem:[%s1454_s19 + $0x38] sm:$0xff] %v835_v58  ;;  %v766_v61 = vadd.f32 %v765_v59, %v1443_v41  ;;  %v839_v62 = vadd.f32 %v838_v60, %v1445_v42 }
 0x23c   : > { %v767_v63 = vpop.f32.mrf.mxu1  ;;  %v840_v1 = vpop.f32.mrf.mxu0 }
 0x23d   : > { %875 = vst [vmem:[%s1454_s19 + $0x40] sm:$0xff] %v766_v61  ;;  %877 = vst [vmem:[%s1454_s19 + $0x50] sm:$0xff] %v839_v62  ;;  %v768_v2 = vadd.f32 %v767_v63, %v1447_v43  ;;  %v841_v3 = vadd.f32 %v840_v1, %v1449_v44 }
 0x23e   : > { %v769_v4 = vpop.f32.mrf.mxu1  ;;  %v842_v5 = vpop.f32.mrf.mxu0 }
 0x23f   : > { %876 = vst [vmem:[%s1454_s19 + $0x48] sm:$0xff] %v768_v2  ;;  %878 = vst [vmem:[%s1454_s19 + $0x58] sm:$0xff] %v841_v3  ;;  %v770_v6 = vadd.f32 %v769_v4, %v1443_v41  ;;  %v843_v7 = vadd.f32 %v842_v5, %v1445_v42 }
 0x240   : > { %v771_v8 = vpop.f32.mrf.mxu1  ;;  %v844_v9 = vpop.f32.mrf.mxu0 }
 0x241   : > { %879 = vst [vmem:[%s1454_s19 + $0x60] sm:$0xff] %v770_v6  ;;  %881 = vst [vmem:[%s1454_s19 + $0x70] sm:$0xff] %v843_v7  ;;  %v772_v10 = vadd.f32 %v771_v8, %v1447_v43  ;;  %v845_v11 = vadd.f32 %v844_v9, %v1449_v44 }
 0x242   : > { %v775_v12 = vpop.f32.mrf.mxu1 }
 0x243   : > { %880 = vst [vmem:[%s1454_s19 + $0x68] sm:$0xff] %v772_v10  ;;  %882 = vst [vmem:[%s1454_s19 + $0x78] sm:$0xff] %v845_v11  ;;  %v776_v13 = vadd.f32 %v775_v12, %v1443_v41 }
 0x244   : > { %v777_v14 = vpop.f32.mrf.mxu1 }
 0x245   : > { %883 = vst [vmem:[%s1454_s19 + $0x80] sm:$0xff] %v776_v13  ;;  %v778_v15 = vadd.f32 %v777_v14, %v1447_v43 }
 0x246   : > { %v779_v16 = vpop.f32.mrf.mxu1 }
 0x247   : > { %884 = vst [vmem:[%s1454_s19 + $0x88] sm:$0xff] %v778_v15  ;;  %v780_v17 = vadd.f32 %v779_v16, %v1443_v41 }
 0x248   : > { %v781_v18 = vpop.f32.mrf.mxu1 }
 0x249   : > { %887 = vst [vmem:[%s1454_s19 + $0xa0] sm:$0xff] %v780_v17  ;;  %v782_v19 = vadd.f32 %v781_v18, %v1447_v43 }
 0x24a   : > { %v785_v20 = vpop.f32.mrf.mxu1 }
 0x24b   : > { %888 = vst [vmem:[%s1454_s19 + $0xa8] sm:$0xff] %v782_v19  ;;  %v786_v21 = vadd.f32 %v785_v20, %v1443_v41 }
 0x24c   : > { %v787_v22 = vpop.f32.mrf.mxu1 }
 0x24d   : > { %891 = vst [vmem:[%s1454_s19 + $0xc0] sm:$0xff] %v786_v21  ;;  %v788_v23 = vadd.f32 %v787_v22, %v1447_v43 }
 0x24e   : > { %v789_v24 = vpop.f32.mrf.mxu1 }
 0x24f   : > { %892 = vst [vmem:[%s1454_s19 + $0xc8] sm:$0xff] %v788_v23  ;;  %v790_v25 = vadd.f32 %v789_v24, %v1443_v41 }
 0x250   : > { %v791_v26 = vpop.f32.mrf.mxu1 }
 0x251   : > { %895 = vst [vmem:[%s1454_s19 + $0xe0] sm:$0xff] %v790_v25  ;;  %v792_v27 = vadd.f32 %v791_v26, %v1447_v43 }
 0x252   : > { %v848_v28 = vpop.f32.mrf.mxu1 }
 0x253   : > { %896 = vst [vmem:[%s1454_s19 + $0xe8] sm:$0xff] %v792_v27  ;;  %v849_v29 = vadd.f32 %v848_v28, %v1445_v42 }
 0x254   : > { %v850_v30 = vpop.f32.mrf.mxu1 }
 0x255   : > { %885 = vst [vmem:[%s1454_s19 + $0x90] sm:$0xff] %v849_v29  ;;  %v851_v31 = vadd.f32 %v850_v30, %v1449_v44 }
 0x256   : > { %v852_v32 = vpop.f32.mrf.mxu1 }
 0x257   : > { %886 = vst [vmem:[%s1454_s19 + $0x98] sm:$0xff] %v851_v31  ;;  %v853_v33 = vadd.f32 %v852_v32, %v1445_v42 }
 0x258   : > { %v854_v34 = vpop.f32.mrf.mxu1 }
 0x259   : > { %889 = vst [vmem:[%s1454_s19 + $0xb0] sm:$0xff] %v853_v33  ;;  %v855_v35 = vadd.f32 %v854_v34, %v1449_v44 }
 0x25a   : > { %v858_v36 = vpop.f32.mrf.mxu1 }
 0x25b   : > { %890 = vst [vmem:[%s1454_s19 + $0xb8] sm:$0xff] %v855_v35  ;;  %v859_v37 = vadd.f32 %v858_v36, %v1445_v42 }
 0x25c   : > { %v860_v39 = vpop.f32.mrf.mxu1 }
 0x25d   : > { %893 = vst [vmem:[%s1454_s19 + $0xd0] sm:$0xff] %v859_v37  ;;  %v861_v40 = vadd.f32 %v860_v39, %v1449_v44 }
 0x25e   : > { %v862_v41 = vpop.f32.mrf.mxu1 }
 0x25f   : > { %894 = vst [vmem:[%s1454_s19 + $0xd8] sm:$0xff] %v861_v40  ;;  %v863_v43 = vadd.f32 %v862_v41, %v1445_v42 }
 0x260   : > { %v864_v0 = vpop.f32.mrf.mxu1 }
 0x261   : > { %897 = vst [vmem:[%s1454_s19 + $0xf0] sm:$0xff] %v863_v43  ;;  %v865_v38 = vadd.f32 %v864_v0, %v1449_v44 }
 0x263   : > { %898 = vst [vmem:[%s1454_s19 + $0xf8] sm:$0xff] %v865_v38 }
 0x264 PF: > { %s15_s15 = sadd.s32 1, %s1245_s15  }
 0x265   : > { %p12_p1 = scmp.ge.s32.totalorder %s15_s15, 4  }
 0x267   :  { %14 = sbr.rel (!%p12_p1) target bundleno = 1 (0x1), region = 71 }
 0x26c   :  { %923 = vsyncpa [#allocation3], 1 }
 0x26d   :  { %925 = vsyncpa [#allocation3 + $0x1], 1 }

// kernel: lstm_model_forward.3
= control target key start
LH: loop header
LB: loop body
LE: loop exit
PB: predicated region body
PF: predicated region fallthrough
CT: control target
= control target key end

     0   :  { %14 = vsyncpa [#allocation6], 0  ;;  %v7654_v2 = vmov 0   ;;  %s9355_s0 = inlined_call_operand.vmem [shape: f32[16,8,512], index: 0, kind: input, shape index: {}]   ;;  %s9356_s1 = inlined_call_operand.vmem [shape: f32[1,8,128], index: 1, kind: input, shape index: {}]   ;;  %s9357_s2 = inlined_call_operand.vmem [shape: f32[1,8,128], index: 2, kind: input, shape index: {}]   ;;  %s9358_s3 = inlined_call_operand.vmem [shape: bf16[128,512], index: 3, kind: input, shape index: {}]   ;;  %s9359_s4 = inlined_call_operand.vmem [shape: bf16[128,256], index: 4, kind: input, shape index: {}]   ;;  %s9360_s5 = inlined_call_operand.vmem [shape: f32[1,256], index: 5, kind: input, shape index: {}]   ;;  %s9361_s6 = inlined_call_operand.hbm [shape: f32[8,16,256], index: 6, kind: output, shape index: {0}]   ;;  %s9362_s7 = inlined_call_operand.hbm [shape: f32[1,8,128], index: 7, kind: output, shape index: {1}]   ;;  %s9363_s8 = inlined_call_operand.hbm [shape: f32[1,8,128], index: 8, kind: output, shape index: {2}]  }
   0x1   :  { %v7709_v0 = vld [vmem:[%s9358_s3 + $0xe4] ss:$16 sps:$4 sm:$0xff]   ;;  %v7714_v1 = vld [vmem:[%s9358_s3 + $0xe0] ss:$16 sps:$4 sm:$0xff]   ;;  %268 = vmatprep.mubr.bf16.mxu1 %v7654_v2  ;;  %646 = vmatprep.mubr.bf16.mxu0 %v7654_v2  ;;  %v7820_v18 = vld [vmem:[%s9358_s3 + $0xec] ss:$16 sps:$4 sm:$0xff]  }
   0x2   :  { %236 = vmatprep.subr.bf16.mxu1 %v7709_v0  ;;  %v7722_v3 = vld [vmem:[%s9358_s3 + $0xc4] ss:$16 sps:$4 sm:$0xff]   ;;  %614 = vmatprep.subr.bf16.mxu0 %v7709_v0  ;;  %v7729_v4 = vld [vmem:[%s9358_s3 + $0xc0] ss:$16 sps:$4 sm:$0xff]   ;;  %v7829_v19 = vld [vmem:[%s9358_s3 + $0xe8] ss:$16 sps:$4 sm:$0xff]  }
   0x3   :  { %237 = vmatpush1.bf16.msra.mxu1 %v7714_v1  ;;  %615 = vmatpush1.bf16.msra.mxu0 %v7714_v1  ;;  %v7736_v5 = vld [vmem:[%s9358_s3 + $0xa4] ss:$16 sps:$4 sm:$0xff]   ;;  %v7743_v6 = vld [vmem:[%s9358_s3 + $0xa0] ss:$16 sps:$4 sm:$0xff]   ;;  %v7834_v21 = vld [vmem:[%s9358_s3 + $0xcc] ss:$16 sps:$4 sm:$0xff]  }
   0x4   :  { %238 = vmatprep.subr.bf16.mxu1 %v7722_v3  ;;  %616 = vmatprep.subr.bf16.mxu0 %v7722_v3  ;;  %v7750_v7 = vld [vmem:[%s9358_s3 + $0x84] ss:$16 sps:$4 sm:$0xff]   ;;  %v7757_v8 = vld [vmem:[%s9358_s3 + $0x80] ss:$16 sps:$4 sm:$0xff]   ;;  %v7843_v22 = vld [vmem:[%s9358_s3 + $0xc8] ss:$16 sps:$4 sm:$0xff]  }
   0x5   :  { %v7764_v9 = vld [vmem:[%s9358_s3 + $0x64] ss:$16 sps:$4 sm:$0xff]   ;;  %v7771_v10 = vld [vmem:[%s9358_s3 + $0x60] ss:$16 sps:$4 sm:$0xff]   ;;  %v7848_v23 = vld [vmem:[%s9358_s3 + $0xac] ss:$16 sps:$4 sm:$0xff]  }
   0x6   :  { %v7778_v11 = vld [vmem:[%s9358_s3 + $0x44] ss:$16 sps:$4 sm:$0xff]   ;;  %v7785_v12 = vld [vmem:[%s9358_s3 + $0x40] ss:$16 sps:$4 sm:$0xff]   ;;  %v7856_v24 = vld [vmem:[%s9358_s3 + $0xa8] ss:$16 sps:$4 sm:$0xff]  }
   0x7   :  { %239 = vmatpush1.bf16.msra.mxu1 %v7729_v4  ;;  %617 = vmatpush1.bf16.msra.mxu0 %v7729_v4  ;;  %v7792_v13 = vld [vmem:[%s9358_s3 + $0x24] ss:$16 sps:$4 sm:$0xff]   ;;  %v7798_v14 = vld [vmem:[%s9358_s3 + $0x20] ss:$16 sps:$4 sm:$0xff]   ;;  %v7861_v25 = vld [vmem:[%s9358_s3 + $0x8c] ss:$16 sps:$4 sm:$0xff]  }
   0x8   :  { %240 = vmatprep.subr.bf16.mxu1 %v7736_v5  ;;  %618 = vmatprep.subr.bf16.mxu0 %v7736_v5  ;;  %v7803_v15 = vld [vmem:[%s9358_s3 + $0x4] ss:$16 sps:$4 sm:$0xff]   ;;  %v7812_v16 = vld [vmem:[%s9358_s3] ss:$16 sps:$4 sm:$0xff]   ;;  %v7868_v26 = vld [vmem:[%s9358_s3 + $0x88] ss:$16 sps:$4 sm:$0xff]  }
   0x9   :  { %v33_v17 = vld [vmem:[%s9356_s1] sm:$0xff]  ;;  %v7873_v27 = vld [vmem:[%s9358_s3 + $0x6c] ss:$16 sps:$4 sm:$0xff]   ;;  %v7880_v28 = vld [vmem:[%s9358_s3 + $0x68] ss:$16 sps:$4 sm:$0xff]  }
   0xa   :  { %v43_v20 = vpack.c.bf16 %v33_v17, %v33_v17  ;;  %v7885_v29 = vld [vmem:[%s9358_s3 + $0x4c] ss:$16 sps:$4 sm:$0xff]   ;;  %v7892_v30 = vld [vmem:[%s9358_s3 + $0x48] ss:$16 sps:$4 sm:$0xff]  }
   0xb   :  { %241 = vmatpush1.bf16.msra.mxu1 %v7743_v6  ;;  %619 = vmatpush1.bf16.msra.mxu0 %v7743_v6  ;;  %v7897_v31 = vld [vmem:[%s9358_s3 + $0x2c] ss:$16 sps:$4 sm:$0xff]   ;;  %v7904_v32 = vld [vmem:[%s9358_s3 + $0x28] ss:$16 sps:$4 sm:$0xff]  }
   0xc   :  { %242 = vmatprep.subr.bf16.mxu1 %v7750_v7  ;;  %620 = vmatprep.subr.bf16.mxu0 %v7750_v7  ;;  %v7909_v33 = vld [vmem:[%s9358_s3 + $0xc] ss:$16 sps:$4 sm:$0xff]   ;;  %v7917_v34 = vld [vmem:[%s9358_s3 + $0x8] ss:$16 sps:$4 sm:$0xff]  }
   0xf   :  { %243 = vmatpush1.bf16.msra.mxu1 %v7757_v8  ;;  %621 = vmatpush1.bf16.msra.mxu0 %v7757_v8 }
  0x10   :  { %244 = vmatprep.subr.bf16.mxu1 %v7764_v9  ;;  %622 = vmatprep.subr.bf16.mxu0 %v7764_v9 }
  0x13   :  { %245 = vmatpush1.bf16.msra.mxu1 %v7771_v10  ;;  %623 = vmatpush1.bf16.msra.mxu0 %v7771_v10 }
  0x14   :  { %246 = vmatprep.subr.bf16.mxu1 %v7778_v11  ;;  %624 = vmatprep.subr.bf16.mxu0 %v7778_v11 }
  0x17   :  { %247 = vmatpush1.bf16.msra.mxu1 %v7785_v12  ;;  %625 = vmatpush1.bf16.msra.mxu0 %v7785_v12 }
  0x18   :  { %248 = vmatprep.subr.bf16.mxu1 %v7792_v13  ;;  %626 = vmatprep.subr.bf16.mxu0 %v7792_v13 }
  0x1b   :  { %249 = vmatpush1.bf16.msra.mxu1 %v7798_v14  ;;  %627 = vmatpush1.bf16.msra.mxu0 %v7798_v14 }
  0x1c   :  { %250 = vmatprep.subr.bf16.mxu1 %v7803_v15  ;;  %628 = vmatprep.subr.bf16.mxu0 %v7803_v15 }
  0x1f   :  { %251 = vmatpush1.bf16.msra.mxu1 %v7812_v16  ;;  %629 = vmatpush1.bf16.msra.mxu0 %v7812_v16 }
  0x20   :  { %277 = vmatprep.subr.bf16.mxu1 %v7820_v18  ;;  %992 = vmatprep.subr.bf16.mxu0 %v7709_v0 }
  0x22   :  { %269 = vmatmul.mubr.bf16.vlgmr.msra.gmra.mxu1 %v43_v20 }
  0x23   :  { %278 = vmatpush1.bf16.msra.mxu1 %v7829_v19  ;;  %309 = vmatprep.mubr.bf16.mxu1 %v7654_v2 }
  0x24   :  { %279 = vmatprep.subr.bf16.mxu1 %v7834_v21 }
  0x27   :  { %280 = vmatpush1.bf16.msra.mxu1 %v7843_v22 }
  0x28   :  { %281 = vmatprep.subr.bf16.mxu1 %v7848_v23 }
  0x2b   :  { %282 = vmatpush1.bf16.msra.mxu1 %v7856_v24 }
  0x2c   :  { %283 = vmatprep.subr.bf16.mxu1 %v7861_v25 }
  0x2f   :  { %284 = vmatpush1.bf16.msra.mxu1 %v7868_v26 }
  0x30   :  { %285 = vmatprep.subr.bf16.mxu1 %v7873_v27 }
  0x33   :  { %286 = vmatpush1.bf16.msra.mxu1 %v7880_v28 }
  0x34   :  { %287 = vmatprep.subr.bf16.mxu1 %v7885_v29 }
  0x37   :  { %288 = vmatpush1.bf16.msra.mxu1 %v7892_v30 }
  0x38   :  { %289 = vmatprep.subr.bf16.mxu1 %v7897_v31 }
  0x3b   :  { %290 = vmatpush1.bf16.msra.mxu1 %v7904_v32 }
  0x3c   :  { %15 = vsyncpa [#allocation8], 0  ;;  %291 = vmatprep.subr.bf16.mxu1 %v7909_v33  ;;  %v40_v36 = vld [vmem:[%s9355_s0 + $0x8] sm:$0xff]  ;;  %v39_v38 = vld [vmem:[%s9355_s0] sm:$0xff] }
  0x3d   :  { %v41_v49 = vld [vmem:[%s9355_s0 + $0x10] sm:$0xff]  ;;  %v42_v51 = vld [vmem:[%s9355_s0 + $0x18] sm:$0xff]  ;;  %v35_v59 = vld [vmem:[%s9357_s2] sm:$0xff] }
  0x3f   :  { %292 = vmatpush1.bf16.msra.mxu1 %v7917_v34 }
  0x40   :  { %655 = vmatprep.subr.bf16.mxu1 %v7820_v18 }
  0x42   :  { %310 = vmatmul.mubr.bf16.vlgmr.msra.gmra.mxu1 %v43_v20 }
  0x43   :  { %656 = vmatpush1.bf16.msra.mxu1 %v7829_v19  ;;  %687 = vmatprep.mubr.bf16.mxu1 %v7654_v2 }
  0x44   :  { %657 = vmatprep.subr.bf16.mxu1 %v7834_v21 }
  0x47   :  { %658 = vmatpush1.bf16.msra.mxu1 %v7843_v22 }
  0x48   :  { %659 = vmatprep.subr.bf16.mxu1 %v7848_v23 }
  0x4b   :  { %660 = vmatpush1.bf16.msra.mxu1 %v7856_v24 }
  0x4c   :  { %661 = vmatprep.subr.bf16.mxu1 %v7861_v25 }
  0x4f   :  { %662 = vmatpush1.bf16.msra.mxu1 %v7868_v26 }
  0x50   :  { %663 = vmatprep.subr.bf16.mxu1 %v7873_v27 }
  0x53   :  { %664 = vmatpush1.bf16.msra.mxu1 %v7880_v28 }
  0x54   :  { %665 = vmatprep.subr.bf16.mxu1 %v7885_v29 }
  0x57   :  { %666 = vmatpush1.bf16.msra.mxu1 %v7892_v30 }
  0x58   :  { %667 = vmatprep.subr.bf16.mxu1 %v7897_v31 }
  0x5b   :  { %668 = vmatpush1.bf16.msra.mxu1 %v7904_v32 }
  0x5c   :  { %669 = vmatprep.subr.bf16.mxu1 %v7909_v33 }
  0x5f   :  { %670 = vmatpush1.bf16.msra.mxu1 %v7917_v34 }
  0x60   :  { %1033 = vmatprep.subr.bf16.mxu1 %v7820_v18 }
  0xe2   :  { %v270_v35 = vpop.f32.mrf.mxu1 }
  0xe3   :  { %v318_v41 = vadd.f32 %v270_v35, %v39_v38  ;;  %v353_v38 = vlaneseq }
  0xe4   :  { %v272_v37 = vpop.f32.mrf.mxu1 }
  0xe5   :  { %v319_v40 = vadd.f32 %v272_v37, %v40_v36  ;;  %v6443_v44 = vmul.f32 -1.442695, %v318_v41  ;;  %v7655_v36 = vmov 1966171168  }
  0xe6   :  { %v274_v39 = vpop.f32.mrf.mxu1  ;;  %v351_v37 = vunpack.c.l.s4 %v7655_v36 }
  0xe7   :  { %v6444_v43 = vmul.f32 -1.442695, %v319_v40  ;;  %v7957_v40 = vshrl.u32 %v353_v38, 7 }
  0xe8   :  { %v275_v42 = vpop.f32.mrf.mxu1  ;;  %v352_v39 = vunpack.c.0.s8 %v351_v37 }
  0xe9   :  { %7334 = vpow2.f32 %v6444_v43 }
  0xea   :  { %7336 = vpow2.f32 %v6443_v44  ;;  %v7960_v42 = vsub.s32 %v352_v39, %v7957_v40 }
  0xf6   :  { %v7335_v45 = vpop.eup %7334 }
  0xf7   :  { %v7337_v46 = vpop.eup %7336  ;;  %v331_v47 = vadd.f32 1.0, %v7335_v45 }
  0xf8   :  { %v325_v48 = vadd.f32 1.0, %v7337_v46 }
  0xf9   :  { %7338 = vrcp.f32 %v331_v47 }
  0xfa   :  { %7340 = vrcp.f32 %v325_v48 }
 0x102   :  { %v311_v50 = vpop.f32.mrf.mxu1 }
 0x103   :  { %v320_v52 = vadd.f32 %v311_v50, %v41_v49 }
 0x104   :  { %v313_v53 = vpop.f32.mrf.mxu1 }
 0x105   :  { %7342 = vtanh.f32 %v320_v52  ;;  %v321_v54 = vadd.f32 %v313_v53, %v42_v51 }
 0x106   :  { %v315_v55 = vpop.f32.mrf.mxu1  ;;  %v7339_v58 = vpop.eup %7338 }
 0x107   :  { %v6445_v56 = vmul.f32 -1.442695, %v321_v54  ;;  %v7341_v60 = vpop.eup %7340  ;;  %v341_v62 = vmul.f32 %v7339_v58, %v35_v59  ;;  %v6450_v59 = vld [vmem:[%s9355_s0 + $0x20] sm:$0xff] }
 0x108   :  { %v316_v57 = vpop.f32.mrf.mxu1 }
 0x109   :  { %7344 = vpow2.f32 %v6445_v56 }
 0x112   :  { %v7343_v61 = vpop.eup %7342 }
 0x113   :  { %v342_v63 = vmul.f32 %v7343_v61, %v7341_v60 }
 0x115   :  { %v7954_v17 = vadd.f32 %v342_v63, %v341_v62  ;;  %v6451_v62 = vld [vmem:[%s9355_s0 + $0x28] sm:$0xff] }
 0x116   :  { %v7345_v20 = vpop.eup %7344 }
 0x117   :  { %v338_v35 = vadd.f32 1.0, %v7345_v20  ;;  %7346 = vtanh.f32 %v7954_v17 }
 0x119   :  { %7348 = vrcp.f32 %v338_v35 }
 0x124   :  { %v7347_v41 = vpop.eup %7346 }
 0x126   :  { %v7349_v43 = vpop.eup %7348 }
 0x127   :  { %v345_v44 = vmul.f32 %v7349_v43, %v7347_v41  ;;  %v6453_v43 = vld [vmem:[%s9355_s0 + $0x38] sm:$0xff] }
 0x129   :  { %v349_v45 = vcombine.high %v345_v44, %v345_v44  ;;  %v356_v46 = vrot.slane %v345_v44, %v7960_v42  ;;  %v421_v47 = vpack.c.bf16 %v345_v44, %v345_v44 }
 0x12b   :  { %v363_v48 = vrot.slane %v349_v45, %v7960_v42  ;;  %v364_v49 = vcombine.high %v356_v46, %v356_v46  ;;  %v372_v50 = vrot.slane %v356_v46, %v7960_v42  ;;  %6446 = vst.sshfl [vmem:[#allocation4] sm:$0x1 pattern:$0x73625140] %v356_v46  ;;  %647 = vmatmul.mubr.bf16.vlgmr.msra.gmra.mxu0 %v421_v47  ;;  %v6452_v45 = vld [vmem:[%s9355_s0 + $0x30] sm:$0xff] }
 0x12c   :  { %688 = vmatmul.mubr.bf16.vlgmr.msra.gmra.mxu1 %v421_v47  ;;  %993 = vmatpush1.bf16.msra.mxu0 %v7714_v1 }
 0x12d   :  { %1034 = vmatpush1.bf16.msra.mxu1 %v7829_v19  ;;  %v365_v51 = vcombine.high %v363_v48, %v363_v48  ;;  %v379_v52 = vrot.slane %v363_v48, %v7960_v42  ;;  %v386_v53 = vrot.slane %v364_v49, %v7960_v42  ;;  %v394_v54 = vcombine.high %v372_v50, %v372_v50 }
 0x12e   :  { %6447 = vst.sshfl [vmem:[#allocation4 + $0x10] sm:$0x1 pattern:$0x73625140] %v364_v49  ;;  %994 = vmatprep.subr.bf16.mxu0 %v7722_v3  ;;  %1035 = vmatprep.subr.bf16.mxu1 %v7834_v21 }
 0x12f   :  { %6448 = vst.sshfl [vmem:[#allocation4 + $0x40] sm:$0x1 pattern:$0x73625140] %v363_v48  ;;  %1024 = vmatprep.mubr.bf16.mxu0 %v7654_v2  ;;  %v393_v55 = vrot.slane %v365_v51, %v7960_v42  ;;  %v395_v56 = vcombine.high %v379_v52, %v379_v52  ;;  %v396_v57 = vcombine.high %v386_v53, %v386_v53  ;;  %408 = vst [vmem:[#allocation4 + $0x20] sm:$0x1] %v394_v54 }
 0x130   :  { %6449 = vst.sshfl [vmem:[#allocation4 + $0x50] sm:$0x1 pattern:$0x73625140] %v365_v51  ;;  %1065 = vmatprep.mubr.bf16.mxu1 %v7654_v2  ;;  %995 = vmatpush1.bf16.msra.mxu0 %v7729_v4 }
 0x131   :  { %1036 = vmatpush1.bf16.msra.mxu1 %v7843_v22  ;;  %v397_v58 = vcombine.high %v393_v55, %v393_v55  ;;  %409 = vst [vmem:[#allocation4 + $0x30] sm:$0x1] %v396_v57  ;;  %412 = vst [vmem:[#allocation4 + $0x60] sm:$0x1] %v395_v56  ;;  %996 = vmatprep.subr.bf16.mxu0 %v7736_v5 }
 0x132   :  { %1037 = vmatprep.subr.bf16.mxu1 %v7848_v23 }
 0x133   :  { %413 = vst [vmem:[#allocation4 + $0x70] sm:$0x1] %v397_v58 }
 0x134   :  { %997 = vmatpush1.bf16.msra.mxu0 %v7743_v6 }
 0x135   :  { %1038 = vmatpush1.bf16.msra.mxu1 %v7856_v24  ;;  %998 = vmatprep.subr.bf16.mxu0 %v7750_v7 }
 0x136   :  { %1039 = vmatprep.subr.bf16.mxu1 %v7861_v25 }
 0x138   :  { %999 = vmatpush1.bf16.msra.mxu0 %v7757_v8 }
 0x139   :  { %1040 = vmatpush1.bf16.msra.mxu1 %v7868_v26  ;;  %1000 = vmatprep.subr.bf16.mxu0 %v7764_v9 }
 0x13a   :  { %1041 = vmatprep.subr.bf16.mxu1 %v7873_v27 }
 0x13c   :  { %1001 = vmatpush1.bf16.msra.mxu0 %v7771_v10 }
 0x13d   :  { %1042 = vmatpush1.bf16.msra.mxu1 %v7880_v28  ;;  %1002 = vmatprep.subr.bf16.mxu0 %v7778_v11 }
 0x13e   :  { %1043 = vmatprep.subr.bf16.mxu1 %v7885_v29 }
 0x140   :  { %1003 = vmatpush1.bf16.msra.mxu0 %v7785_v12 }
 0x141   :  { %1044 = vmatpush1.bf16.msra.mxu1 %v7892_v30  ;;  %1004 = vmatprep.subr.bf16.mxu0 %v7792_v13 }
 0x142   :  { %1045 = vmatprep.subr.bf16.mxu1 %v7897_v31 }
 0x144   :  { %1005 = vmatpush1.bf16.msra.mxu0 %v7798_v14 }
 0x145   :  { %1046 = vmatpush1.bf16.msra.mxu1 %v7904_v32  ;;  %1006 = vmatprep.subr.bf16.mxu0 %v7803_v15 }
 0x146   :  { %1047 = vmatprep.subr.bf16.mxu1 %v7909_v33 }
 0x148   :  { %1007 = vmatpush1.bf16.msra.mxu0 %v7812_v16 }
 0x149   :  { %1048 = vmatpush1.bf16.msra.mxu1 %v7917_v34  ;;  %1370 = vmatprep.subr.bf16.mxu0 %v7709_v0 }
 0x14a   :  { %1411 = vmatprep.subr.bf16.mxu1 %v7820_v18 }
 0x1eb   :  { %v648_v60 = vpop.f32.mrf.mxu0 }
 0x1ec   :  { %v689_v61 = vpop.f32.mrf.mxu1  ;;  %v696_v63 = vadd.f32 %v6450_v59, %v648_v60 }
 0x1ed   :  { %v650_v20 = vpop.f32.mrf.mxu0  ;;  %v698_v48 = vadd.f32 %v6452_v45, %v689_v61 }
 0x1ee   :  { %v691_v35 = vpop.f32.mrf.mxu1  ;;  %v6486_v36 = vmul.f32 -1.442695, %v696_v63  ;;  %v697_v37 = vadd.f32 %v6451_v62, %v650_v20 }
 0x1ef   :  { %v652_v38 = vpop.f32.mrf.mxu0  ;;  %v699_v44 = vadd.f32 %v6453_v43, %v691_v35 }
 0x1f0   :  { %v693_v39 = vpop.f32.mrf.mxu1  ;;  %7350 = vpow2.f32 %v6486_v36  ;;  %v6487_v0 = vmul.f32 -1.442695, %v697_v37 }
 0x1f1   :  { %v653_v18 = vpop.f32.mrf.mxu0  ;;  %v6488_v46 = vmul.f32 -1.442695, %v699_v44 }
 0x1f2   :  { %v694_v41 = vpop.f32.mrf.mxu1  ;;  %7352 = vpow2.f32 %v6487_v0 }
 0x1f3   :  { %7354 = vpow2.f32 %v6488_v46 }
 0x1fd   :  { %v7351_v47 = vpop.eup %7350 }
 0x1fe   :  { %v703_v49 = vadd.f32 1.0, %v7351_v47 }
 0x1ff   :  { %v7353_v50 = vpop.eup %7352 }
 0x200   :  { %7356 = vrcp.f32 %v703_v49  ;;  %v709_v51 = vadd.f32 1.0, %v7353_v50  ;;  %v7355_v52 = vpop.eup %7354 }
 0x201   :  { %7358 = vtanh.f32 %v698_v48  ;;  %v716_v56 = vadd.f32 1.0, %v7355_v52 }
 0x202   :  { %7360 = vrcp.f32 %v709_v51 }
 0x203   :  { %7362 = vrcp.f32 %v716_v56 }
 0x20d   :  { %v7357_v53 = vpop.eup %7356 }
 0x20e   :  { %v7359_v54 = vpop.eup %7358 }
 0x20f   :  { %v7361_v55 = vpop.eup %7360  ;;  %v720_v57 = vmul.f32 %v7359_v54, %v7357_v53 }
 0x210   :  { %v719_v58 = vmul.f32 %v7361_v55, %v7954_v17  ;;  %v7363_v60 = vpop.eup %7362 }
 0x212   :  { %v8015_v59 = vadd.f32 %v720_v57, %v719_v58 }
 0x214   :  { %7364 = vtanh.f32 %v8015_v59 }
 0x221   :  { %v7365_v61 = vpop.eup %7364 }
 0x222   :  { %v723_v62 = vmul.f32 %v7365_v61, %v7363_v60 }
 0x224   :  { %v727_v63 = vcombine.high %v723_v62, %v723_v62  ;;  %v734_v20 = vrot.slane %v723_v62, %v7960_v42  ;;  %v799_v35 = vpack.c.bf16 %v723_v62, %v723_v62 }
 0x226   :  { %v741_v36 = vrot.slane %v727_v63, %v7960_v42  ;;  %v742_v37 = vcombine.high %v734_v20, %v734_v20  ;;  %v750_v38 = vrot.slane %v734_v20, %v7960_v42  ;;  %6489 = vst.sshfl [vmem:[#allocation4 + $0x1] sm:$0x1 pattern:$0x73625140] %v734_v20  ;;  %1025 = vmatmul.mubr.bf16.vlgmr.msra.gmra.mxu0 %v799_v35  ;;  %v8083_v20 = vld [vmem:[%s9358_s3 + $0xe4] ss:$16 sps:$4 sm:$0xff]  }
 0x227   :  { %1066 = vmatmul.mubr.bf16.vlgmr.msra.gmra.mxu1 %v799_v35  ;;  %1371 = vmatpush1.bf16.msra.mxu0 %v7714_v1  ;;  %v8088_v35 = vld [vmem:[%s9358_s3 + $0xec] ss:$16 sps:$4 sm:$0xff]  }
 0x228   :  { %1412 = vmatpush1.bf16.msra.mxu1 %v7829_v19  ;;  %v743_v17 = vcombine.high %v741_v36, %v741_v36  ;;  %v757_v39 = vrot.slane %v741_v36, %v7960_v42  ;;  %v764_v0 = vrot.slane %v742_v37, %v7960_v42  ;;  %v772_v18 = vcombine.high %v750_v38, %v750_v38  ;;  %v8107_v38 = vld [vmem:[%s9358_s3 + $0xc4] ss:$16 sps:$4 sm:$0xff]  }
 0x229   :  { %6490 = vst.sshfl [vmem:[#allocation4 + $0x11] sm:$0x1 pattern:$0x73625140] %v742_v37  ;;  %1372 = vmatprep.subr.bf16.mxu0 %v7722_v3  ;;  %1413 = vmatprep.subr.bf16.mxu1 %v7834_v21  ;;  %v6493_v3 = vld [vmem:[%s9355_s0 + $0x40] sm:$0xff]  ;;  %v6496_v21 = vld [vmem:[%s9355_s0 + $0x58] sm:$0xff] }
 0x22a   :  { %6491 = vst.sshfl [vmem:[#allocation4 + $0x41] sm:$0x1 pattern:$0x73625140] %v741_v36  ;;  %1402 = vmatprep.mubr.bf16.mxu0 %v7654_v2  ;;  %v771_v41 = vrot.slane %v743_v17, %v7960_v42  ;;  %v773_v43 = vcombine.high %v757_v39, %v757_v39  ;;  %v774_v1 = vcombine.high %v764_v0, %v764_v0  ;;  %786 = vst [vmem:[#allocation4 + $0x21] sm:$0x1] %v772_v18 }
 0x22b   :  { %6492 = vst.sshfl [vmem:[#allocation4 + $0x51] sm:$0x1 pattern:$0x73625140] %v743_v17  ;;  %1443 = vmatprep.mubr.bf16.mxu1 %v7654_v2  ;;  %1373 = vmatpush1.bf16.msra.mxu0 %v7729_v4  ;;  %v8093_v36 = vld [vmem:[%s9358_s3 + $0xe0] ss:$16 sps:$4 sm:$0xff]  }
 0x22c   :  { %1414 = vmatpush1.bf16.msra.mxu1 %v7843_v22  ;;  %v775_v19 = vcombine.high %v771_v41, %v771_v41  ;;  %787 = vst [vmem:[#allocation4 + $0x31] sm:$0x1] %v774_v1  ;;  %790 = vst [vmem:[#allocation4 + $0x61] sm:$0x1] %v773_v43  ;;  %1374 = vmatprep.subr.bf16.mxu0 %v7736_v5  ;;  %v8098_v37 = vld [vmem:[%s9358_s3 + $0xe8] ss:$16 sps:$4 sm:$0xff]  }
 0x22d   :  { %1415 = vmatprep.subr.bf16.mxu1 %v7848_v23  ;;  %v6495_v23 = vld [vmem:[%s9355_s0 + $0x50] sm:$0xff]  ;;  %v8112_v17 = vld [vmem:[%s9358_s3 + $0xcc] ss:$16 sps:$4 sm:$0xff]   ;;  %v8122_v0 = vld [vmem:[%s9358_s3 + $0xc8] ss:$16 sps:$4 sm:$0xff]  }
 0x22e   :  { %791 = vst [vmem:[#allocation4 + $0x71] sm:$0x1] %v775_v19  ;;  %v8117_v39 = vld [vmem:[%s9358_s3 + $0xc0] ss:$16 sps:$4 sm:$0xff]   ;;  %v8131_v18 = vld [vmem:[%s9358_s3 + $0xa4] ss:$16 sps:$4 sm:$0xff]  }
 0x22f   :  { %1375 = vmatpush1.bf16.msra.mxu0 %v7743_v6  ;;  %v6494_v6 = vld [vmem:[%s9355_s0 + $0x48] sm:$0xff]  ;;  %v8141_v43 = vld [vmem:[%s9358_s3 + $0xa0] ss:$16 sps:$4 sm:$0xff]   ;;  %v8155_v19 = vld [vmem:[%s9358_s3 + $0x84] ss:$16 sps:$4 sm:$0xff]  }
 0x230   :  { %1416 = vmatpush1.bf16.msra.mxu1 %v7856_v24  ;;  %1376 = vmatprep.subr.bf16.mxu0 %v7750_v7  ;;  %v8136_v41 = vld [vmem:[%s9358_s3 + $0xac] ss:$16 sps:$4 sm:$0xff]   ;;  %v8146_v1 = vld [vmem:[%s9358_s3 + $0xa8] ss:$16 sps:$4 sm:$0xff]  }
 0x231   :  { %1417 = vmatprep.subr.bf16.mxu1 %v7861_v25 }
 0x233   :  { %1377 = vmatpush1.bf16.msra.mxu0 %v7757_v8 }
 0x234   :  { %1418 = vmatpush1.bf16.msra.mxu1 %v7868_v26  ;;  %1378 = vmatprep.subr.bf16.mxu0 %v7764_v9 }
 0x235   :  { %1419 = vmatprep.subr.bf16.mxu1 %v7873_v27 }
 0x237   :  { %1379 = vmatpush1.bf16.msra.mxu0 %v7771_v10 }
 0x238   :  { %1420 = vmatpush1.bf16.msra.mxu1 %v7880_v28  ;;  %1380 = vmatprep.subr.bf16.mxu0 %v7778_v11 }
 0x239   :  { %1421 = vmatprep.subr.bf16.mxu1 %v7885_v29 }
 0x23b   :  { %1381 = vmatpush1.bf16.msra.mxu0 %v7785_v12 }
 0x23c   :  { %1422 = vmatpush1.bf16.msra.mxu1 %v7892_v30  ;;  %1382 = vmatprep.subr.bf16.mxu0 %v7792_v13 }
 0x23d   :  { %1423 = vmatprep.subr.bf16.mxu1 %v7897_v31 }
 0x23f   :  { %1383 = vmatpush1.bf16.msra.mxu0 %v7798_v14 }
 0x240   :  { %1424 = vmatpush1.bf16.msra.mxu1 %v7904_v32  ;;  %1384 = vmatprep.subr.bf16.mxu0 %v7803_v15 }
 0x241   :  { %1425 = vmatprep.subr.bf16.mxu1 %v7909_v33 }
 0x243   :  { %1385 = vmatpush1.bf16.msra.mxu0 %v7812_v16 }
 0x244   :  { %1426 = vmatpush1.bf16.msra.mxu1 %v7917_v34  ;;  %1748 = vmatprep.subr.bf16.mxu0 %v8083_v20 }
 0x245   :  { %1789 = vmatprep.subr.bf16.mxu1 %v8088_v35 }
 0x2e6   :  { %v1026_v4 = vpop.f32.mrf.mxu0 }
 0x2e7   :  { %v1067_v5 = vpop.f32.mrf.mxu1  ;;  %v1074_v7 = vadd.f32 %v6493_v3, %v1026_v4  ;;  %v8160_v3 = vld [vmem:[%s9358_s3 + $0x8c] ss:$16 sps:$4 sm:$0xff]   ;;  %v8165_v4 = vld [vmem:[%s9358_s3 + $0x80] ss:$16 sps:$4 sm:$0xff]  }
 0x2e8   :  { %v1028_v8 = vpop.f32.mrf.mxu0  ;;  %v1076_v26 = vadd.f32 %v6495_v23, %v1067_v5  ;;  %v8170_v5 = vld [vmem:[%s9358_s3 + $0x88] ss:$16 sps:$4 sm:$0xff]   ;;  %v8254_v23 = vld [vmem:[%s9358_s3 + $0xc] ss:$16 sps:$4 sm:$0xff]  }
 0x2e9   :  { %v1069_v9 = vpop.f32.mrf.mxu1  ;;  %v6529_v10 = vmul.f32 -1.442695, %v1074_v7  ;;  %v1075_v11 = vadd.f32 %v6494_v6, %v1028_v8  ;;  %v8179_v6 = vld [vmem:[%s9358_s3 + $0x60] ss:$16 sps:$4 sm:$0xff]   ;;  %v8184_v7 = vld [vmem:[%s9358_s3 + $0x64] ss:$16 sps:$4 sm:$0xff]  }
 0x2ea   :  { %v1030_v12 = vpop.f32.mrf.mxu0  ;;  %v1077_v22 = vadd.f32 %v6496_v21, %v1069_v9  ;;  %v8189_v8 = vld [vmem:[%s9358_s3 + $0x68] ss:$16 sps:$4 sm:$0xff]   ;;  %v8194_v9 = vld [vmem:[%s9358_s3 + $0x6c] ss:$16 sps:$4 sm:$0xff]  }
 0x2eb   :  { %v1071_v13 = vpop.f32.mrf.mxu1  ;;  %7366 = vpow2.f32 %v6529_v10  ;;  %v6530_v14 = vmul.f32 -1.442695, %v1075_v11  ;;  %v8199_v10 = vld [vmem:[%s9358_s3 + $0x44] ss:$16 sps:$4 sm:$0xff]   ;;  %v8205_v11 = vld [vmem:[%s9358_s3 + $0x4c] ss:$16 sps:$4 sm:$0xff]  }
 0x2ec   :  { %v1031_v15 = vpop.f32.mrf.mxu0  ;;  %v6531_v24 = vmul.f32 -1.442695, %v1077_v22  ;;  %v8213_v12 = vld [vmem:[%s9358_s3 + $0x40] ss:$16 sps:$4 sm:$0xff]   ;;  %v8218_v13 = vld [vmem:[%s9358_s3 + $0x48] ss:$16 sps:$4 sm:$0xff]  }
 0x2ed   :  { %v1072_v16 = vpop.f32.mrf.mxu1  ;;  %7368 = vpow2.f32 %v6530_v14  ;;  %v8225_v14 = vld [vmem:[%s9358_s3 + $0x24] ss:$16 sps:$4 sm:$0xff]   ;;  %v8230_v15 = vld [vmem:[%s9358_s3 + $0x2c] ss:$16 sps:$4 sm:$0xff]   ;;  %v8242_v21 = vld [vmem:[%s9358_s3 + $0x28] ss:$16 sps:$4 sm:$0xff]  }
 0x2ee   :  { %7370 = vpow2.f32 %v6531_v24  ;;  %v8237_v16 = vld [vmem:[%s9358_s3 + $0x20] ss:$16 sps:$4 sm:$0xff]   ;;  %v8249_v22 = vld [vmem:[%s9358_s3 + $0x4] ss:$16 sps:$4 sm:$0xff]  }
 0x2ef   :  { %v8261_v24 = vld [vmem:[%s9358_s3] ss:$16 sps:$4 sm:$0xff]  }
 0x2f8   :  { %v7367_v25 = vpop.eup %7366 }
 0x2f9   :  { %v1081_v27 = vadd.f32 1.0, %v7367_v25  ;;  %v8266_v25 = vld [vmem:[%s9358_s3 + $0x8] ss:$16 sps:$4 sm:$0xff]  }
 0x2fa   :  { %v7369_v28 = vpop.eup %7368 }
 0x2fb   :  { %7372 = vrcp.f32 %v1081_v27  ;;  %v1087_v29 = vadd.f32 1.0, %v7369_v28  ;;  %v7371_v30 = vpop.eup %7370 }
 0x2fc   :  { %7374 = vtanh.f32 %v1076_v26  ;;  %v1094_v34 = vadd.f32 1.0, %v7371_v30  ;;  %v6536_v26 = vld [vmem:[%s9355_s0 + $0x60] sm:$0xff] }
 0x2fd   :  { %7376 = vrcp.f32 %v1087_v29  ;;  %v6537_v29 = vld [vmem:[%s9355_s0 + $0x68] sm:$0xff] }
 0x2fe   :  { %7378 = vrcp.f32 %v1094_v34 }
 0x308   :  { %v7373_v31 = vpop.eup %7372 }
 0x309   :  { %v7375_v32 = vpop.eup %7374 }
 0x30a   :  { %v7377_v33 = vpop.eup %7376  ;;  %v1098_v44 = vmul.f32 %v7375_v32, %v7373_v31 }
 0x30b   :  { %v1097_v45 = vmul.f32 %v7377_v33, %v8015_v59  ;;  %v7379_v47 = vpop.eup %7378 }
 0x30d   :  { %v8069_v46 = vadd.f32 %v1098_v44, %v1097_v45 }
 0x30f   :  { %7380 = vtanh.f32 %v8069_v46 }
 0x31c   :  { %v7381_v48 = vpop.eup %7380 }
 0x31d   :  { %v1101_v49 = vmul.f32 %v7381_v48, %v7379_v47 }
 0x31f   :  { %v1105_v50 = vcombine.high %v1101_v49, %v1101_v49  ;;  %v1112_v51 = vrot.slane %v1101_v49, %v7960_v42  ;;  %v1177_v52 = vpack.c.bf16 %v1101_v49, %v1101_v49 }
 0x321   :  { %v1119_v53 = vrot.slane %v1105_v50, %v7960_v42  ;;  %v1120_v54 = vcombine.high %v1112_v51, %v1112_v51  ;;  %v1128_v55 = vrot.slane %v1112_v51, %v7960_v42  ;;  %6532 = vst.sshfl [vmem:[#allocation4 + $0x2] sm:$0x1 pattern:$0x73625140] %v1112_v51  ;;  %1403 = vmatmul.mubr.bf16.vlgmr.msra.gmra.mxu0 %v1177_v52  ;;  %v6539_v50 = vld [vmem:[%s9355_s0 + $0x78] sm:$0xff] }
 0x322   :  { %1444 = vmatmul.mubr.bf16.vlgmr.msra.gmra.mxu1 %v1177_v52  ;;  %1780 = vmatprep.mubr.bf16.mxu0 %v7654_v2  ;;  %v6538_v52 = vld [vmem:[%s9355_s0 + $0x70] sm:$0xff] }
 0x323   :  { %1821 = vmatprep.mubr.bf16.mxu1 %v7654_v2  ;;  %v1121_v56 = vcombine.high %v1119_v53, %v1119_v53  ;;  %v1135_v57 = vrot.slane %v1119_v53, %v7960_v42  ;;  %v1142_v58 = vrot.slane %v1120_v54, %v7960_v42  ;;  %v1150_v59 = vcombine.high %v1128_v55, %v1128_v55 }
 0x324   :  { %6533 = vst.sshfl [vmem:[#allocation4 + $0x12] sm:$0x1 pattern:$0x73625140] %v1120_v54  ;;  %1749 = vmatpush1.bf16.msra.mxu0 %v8093_v36  ;;  %1790 = vmatpush1.bf16.msra.mxu1 %v8098_v37 }
 0x325   :  { %6534 = vst.sshfl [vmem:[#allocation4 + $0x42] sm:$0x1 pattern:$0x73625140] %v1119_v53  ;;  %v1149_v60 = vrot.slane %v1121_v56, %v7960_v42  ;;  %v1151_v61 = vcombine.high %v1135_v57, %v1135_v57  ;;  %v1152_v62 = vcombine.high %v1142_v58, %v1142_v58  ;;  %1164 = vst [vmem:[#allocation4 + $0x22] sm:$0x1] %v1150_v59  ;;  %1750 = vmatprep.subr.bf16.mxu0 %v8107_v38 }
 0x326   :  { %6535 = vst.sshfl [vmem:[#allocation4 + $0x52] sm:$0x1 pattern:$0x73625140] %v1121_v56  ;;  %1791 = vmatprep.subr.bf16.mxu1 %v8112_v17 }
 0x327   :  { %v1153_v63 = vcombine.high %v1149_v60, %v1149_v60  ;;  %1165 = vst [vmem:[#allocation4 + $0x32] sm:$0x1] %v1152_v62  ;;  %1168 = vst [vmem:[#allocation4 + $0x62] sm:$0x1] %v1151_v61 }
 0x328   :  { %1751 = vmatpush1.bf16.msra.mxu0 %v8117_v39  ;;  %1792 = vmatpush1.bf16.msra.mxu1 %v8122_v0 }
 0x329   :  { %1169 = vst [vmem:[#allocation4 + $0x72] sm:$0x1] %v1153_v63  ;;  %1752 = vmatprep.subr.bf16.mxu0 %v8131_v18  ;;  %1793 = vmatprep.subr.bf16.mxu1 %v8136_v41 }
 0x32c   :  { %1753 = vmatpush1.bf16.msra.mxu0 %v8141_v43  ;;  %1794 = vmatpush1.bf16.msra.mxu1 %v8146_v1 }
 0x32d   :  { %1754 = vmatprep.subr.bf16.mxu0 %v8155_v19  ;;  %1795 = vmatprep.subr.bf16.mxu1 %v8160_v3 }
 0x330   :  { %1755 = vmatpush1.bf16.msra.mxu0 %v8165_v4  ;;  %1796 = vmatpush1.bf16.msra.mxu1 %v8170_v5 }
 0x331   :  { %1756 = vmatprep.subr.bf16.mxu0 %v8184_v7  ;;  %1797 = vmatprep.subr.bf16.mxu1 %v8194_v9 }
 0x334   :  { %1757 = vmatpush1.bf16.msra.mxu0 %v8179_v6  ;;  %1798 = vmatpush1.bf16.msra.mxu1 %v8189_v8 }
 0x335   :  { %1758 = vmatprep.subr.bf16.mxu0 %v8199_v10  ;;  %1799 = vmatprep.subr.bf16.mxu1 %v8205_v11 }
 0x338   :  { %1759 = vmatpush1.bf16.msra.mxu0 %v8213_v12  ;;  %1800 = vmatpush1.bf16.msra.mxu1 %v8218_v13 }
 0x339   :  { %1760 = vmatprep.subr.bf16.mxu0 %v8225_v14  ;;  %1801 = vmatprep.subr.bf16.mxu1 %v8230_v15 }
 0x33c   :  { %1761 = vmatpush1.bf16.msra.mxu0 %v8237_v16  ;;  %1802 = vmatpush1.bf16.msra.mxu1 %v8242_v21 }
 0x33d   :  { %1762 = vmatprep.subr.bf16.mxu0 %v8249_v22  ;;  %1803 = vmatprep.subr.bf16.mxu1 %v8254_v23 }
 0x340   :  { %1763 = vmatpush1.bf16.msra.mxu0 %v8261_v24  ;;  %1804 = vmatpush1.bf16.msra.mxu1 %v8266_v25 }
 0x341   :  { %2126 = vmatprep.subr.bf16.mxu0 %v8083_v20  ;;  %2167 = vmatprep.subr.bf16.mxu1 %v8088_v35 }
 0x3e1   :  { %v1404_v27 = vpop.f32.mrf.mxu0 }
 0x3e2   :  { %v1445_v28 = vpop.f32.mrf.mxu1  ;;  %v1452_v30 = vadd.f32 %v6536_v26, %v1404_v27 }
 0x3e3   :  { %v1406_v31 = vpop.f32.mrf.mxu0  ;;  %v1454_v55 = vadd.f32 %v6538_v52, %v1445_v28 }
 0x3e4   :  { %v1447_v32 = vpop.f32.mrf.mxu1  ;;  %v6572_v33 = vmul.f32 -1.442695, %v1452_v30  ;;  %v1453_v34 = vadd.f32 %v6537_v29, %v1406_v31 }
 0x3e5   :  { %v1408_v44 = vpop.f32.mrf.mxu0  ;;  %v1455_v51 = vadd.f32 %v6539_v50, %v1447_v32 }
 0x3e6   :  { %v1449_v45 = vpop.f32.mrf.mxu1  ;;  %7382 = vpow2.f32 %v6572_v33  ;;  %v6573_v47 = vmul.f32 -1.442695, %v1453_v34 }
 0x3e7   :  { %v1409_v48 = vpop.f32.mrf.mxu0  ;;  %v6574_v53 = vmul.f32 -1.442695, %v1455_v51 }
 0x3e8   :  { %v1450_v49 = vpop.f32.mrf.mxu1  ;;  %7384 = vpow2.f32 %v6573_v47 }
 0x3e9   :  { %7386 = vpow2.f32 %v6574_v53 }
 0x3f3   :  { %v7383_v54 = vpop.eup %7382 }
 0x3f4   :  { %v1459_v56 = vadd.f32 1.0, %v7383_v54 }
 0x3f5   :  { %v7385_v57 = vpop.eup %7384 }
 0x3f6   :  { %7388 = vrcp.f32 %v1459_v56  ;;  %v1465_v58 = vadd.f32 1.0, %v7385_v57  ;;  %v7387_v59 = vpop.eup %7386 }
 0x3f7   :  { %7390 = vtanh.f32 %v1454_v55  ;;  %v1472_v63 = vadd.f32 1.0, %v7387_v59  ;;  %v6579_v55 = vld [vmem:[%s9355_s0 + $0x80] sm:$0xff] }
 0x3f8   :  { %7392 = vrcp.f32 %v1465_v58  ;;  %v6580_v58 = vld [vmem:[%s9355_s0 + $0x88] sm:$0xff] }
 0x3f9   :  { %7394 = vrcp.f32 %v1472_v63 }
 0x403   :  { %v7389_v60 = vpop.eup %7388 }
 0x404   :  { %v7391_v61 = vpop.eup %7390 }
 0x405   :  { %v7393_v62 = vpop.eup %7392  ;;  %v1476_v26 = vmul.f32 %v7391_v61, %v7389_v60 }
 0x406   :  { %v1475_v27 = vmul.f32 %v7393_v62, %v8069_v46  ;;  %v7395_v28 = vpop.eup %7394 }
 0x408   :  { %v8287_v29 = vadd.f32 %v1476_v26, %v1475_v27 }
 0x40a   :  { %7396 = vtanh.f32 %v8287_v29 }
 0x417   :  { %v7397_v30 = vpop.eup %7396 }
 0x418   :  { %v1479_v31 = vmul.f32 %v7397_v30, %v7395_v28 }
 0x41a   :  { %v1483_v32 = vcombine.high %v1479_v31, %v1479_v31  ;;  %v1490_v33 = vrot.slane %v1479_v31, %v7960_v42  ;;  %v1555_v34 = vpack.c.bf16 %v1479_v31, %v1479_v31 }
 0x41c   :  { %v1497_v44 = vrot.slane %v1483_v32, %v7960_v42  ;;  %v1498_v45 = vcombine.high %v1490_v33, %v1490_v33  ;;  %v1506_v47 = vrot.slane %v1490_v33, %v7960_v42  ;;  %6575 = vst.sshfl [vmem:[#allocation4 + $0x3] sm:$0x1 pattern:$0x73625140] %v1490_v33  ;;  %1781 = vmatmul.mubr.bf16.vlgmr.msra.gmra.mxu0 %v1555_v34  ;;  %v6582_v32 = vld [vmem:[%s9355_s0 + $0x98] sm:$0xff] }
 0x41d   :  { %1822 = vmatmul.mubr.bf16.vlgmr.msra.gmra.mxu1 %v1555_v34  ;;  %2127 = vmatpush1.bf16.msra.mxu0 %v8093_v36  ;;  %v6581_v34 = vld [vmem:[%s9355_s0 + $0x90] sm:$0xff] }
 0x41e   :  { %2168 = vmatpush1.bf16.msra.mxu1 %v8098_v37  ;;  %v1499_v46 = vcombine.high %v1497_v44, %v1497_v44  ;;  %v1513_v48 = vrot.slane %v1497_v44, %v7960_v42  ;;  %v1520_v49 = vrot.slane %v1498_v45, %v7960_v42  ;;  %v1528_v50 = vcombine.high %v1506_v47, %v1506_v47 }
 0x41f   :  { %6576 = vst.sshfl [vmem:[#allocation4 + $0x13] sm:$0x1 pattern:$0x73625140] %v1498_v45  ;;  %2128 = vmatprep.subr.bf16.mxu0 %v8107_v38  ;;  %2169 = vmatprep.subr.bf16.mxu1 %v8112_v17 }
 0x420   :  { %6577 = vst.sshfl [vmem:[#allocation4 + $0x43] sm:$0x1 pattern:$0x73625140] %v1497_v44  ;;  %2158 = vmatprep.mubr.bf16.mxu0 %v7654_v2  ;;  %v1527_v51 = vrot.slane %v1499_v46, %v7960_v42  ;;  %v1529_v52 = vcombine.high %v1513_v48, %v1513_v48  ;;  %v1530_v53 = vcombine.high %v1520_v49, %v1520_v49  ;;  %1542 = vst [vmem:[#allocation4 + $0x23] sm:$0x1] %v1528_v50 }
 0x421   :  { %6578 = vst.sshfl [vmem:[#allocation4 + $0x53] sm:$0x1 pattern:$0x73625140] %v1499_v46  ;;  %2199 = vmatprep.mubr.bf16.mxu1 %v7654_v2  ;;  %2129 = vmatpush1.bf16.msra.mxu0 %v8117_v39 }
 0x422   :  { %2170 = vmatpush1.bf16.msra.mxu1 %v8122_v0  ;;  %v1531_v54 = vcombine.high %v1527_v51, %v1527_v51  ;;  %1543 = vst [vmem:[#allocation4 + $0x33] sm:$0x1] %v1530_v53  ;;  %1546 = vst [vmem:[#allocation4 + $0x63] sm:$0x1] %v1529_v52  ;;  %2130 = vmatprep.subr.bf16.mxu0 %v8131_v18 }
 0x423   :  { %2171 = vmatprep.subr.bf16.mxu1 %v8136_v41 }
 0x424   :  { %1547 = vst [vmem:[#allocation4 + $0x73] sm:$0x1] %v1531_v54 }
 0x425   :  { %2131 = vmatpush1.bf16.msra.mxu0 %v8141_v43 }
 0x426   :  { %2172 = vmatpush1.bf16.msra.mxu1 %v8146_v1  ;;  %2132 = vmatprep.subr.bf16.mxu0 %v8155_v19 }
 0x427   :  { %2173 = vmatprep.subr.bf16.mxu1 %v8160_v3 }
 0x429   :  { %2133 = vmatpush1.bf16.msra.mxu0 %v8165_v4 }
 0x42a   :  { %2174 = vmatpush1.bf16.msra.mxu1 %v8170_v5  ;;  %2134 = vmatprep.subr.bf16.mxu0 %v8184_v7 }
 0x42b   :  { %2175 = vmatprep.subr.bf16.mxu1 %v8194_v9 }
 0x42d   :  { %2135 = vmatpush1.bf16.msra.mxu0 %v8179_v6 }
 0x42e   :  { %2176 = vmatpush1.bf16.msra.mxu1 %v8189_v8  ;;  %2136 = vmatprep.subr.bf16.mxu0 %v8199_v10 }
 0x42f   :  { %2177 = vmatprep.subr.bf16.mxu1 %v8205_v11 }
 0x431   :  { %2137 = vmatpush1.bf16.msra.mxu0 %v8213_v12 }
 0x432   :  { %2178 = vmatpush1.bf16.msra.mxu1 %v8218_v13  ;;  %2138 = vmatprep.subr.bf16.mxu0 %v8225_v14 }
 0x433   :  { %2179 = vmatprep.subr.bf16.mxu1 %v8230_v15 }
 0x435   :  { %2139 = vmatpush1.bf16.msra.mxu0 %v8237_v16 }
 0x436   :  { %2180 = vmatpush1.bf16.msra.mxu1 %v8242_v21  ;;  %2140 = vmatprep.subr.bf16.mxu0 %v8249_v22 }
 0x437   :  { %2181 = vmatprep.subr.bf16.mxu1 %v8254_v23 }
 0x439   :  { %2141 = vmatpush1.bf16.msra.mxu0 %v8261_v24 }
 0x43a   :  { %2182 = vmatpush1.bf16.msra.mxu1 %v8266_v25  ;;  %2504 = vmatprep.subr.bf16.mxu0 %v8083_v20 }
 0x43b   :  { %2545 = vmatprep.subr.bf16.mxu1 %v8088_v35 }
 0x4dc   :  { %v1782_v56 = vpop.f32.mrf.mxu0 }
 0x4dd   :  { %v1823_v57 = vpop.f32.mrf.mxu1  ;;  %v1830_v59 = vadd.f32 %v6579_v55, %v1782_v56 }
 0x4de   :  { %v1784_v60 = vpop.f32.mrf.mxu0  ;;  %v1832_v47 = vadd.f32 %v6581_v34, %v1823_v57 }
 0x4df   :  { %v1825_v61 = vpop.f32.mrf.mxu1  ;;  %v6615_v62 = vmul.f32 -1.442695, %v1830_v59  ;;  %v1831_v63 = vadd.f32 %v6580_v58, %v1784_v60 }
 0x4e0   :  { %v1786_v26 = vpop.f32.mrf.mxu0  ;;  %v1833_v33 = vadd.f32 %v6582_v32, %v1825_v61 }
 0x4e1   :  { %v1827_v27 = vpop.f32.mrf.mxu1  ;;  %7398 = vpow2.f32 %v6615_v62  ;;  %v6616_v28 = vmul.f32 -1.442695, %v1831_v63 }
 0x4e2   :  { %v1787_v30 = vpop.f32.mrf.mxu0  ;;  %v6617_v44 = vmul.f32 -1.442695, %v1833_v33 }
 0x4e3   :  { %v1828_v31 = vpop.f32.mrf.mxu1  ;;  %7400 = vpow2.f32 %v6616_v28 }
 0x4e4   :  { %7402 = vpow2.f32 %v6617_v44 }
 0x4ee   :  { %v7399_v45 = vpop.eup %7398 }
 0x4ef   :  { %v1837_v46 = vadd.f32 1.0, %v7399_v45 }
 0x4f0   :  { %v7401_v48 = vpop.eup %7400 }
 0x4f1   :  { %7404 = vrcp.f32 %v1837_v46  ;;  %v1843_v49 = vadd.f32 1.0, %v7401_v48  ;;  %v7403_v50 = vpop.eup %7402 }
 0x4f2   :  { %7406 = vtanh.f32 %v1832_v47  ;;  %v1850_v54 = vadd.f32 1.0, %v7403_v50  ;;  %v6622_v47 = vld [vmem:[%s9355_s0 + $0xa0] sm:$0xff] }
 0x4f3   :  { %7408 = vrcp.f32 %v1843_v49  ;;  %v6623_v49 = vld [vmem:[%s9355_s0 + $0xa8] sm:$0xff] }
 0x4f4   :  { %7410 = vrcp.f32 %v1850_v54 }
 0x4fe   :  { %v7405_v51 = vpop.eup %7404 }
 0x4ff   :  { %v7407_v52 = vpop.eup %7406 }
 0x500   :  { %v7409_v53 = vpop.eup %7408  ;;  %v1854_v55 = vmul.f32 %v7407_v52, %v7405_v51 }
 0x501   :  { %v1853_v56 = vmul.f32 %v7409_v53, %v8287_v29  ;;  %v7411_v57 = vpop.eup %7410 }
 0x503   :  { %v8343_v58 = vadd.f32 %v1854_v55, %v1853_v56 }
 0x505   :  { %7412 = vtanh.f32 %v8343_v58 }
 0x512   :  { %v7413_v59 = vpop.eup %7412 }
 0x513   :  { %v1857_v60 = vmul.f32 %v7413_v59, %v7411_v57  ;;  %v6625_v59 = vld [vmem:[%s9355_s0 + $0xb8] sm:$0xff] }
 0x515   :  { %v1861_v61 = vcombine.high %v1857_v60, %v1857_v60  ;;  %v1868_v62 = vrot.slane %v1857_v60, %v7960_v42  ;;  %v1933_v63 = vpack.c.bf16 %v1857_v60, %v1857_v60 }
 0x517   :  { %v1875_v26 = vrot.slane %v1861_v61, %v7960_v42  ;;  %v1876_v27 = vcombine.high %v1868_v62, %v1868_v62  ;;  %v1884_v28 = vrot.slane %v1868_v62, %v7960_v42  ;;  %6618 = vst.sshfl [vmem:[#allocation4 + $0x4] sm:$0x1 pattern:$0x73625140] %v1868_v62  ;;  %2159 = vmatmul.mubr.bf16.vlgmr.msra.gmra.mxu0 %v1933_v63  ;;  %v6624_v61 = vld [vmem:[%s9355_s0 + $0xb0] sm:$0xff] }
 0x518   :  { %2200 = vmatmul.mubr.bf16.vlgmr.msra.gmra.mxu1 %v1933_v63  ;;  %2505 = vmatpush1.bf16.msra.mxu0 %v8093_v36 }
 0x519   :  { %2546 = vmatpush1.bf16.msra.mxu1 %v8098_v37  ;;  %v1877_v29 = vcombine.high %v1875_v26, %v1875_v26  ;;  %v1891_v30 = vrot.slane %v1875_v26, %v7960_v42  ;;  %v1898_v31 = vrot.slane %v1876_v27, %v7960_v42  ;;  %v1906_v32 = vcombine.high %v1884_v28, %v1884_v28 }
 0x51a   :  { %6619 = vst.sshfl [vmem:[#allocation4 + $0x14] sm:$0x1 pattern:$0x73625140] %v1876_v27  ;;  %2506 = vmatprep.subr.bf16.mxu0 %v8107_v38  ;;  %2547 = vmatprep.subr.bf16.mxu1 %v8112_v17 }
 0x51b   :  { %6620 = vst.sshfl [vmem:[#allocation4 + $0x44] sm:$0x1 pattern:$0x73625140] %v1875_v26  ;;  %2536 = vmatprep.mubr.bf16.mxu0 %v7654_v2  ;;  %v1905_v33 = vrot.slane %v1877_v29, %v7960_v42  ;;  %v1907_v34 = vcombine.high %v1891_v30, %v1891_v30  ;;  %v1908_v44 = vcombine.high %v1898_v31, %v1898_v31  ;;  %1920 = vst [vmem:[#allocation4 + $0x24] sm:$0x1] %v1906_v32 }
 0x51c   :  { %6621 = vst.sshfl [vmem:[#allocation4 + $0x54] sm:$0x1 pattern:$0x73625140] %v1877_v29  ;;  %2577 = vmatprep.mubr.bf16.mxu1 %v7654_v2  ;;  %2507 = vmatpush1.bf16.msra.mxu0 %v8117_v39 }
 0x51d   :  { %2548 = vmatpush1.bf16.msra.mxu1 %v8122_v0  ;;  %v1909_v45 = vcombine.high %v1905_v33, %v1905_v33  ;;  %1921 = vst [vmem:[#allocation4 + $0x34] sm:$0x1] %v1908_v44  ;;  %1924 = vst [vmem:[#allocation4 + $0x64] sm:$0x1] %v1907_v34  ;;  %2508 = vmatprep.subr.bf16.mxu0 %v8131_v18 }
 0x51e   :  { %2549 = vmatprep.subr.bf16.mxu1 %v8136_v41 }
 0x51f   :  { %1925 = vst [vmem:[#allocation4 + $0x74] sm:$0x1] %v1909_v45 }
 0x520   :  { %2509 = vmatpush1.bf16.msra.mxu0 %v8141_v43 }
 0x521   :  { %2550 = vmatpush1.bf16.msra.mxu1 %v8146_v1  ;;  %2510 = vmatprep.subr.bf16.mxu0 %v8155_v19 }
 0x522   :  { %2551 = vmatprep.subr.bf16.mxu1 %v8160_v3 }
 0x524   :  { %2511 = vmatpush1.bf16.msra.mxu0 %v8165_v4 }
 0x525   :  { %2552 = vmatpush1.bf16.msra.mxu1 %v8170_v5  ;;  %2512 = vmatprep.subr.bf16.mxu0 %v8184_v7 }
 0x526   :  { %2553 = vmatprep.subr.bf16.mxu1 %v8194_v9 }
 0x528   :  { %2513 = vmatpush1.bf16.msra.mxu0 %v8179_v6 }
 0x529   :  { %2554 = vmatpush1.bf16.msra.mxu1 %v8189_v8  ;;  %2514 = vmatprep.subr.bf16.mxu0 %v8199_v10 }
 0x52a   :  { %2555 = vmatprep.subr.bf16.mxu1 %v8205_v11 }
 0x52c   :  { %2515 = vmatpush1.bf16.msra.mxu0 %v8213_v12 }
 0x52d   :  { %2556 = vmatpush1.bf16.msra.mxu1 %v8218_v13  ;;  %2516 = vmatprep.subr.bf16.mxu0 %v8225_v14 }
 0x52e   :  { %2557 = vmatprep.subr.bf16.mxu1 %v8230_v15 }
 0x530   :  { %2517 = vmatpush1.bf16.msra.mxu0 %v8237_v16 }
 0x531   :  { %2558 = vmatpush1.bf16.msra.mxu1 %v8242_v21  ;;  %2518 = vmatprep.subr.bf16.mxu0 %v8249_v22 }
 0x532   :  { %2559 = vmatprep.subr.bf16.mxu1 %v8254_v23 }
 0x534   :  { %2519 = vmatpush1.bf16.msra.mxu0 %v8261_v24 }
 0x535   :  { %2560 = vmatpush1.bf16.msra.mxu1 %v8266_v25  ;;  %2882 = vmatprep.subr.bf16.mxu0 %v8083_v20 }
 0x536   :  { %2923 = vmatprep.subr.bf16.mxu1 %v8088_v35 }
 0x5d7   :  { %v2160_v46 = vpop.f32.mrf.mxu0 }
 0x5d8   :  { %v2201_v48 = vpop.f32.mrf.mxu1  ;;  %v2208_v50 = vadd.f32 %v6622_v47, %v2160_v46 }
 0x5d9   :  { %v2162_v51 = vpop.f32.mrf.mxu0  ;;  %v2210_v26 = vadd.f32 %v6624_v61, %v2201_v48 }
 0x5da   :  { %v2203_v52 = vpop.f32.mrf.mxu1  ;;  %v6658_v53 = vmul.f32 -1.442695, %v2208_v50  ;;  %v2209_v54 = vadd.f32 %v6623_v49, %v2162_v51 }
 0x5db   :  { %v2164_v55 = vpop.f32.mrf.mxu0  ;;  %v2211_v60 = vadd.f32 %v6625_v59, %v2203_v52 }
 0x5dc   :  { %v2205_v56 = vpop.f32.mrf.mxu1  ;;  %7414 = vpow2.f32 %v6658_v53  ;;  %v6659_v20 = vmul.f32 -1.442695, %v2209_v54 }
 0x5dd   :  { %v2165_v35 = vpop.f32.mrf.mxu0  ;;  %v6660_v62 = vmul.f32 -1.442695, %v2211_v60 }
 0x5de   :  { %v2206_v57 = vpop.f32.mrf.mxu1  ;;  %7416 = vpow2.f32 %v6659_v20 }
 0x5df   :  { %7418 = vpow2.f32 %v6660_v62 }
 0x5e9   :  { %v7415_v63 = vpop.eup %7414 }
 0x5ea   :  { %v2215_v27 = vadd.f32 1.0, %v7415_v63 }
 0x5eb   :  { %v7417_v28 = vpop.eup %7416 }
 0x5ec   :  { %7420 = vrcp.f32 %v2215_v27  ;;  %v2221_v29 = vadd.f32 1.0, %v7417_v28  ;;  %v7419_v30 = vpop.eup %7418 }
 0x5ed   :  { %7422 = vtanh.f32 %v2210_v26  ;;  %v2228_v34 = vadd.f32 1.0, %v7419_v30 }
 0x5ee   :  { %7424 = vrcp.f32 %v2221_v29 }
 0x5ef   :  { %7426 = vrcp.f32 %v2228_v34 }
 0x5f9   :  { %v7421_v31 = vpop.eup %7420 }
 0x5fa   :  { %v7423_v32 = vpop.eup %7422 }
 0x5fb   :  { %v7425_v33 = vpop.eup %7424  ;;  %v2232_v44 = vmul.f32 %v7423_v32, %v7421_v31 }
 0x5fc   :  { %v2231_v45 = vmul.f32 %v7425_v33, %v8343_v58  ;;  %v7427_v46 = vpop.eup %7426 }
 0x5fe   :  { %v8399_v47 = vadd.f32 %v2232_v44, %v2231_v45 }
 0x600   :  { %7428 = vtanh.f32 %v8399_v47 }
 0x60d   :  { %v7429_v48 = vpop.eup %7428 }
 0x60e   :  { %v2235_v49 = vmul.f32 %v7429_v48, %v7427_v46 }
 0x610   :  { %v2239_v50 = vcombine.high %v2235_v49, %v2235_v49  ;;  %v2246_v51 = vrot.slane %v2235_v49, %v7960_v42  ;;  %v2311_v52 = vpack.c.bf16 %v2235_v49, %v2235_v49 }
 0x612   :  { %v2253_v53 = vrot.slane %v2239_v50, %v7960_v42  ;;  %v2254_v54 = vcombine.high %v2246_v51, %v2246_v51  ;;  %v2262_v55 = vrot.slane %v2246_v51, %v7960_v42  ;;  %6661 = vst.sshfl [vmem:[#allocation4 + $0x5] sm:$0x1 pattern:$0x73625140] %v2246_v51  ;;  %2537 = vmatmul.mubr.bf16.vlgmr.msra.gmra.mxu0 %v2311_v52  ;;  %v8467_v51 = vld [vmem:[%s9358_s3 + $0xe4] ss:$16 sps:$4 sm:$0xff]  }
 0x613   :  { %2578 = vmatmul.mubr.bf16.vlgmr.msra.gmra.mxu1 %v2311_v52  ;;  %2883 = vmatpush1.bf16.msra.mxu0 %v8093_v36  ;;  %v8472_v52 = vld [vmem:[%s9358_s3 + $0xec] ss:$16 sps:$4 sm:$0xff]  }
 0x614   :  { %2924 = vmatpush1.bf16.msra.mxu1 %v8098_v37  ;;  %v2255_v58 = vcombine.high %v2253_v53, %v2253_v53  ;;  %v2269_v56 = vrot.slane %v2253_v53, %v7960_v42  ;;  %v2276_v20 = vrot.slane %v2254_v54, %v7960_v42  ;;  %v2284_v35 = vcombine.high %v2262_v55, %v2262_v55  ;;  %v8491_v55 = vld [vmem:[%s9358_s3 + $0xc4] ss:$16 sps:$4 sm:$0xff]  }
 0x615   :  { %6662 = vst.sshfl [vmem:[#allocation4 + $0x15] sm:$0x1 pattern:$0x73625140] %v2254_v54  ;;  %2884 = vmatprep.subr.bf16.mxu0 %v8107_v38  ;;  %2925 = vmatprep.subr.bf16.mxu1 %v8112_v17  ;;  %v6665_v38 = vld [vmem:[%s9355_s0 + $0xc0] sm:$0xff] }
 0x616   :  { %6663 = vst.sshfl [vmem:[#allocation4 + $0x45] sm:$0x1 pattern:$0x73625140] %v2253_v53  ;;  %2914 = vmatprep.mubr.bf16.mxu0 %v7654_v2  ;;  %v2283_v57 = vrot.slane %v2255_v58, %v7960_v42  ;;  %v2285_v59 = vcombine.high %v2269_v56, %v2269_v56  ;;  %v2286_v36 = vcombine.high %v2276_v20, %v2276_v20  ;;  %2298 = vst [vmem:[#allocation4 + $0x25] sm:$0x1] %v2284_v35 }
 0x617   :  { %6664 = vst.sshfl [vmem:[#allocation4 + $0x55] sm:$0x1 pattern:$0x73625140] %v2255_v58  ;;  %2955 = vmatprep.mubr.bf16.mxu1 %v7654_v2  ;;  %2885 = vmatpush1.bf16.msra.mxu0 %v8117_v39  ;;  %v8477_v53 = vld [vmem:[%s9358_s3 + $0xe0] ss:$16 sps:$4 sm:$0xff]  }
 0x618   :  { %2926 = vmatpush1.bf16.msra.mxu1 %v8122_v0  ;;  %v2287_v37 = vcombine.high %v2283_v57, %v2283_v57  ;;  %2299 = vst [vmem:[#allocation4 + $0x35] sm:$0x1] %v2286_v36  ;;  %2302 = vst [vmem:[#allocation4 + $0x65] sm:$0x1] %v2285_v59  ;;  %2886 = vmatprep.subr.bf16.mxu0 %v8131_v18  ;;  %v6666_v0 = vld [vmem:[%s9355_s0 + $0xc8] sm:$0xff] }
 0x619   :  { %2927 = vmatprep.subr.bf16.mxu1 %v8136_v41  ;;  %v8482_v54 = vld [vmem:[%s9358_s3 + $0xe8] ss:$16 sps:$4 sm:$0xff]   ;;  %v8496_v58 = vld [vmem:[%s9358_s3 + $0xcc] ss:$16 sps:$4 sm:$0xff]   ;;  %v8501_v56 = vld [vmem:[%s9358_s3 + $0xc0] ss:$16 sps:$4 sm:$0xff]  }
 0x61a   :  { %2303 = vst [vmem:[#allocation4 + $0x75] sm:$0x1] %v2287_v37  ;;  %v8506_v20 = vld [vmem:[%s9358_s3 + $0xc8] ss:$16 sps:$4 sm:$0xff]   ;;  %v8515_v35 = vld [vmem:[%s9358_s3 + $0xa4] ss:$16 sps:$4 sm:$0xff]  }
 0x61b   :  { %2887 = vmatpush1.bf16.msra.mxu0 %v8141_v43  ;;  %v8520_v57 = vld [vmem:[%s9358_s3 + $0xac] ss:$16 sps:$4 sm:$0xff]   ;;  %v8525_v59 = vld [vmem:[%s9358_s3 + $0xa0] ss:$16 sps:$4 sm:$0xff]   ;;  %v8530_v36 = vld [vmem:[%s9358_s3 + $0xa8] ss:$16 sps:$4 sm:$0xff]  }
 0x61c   :  { %2928 = vmatpush1.bf16.msra.mxu1 %v8146_v1  ;;  %2888 = vmatprep.subr.bf16.mxu0 %v8155_v19  ;;  %v8539_v37 = vld [vmem:[%s9358_s3 + $0x84] ss:$16 sps:$4 sm:$0xff]  }
 0x61d   :  { %2929 = vmatprep.subr.bf16.mxu1 %v8160_v3 }
 0x61f   :  { %2889 = vmatpush1.bf16.msra.mxu0 %v8165_v4 }
 0x620   :  { %2930 = vmatpush1.bf16.msra.mxu1 %v8170_v5  ;;  %2890 = vmatprep.subr.bf16.mxu0 %v8184_v7 }
 0x621   :  { %2931 = vmatprep.subr.bf16.mxu1 %v8194_v9 }
 0x623   :  { %2891 = vmatpush1.bf16.msra.mxu0 %v8179_v6 }
 0x624   :  { %2932 = vmatpush1.bf16.msra.mxu1 %v8189_v8  ;;  %2892 = vmatprep.subr.bf16.mxu0 %v8199_v10  ;;  %v6668_v8 = vld [vmem:[%s9355_s0 + $0xd8] sm:$0xff]  ;;  %v6667_v10 = vld [vmem:[%s9355_s0 + $0xd0] sm:$0xff] }
 0x625   :  { %2933 = vmatprep.subr.bf16.mxu1 %v8205_v11 }
 0x627   :  { %2893 = vmatpush1.bf16.msra.mxu0 %v8213_v12 }
 0x628   :  { %2934 = vmatpush1.bf16.msra.mxu1 %v8218_v13  ;;  %2894 = vmatprep.subr.bf16.mxu0 %v8225_v14 }
 0x629   :  { %2935 = vmatprep.subr.bf16.mxu1 %v8230_v15 }
 0x62b   :  { %2895 = vmatpush1.bf16.msra.mxu0 %v8237_v16 }
 0x62c   :  { %2936 = vmatpush1.bf16.msra.mxu1 %v8242_v21  ;;  %2896 = vmatprep.subr.bf16.mxu0 %v8249_v22 }
 0x62d   :  { %2937 = vmatprep.subr.bf16.mxu1 %v8254_v23 }
 0x62f   :  { %2897 = vmatpush1.bf16.msra.mxu0 %v8261_v24 }
 0x630   :  { %2938 = vmatpush1.bf16.msra.mxu1 %v8266_v25  ;;  %3260 = vmatprep.subr.bf16.mxu0 %v8467_v51 }
 0x631   :  { %3301 = vmatprep.subr.bf16.mxu1 %v8472_v52 }
 0x6d2   :  { %v2538_v17 = vpop.f32.mrf.mxu0 }
 0x6d3   :  { %v2579_v39 = vpop.f32.mrf.mxu1  ;;  %v2586_v18 = vadd.f32 %v6665_v38, %v2538_v17  ;;  %v8544_v38 = vld [vmem:[%s9358_s3 + $0x8c] ss:$16 sps:$4 sm:$0xff]   ;;  %v8549_v17 = vld [vmem:[%s9358_s3 + $0x80] ss:$16 sps:$4 sm:$0xff]  }
 0x6d4   :  { %v2540_v41 = vpop.f32.mrf.mxu0  ;;  %v2588_v13 = vadd.f32 %v6667_v10, %v2579_v39  ;;  %v8554_v39 = vld [vmem:[%s9358_s3 + $0x88] ss:$16 sps:$4 sm:$0xff]   ;;  %v8638_v10 = vld [vmem:[%s9358_s3 + $0xc] ss:$16 sps:$4 sm:$0xff]  }
 0x6d5   :  { %v2581_v43 = vpop.f32.mrf.mxu1  ;;  %v6701_v1 = vmul.f32 -1.442695, %v2586_v18  ;;  %v2587_v19 = vadd.f32 %v6666_v0, %v2540_v41  ;;  %v8563_v0 = vld [vmem:[%s9358_s3 + $0x60] ss:$16 sps:$4 sm:$0xff]   ;;  %v8568_v18 = vld [vmem:[%s9358_s3 + $0x64] ss:$16 sps:$4 sm:$0xff]  }
 0x6d6   :  { %v2542_v3 = vpop.f32.mrf.mxu0  ;;  %v2589_v9 = vadd.f32 %v6668_v8, %v2581_v43  ;;  %v8573_v41 = vld [vmem:[%s9358_s3 + $0x68] ss:$16 sps:$4 sm:$0xff]   ;;  %v8578_v43 = vld [vmem:[%s9358_s3 + $0x6c] ss:$16 sps:$4 sm:$0xff]  }
 0x6d7   :  { %v2583_v4 = vpop.f32.mrf.mxu1  ;;  %7430 = vpow2.f32 %v6701_v1  ;;  %v6702_v5 = vmul.f32 -1.442695, %v2587_v19  ;;  %v8583_v1 = vld [vmem:[%s9358_s3 + $0x44] ss:$16 sps:$4 sm:$0xff]   ;;  %v8589_v19 = vld [vmem:[%s9358_s3 + $0x4c] ss:$16 sps:$4 sm:$0xff]  }
 0x6d8   :  { %v2543_v6 = vpop.f32.mrf.mxu0  ;;  %v6703_v11 = vmul.f32 -1.442695, %v2589_v9  ;;  %v8597_v3 = vld [vmem:[%s9358_s3 + $0x40] ss:$16 sps:$4 sm:$0xff]   ;;  %v8602_v4 = vld [vmem:[%s9358_s3 + $0x48] ss:$16 sps:$4 sm:$0xff]  }
 0x6d9   :  { %v2584_v7 = vpop.f32.mrf.mxu1  ;;  %7432 = vpow2.f32 %v6702_v5  ;;  %v8609_v5 = vld [vmem:[%s9358_s3 + $0x24] ss:$16 sps:$4 sm:$0xff]   ;;  %v8614_v6 = vld [vmem:[%s9358_s3 + $0x2c] ss:$16 sps:$4 sm:$0xff]   ;;  %v8626_v8 = vld [vmem:[%s9358_s3 + $0x28] ss:$16 sps:$4 sm:$0xff]  }
 0x6da   :  { %7434 = vpow2.f32 %v6703_v11  ;;  %v8621_v7 = vld [vmem:[%s9358_s3 + $0x20] ss:$16 sps:$4 sm:$0xff]   ;;  %v8633_v9 = vld [vmem:[%s9358_s3 + $0x4] ss:$16 sps:$4 sm:$0xff]  }
 0x6db   :  { %v8645_v11 = vld [vmem:[%s9358_s3] ss:$16 sps:$4 sm:$0xff]  }
 0x6e4   :  { %v7431_v12 = vpop.eup %7430 }
 0x6e5   :  { %v2593_v14 = vadd.f32 1.0, %v7431_v12  ;;  %v8650_v12 = vld [vmem:[%s9358_s3 + $0x8] ss:$16 sps:$4 sm:$0xff]  }
 0x6e6   :  { %v7433_v15 = vpop.eup %7432 }
 0x6e7   :  { %7436 = vrcp.f32 %v2593_v14  ;;  %v2599_v16 = vadd.f32 1.0, %v7433_v15  ;;  %v7435_v21 = vpop.eup %7434 }
 0x6e8   :  { %7438 = vtanh.f32 %v2588_v13  ;;  %v2606_v25 = vadd.f32 1.0, %v7435_v21  ;;  %v6708_v13 = vld [vmem:[%s9355_s0 + $0xe0] sm:$0xff] }
 0x6e9   :  { %7440 = vrcp.f32 %v2599_v16  ;;  %v6709_v16 = vld [vmem:[%s9355_s0 + $0xe8] sm:$0xff] }
 0x6ea   :  { %7442 = vrcp.f32 %v2606_v25 }
 0x6f4   :  { %v7437_v22 = vpop.eup %7436 }
 0x6f5   :  { %v7439_v23 = vpop.eup %7438 }
 0x6f6   :  { %v7441_v24 = vpop.eup %7440  ;;  %v2610_v60 = vmul.f32 %v7439_v23, %v7437_v22 }
 0x6f7   :  { %v2609_v61 = vmul.f32 %v7441_v24, %v8399_v47  ;;  %v7443_v63 = vpop.eup %7442 }
 0x6f9   :  { %v8453_v62 = vadd.f32 %v2610_v60, %v2609_v61 }
 0x6fb   :  { %7444 = vtanh.f32 %v8453_v62 }
 0x708   :  { %v7445_v26 = vpop.eup %7444 }
 0x709   :  { %v2613_v27 = vmul.f32 %v7445_v26, %v7443_v63 }
 0x70b   :  { %v2617_v28 = vcombine.high %v2613_v27, %v2613_v27  ;;  %v2624_v29 = vrot.slane %v2613_v27, %v7960_v42  ;;  %v2689_v30 = vpack.c.bf16 %v2613_v27, %v2613_v27 }
 0x70d   :  { %v2631_v31 = vrot.slane %v2617_v28, %v7960_v42  ;;  %v2632_v32 = vcombine.high %v2624_v29, %v2624_v29  ;;  %v2640_v33 = vrot.slane %v2624_v29, %v7960_v42  ;;  %6704 = vst.sshfl [vmem:[#allocation4 + $0x6] sm:$0x1 pattern:$0x73625140] %v2624_v29  ;;  %2915 = vmatmul.mubr.bf16.vlgmr.msra.gmra.mxu0 %v2689_v30  ;;  %v6711_v28 = vld [vmem:[%s9355_s0 + $0xf8] sm:$0xff] }
 0x70e   :  { %2956 = vmatmul.mubr.bf16.vlgmr.msra.gmra.mxu1 %v2689_v30  ;;  %3292 = vmatprep.mubr.bf16.mxu0 %v7654_v2  ;;  %v6710_v30 = vld [vmem:[%s9355_s0 + $0xf0] sm:$0xff] }
 0x70f   :  { %3333 = vmatprep.mubr.bf16.mxu1 %v7654_v2  ;;  %v2633_v34 = vcombine.high %v2631_v31, %v2631_v31  ;;  %v2647_v44 = vrot.slane %v2631_v31, %v7960_v42  ;;  %v2654_v45 = vrot.slane %v2632_v32, %v7960_v42  ;;  %v2662_v47 = vcombine.high %v2640_v33, %v2640_v33 }
 0x710   :  { %6705 = vst.sshfl [vmem:[#allocation4 + $0x16] sm:$0x1 pattern:$0x73625140] %v2632_v32  ;;  %3261 = vmatpush1.bf16.msra.mxu0 %v8477_v53  ;;  %3302 = vmatpush1.bf16.msra.mxu1 %v8482_v54 }
 0x711   :  { %6706 = vst.sshfl [vmem:[#allocation4 + $0x46] sm:$0x1 pattern:$0x73625140] %v2631_v31  ;;  %v2661_v46 = vrot.slane %v2633_v34, %v7960_v42  ;;  %v2663_v48 = vcombine.high %v2647_v44, %v2647_v44  ;;  %v2664_v49 = vcombine.high %v2654_v45, %v2654_v45  ;;  %2676 = vst [vmem:[#allocation4 + $0x26] sm:$0x1] %v2662_v47  ;;  %3262 = vmatprep.subr.bf16.mxu0 %v8491_v55 }
 0x712   :  { %6707 = vst.sshfl [vmem:[#allocation4 + $0x56] sm:$0x1 pattern:$0x73625140] %v2633_v34  ;;  %3303 = vmatprep.subr.bf16.mxu1 %v8496_v58 }
 0x713   :  { %v2665_v50 = vcombine.high %v2661_v46, %v2661_v46  ;;  %2677 = vst [vmem:[#allocation4 + $0x36] sm:$0x1] %v2664_v49  ;;  %2680 = vst [vmem:[#allocation4 + $0x66] sm:$0x1] %v2663_v48 }
 0x714   :  { %3263 = vmatpush1.bf16.msra.mxu0 %v8501_v56  ;;  %3304 = vmatpush1.bf16.msra.mxu1 %v8506_v20 }
 0x715   :  { %2681 = vst [vmem:[#allocation4 + $0x76] sm:$0x1] %v2665_v50  ;;  %3264 = vmatprep.subr.bf16.mxu0 %v8515_v35  ;;  %3305 = vmatprep.subr.bf16.mxu1 %v8520_v57 }
 0x718   :  { %3265 = vmatpush1.bf16.msra.mxu0 %v8525_v59  ;;  %3306 = vmatpush1.bf16.msra.mxu1 %v8530_v36 }
 0x719   :  { %3266 = vmatprep.subr.bf16.mxu0 %v8539_v37  ;;  %3307 = vmatprep.subr.bf16.mxu1 %v8544_v38 }
 0x71c   :  { %3267 = vmatpush1.bf16.msra.mxu0 %v8549_v17  ;;  %3308 = vmatpush1.bf16.msra.mxu1 %v8554_v39 }
 0x71d   :  { %3268 = vmatprep.subr.bf16.mxu0 %v8568_v18  ;;  %3309 = vmatprep.subr.bf16.mxu1 %v8578_v43 }
 0x720   :  { %3269 = vmatpush1.bf16.msra.mxu0 %v8563_v0  ;;  %3310 = vmatpush1.bf16.msra.mxu1 %v8573_v41 }
 0x721   :  { %3270 = vmatprep.subr.bf16.mxu0 %v8583_v1  ;;  %3311 = vmatprep.subr.bf16.mxu1 %v8589_v19 }
 0x724   :  { %3271 = vmatpush1.bf16.msra.mxu0 %v8597_v3  ;;  %3312 = vmatpush1.bf16.msra.mxu1 %v8602_v4 }
 0x725   :  { %3272 = vmatprep.subr.bf16.mxu0 %v8609_v5  ;;  %3313 = vmatprep.subr.bf16.mxu1 %v8614_v6 }
 0x728   :  { %3273 = vmatpush1.bf16.msra.mxu0 %v8621_v7  ;;  %3314 = vmatpush1.bf16.msra.mxu1 %v8626_v8 }
 0x729   :  { %3274 = vmatprep.subr.bf16.mxu0 %v8633_v9  ;;  %3315 = vmatprep.subr.bf16.mxu1 %v8638_v10 }
 0x72c   :  { %3275 = vmatpush1.bf16.msra.mxu0 %v8645_v11  ;;  %3316 = vmatpush1.bf16.msra.mxu1 %v8650_v12 }
 0x72d   :  { %3638 = vmatprep.subr.bf16.mxu0 %v8467_v51  ;;  %3679 = vmatprep.subr.bf16.mxu1 %v8472_v52 }
 0x7cd   :  { %v2916_v14 = vpop.f32.mrf.mxu0 }
 0x7ce   :  { %v2957_v15 = vpop.f32.mrf.mxu1  ;;  %v2964_v21 = vadd.f32 %v6708_v13, %v2916_v14 }
 0x7cf   :  { %v2918_v22 = vpop.f32.mrf.mxu0  ;;  %v2966_v33 = vadd.f32 %v6710_v30, %v2957_v15 }
 0x7d0   :  { %v2959_v23 = vpop.f32.mrf.mxu1  ;;  %v6744_v24 = vmul.f32 -1.442695, %v2964_v21  ;;  %v2965_v25 = vadd.f32 %v6709_v16, %v2918_v22 }
 0x7d1   :  { %v2920_v60 = vpop.f32.mrf.mxu0  ;;  %v2967_v29 = vadd.f32 %v6711_v28, %v2959_v23 }
 0x7d2   :  { %v2961_v61 = vpop.f32.mrf.mxu1  ;;  %7446 = vpow2.f32 %v6744_v24  ;;  %v6745_v63 = vmul.f32 -1.442695, %v2965_v25 }
 0x7d3   :  { %v2921_v26 = vpop.f32.mrf.mxu0  ;;  %v6746_v31 = vmul.f32 -1.442695, %v2967_v29 }
 0x7d4   :  { %v2962_v27 = vpop.f32.mrf.mxu1  ;;  %7448 = vpow2.f32 %v6745_v63 }
 0x7d5   :  { %7450 = vpow2.f32 %v6746_v31 }
 0x7df   :  { %v7447_v32 = vpop.eup %7446 }
 0x7e0   :  { %v2971_v34 = vadd.f32 1.0, %v7447_v32 }
 0x7e1   :  { %v7449_v44 = vpop.eup %7448 }
 0x7e2   :  { %7452 = vrcp.f32 %v2971_v34  ;;  %v2977_v45 = vadd.f32 1.0, %v7449_v44  ;;  %v7451_v47 = vpop.eup %7450 }
 0x7e3   :  { %7454 = vtanh.f32 %v2966_v33  ;;  %v2984_v50 = vadd.f32 1.0, %v7451_v47  ;;  %v6751_v33 = vld [vmem:[%s9355_s0 + $0x100] sm:$0xff] }
 0x7e4   :  { %7456 = vrcp.f32 %v2977_v45  ;;  %v6752_v45 = vld [vmem:[%s9355_s0 + $0x108] sm:$0xff] }
 0x7e5   :  { %7458 = vrcp.f32 %v2984_v50 }
 0x7ef   :  { %v7453_v46 = vpop.eup %7452 }
 0x7f0   :  { %v7455_v48 = vpop.eup %7454 }
 0x7f1   :  { %v7457_v49 = vpop.eup %7456  ;;  %v2988_v13 = vmul.f32 %v7455_v48, %v7453_v46 }
 0x7f2   :  { %v2987_v14 = vmul.f32 %v7457_v49, %v8453_v62  ;;  %v7459_v15 = vpop.eup %7458 }
 0x7f4   :  { %v8671_v16 = vadd.f32 %v2988_v13, %v2987_v14 }
 0x7f6   :  { %7460 = vtanh.f32 %v8671_v16 }
 0x803   :  { %v7461_v21 = vpop.eup %7460 }
 0x804   :  { %v2991_v22 = vmul.f32 %v7461_v21, %v7459_v15 }
 0x806   :  { %v2995_v23 = vcombine.high %v2991_v22, %v2991_v22  ;;  %v3002_v24 = vrot.slane %v2991_v22, %v7960_v42  ;;  %v3067_v25 = vpack.c.bf16 %v2991_v22, %v2991_v22 }
 0x808   :  { %v3009_v60 = vrot.slane %v2995_v23, %v7960_v42  ;;  %v3010_v61 = vcombine.high %v3002_v24, %v3002_v24  ;;  %v3018_v63 = vrot.slane %v3002_v24, %v7960_v42  ;;  %6747 = vst.sshfl [vmem:[#allocation4 + $0x7] sm:$0x1 pattern:$0x73625140] %v3002_v24  ;;  %3293 = vmatmul.mubr.bf16.vlgmr.msra.gmra.mxu0 %v3067_v25  ;;  %v6754_v23 = vld [vmem:[%s9355_s0 + $0x118] sm:$0xff] }
 0x809   :  { %3334 = vmatmul.mubr.bf16.vlgmr.msra.gmra.mxu1 %v3067_v25  ;;  %3639 = vmatpush1.bf16.msra.mxu0 %v8477_v53  ;;  %v6753_v25 = vld [vmem:[%s9355_s0 + $0x110] sm:$0xff] }
 0x80a   :  { %3680 = vmatpush1.bf16.msra.mxu1 %v8482_v54  ;;  %v3011_v62 = vcombine.high %v3009_v60, %v3009_v60  ;;  %v3025_v26 = vrot.slane %v3009_v60, %v7960_v42  ;;  %v3032_v27 = vrot.slane %v3010_v61, %v7960_v42  ;;  %v3040_v28 = vcombine.high %v3018_v63, %v3018_v63 }
 0x80b   :  { %6748 = vst.sshfl [vmem:[#allocation4 + $0x17] sm:$0x1 pattern:$0x73625140] %v3010_v61  ;;  %3640 = vmatprep.subr.bf16.mxu0 %v8491_v55  ;;  %3681 = vmatprep.subr.bf16.mxu1 %v8496_v58 }
 0x80c   :  { %6749 = vst.sshfl [vmem:[#allocation4 + $0x47] sm:$0x1 pattern:$0x73625140] %v3009_v60  ;;  %3670 = vmatprep.mubr.bf16.mxu0 %v7654_v2  ;;  %v3039_v29 = vrot.slane %v3011_v62, %v7960_v42  ;;  %v3041_v30 = vcombine.high %v3025_v26, %v3025_v26  ;;  %v3042_v31 = vcombine.high %v3032_v27, %v3032_v27  ;;  %3054 = vst [vmem:[#allocation4 + $0x27] sm:$0x1] %v3040_v28 }
 0x80d   :  { %6750 = vst.sshfl [vmem:[#allocation4 + $0x57] sm:$0x1 pattern:$0x73625140] %v3011_v62  ;;  %3711 = vmatprep.mubr.bf16.mxu1 %v7654_v2  ;;  %3641 = vmatpush1.bf16.msra.mxu0 %v8501_v56 }
 0x80e   :  { %3682 = vmatpush1.bf16.msra.mxu1 %v8506_v20  ;;  %v3043_v32 = vcombine.high %v3039_v29, %v3039_v29  ;;  %3055 = vst [vmem:[#allocation4 + $0x37] sm:$0x1] %v3042_v31  ;;  %3058 = vst [vmem:[#allocation4 + $0x67] sm:$0x1] %v3041_v30  ;;  %3642 = vmatprep.subr.bf16.mxu0 %v8515_v35 }
 0x80f   :  { %3683 = vmatprep.subr.bf16.mxu1 %v8520_v57 }
 0x810   :  { %3059 = vst [vmem:[#allocation4 + $0x77] sm:$0x1] %v3043_v32 }
 0x811   :  { %3643 = vmatpush1.bf16.msra.mxu0 %v8525_v59 }
 0x812   :  { %3684 = vmatpush1.bf16.msra.mxu1 %v8530_v36  ;;  %3644 = vmatprep.subr.bf16.mxu0 %v8539_v37 }
 0x813   :  { %3685 = vmatprep.subr.bf16.mxu1 %v8544_v38 }
 0x815   :  { %3645 = vmatpush1.bf16.msra.mxu0 %v8549_v17 }
 0x816   :  { %3686 = vmatpush1.bf16.msra.mxu1 %v8554_v39  ;;  %3646 = vmatprep.subr.bf16.mxu0 %v8568_v18 }
 0x817   :  { %3687 = vmatprep.subr.bf16.mxu1 %v8578_v43 }
 0x819   :  { %3647 = vmatpush1.bf16.msra.mxu0 %v8563_v0 }
 0x81a   :  { %3688 = vmatpush1.bf16.msra.mxu1 %v8573_v41  ;;  %3648 = vmatprep.subr.bf16.mxu0 %v8583_v1 }
 0x81b   :  { %3689 = vmatprep.subr.bf16.mxu1 %v8589_v19 }
 0x81d   :  { %3649 = vmatpush1.bf16.msra.mxu0 %v8597_v3 }
 0x81e   :  { %3690 = vmatpush1.bf16.msra.mxu1 %v8602_v4  ;;  %3650 = vmatprep.subr.bf16.mxu0 %v8609_v5 }
 0x81f   :  { %3691 = vmatprep.subr.bf16.mxu1 %v8614_v6 }
 0x821   :  { %3651 = vmatpush1.bf16.msra.mxu0 %v8621_v7 }
 0x822   :  { %3692 = vmatpush1.bf16.msra.mxu1 %v8626_v8  ;;  %3652 = vmatprep.subr.bf16.mxu0 %v8633_v9 }
 0x823   :  { %3693 = vmatprep.subr.bf16.mxu1 %v8638_v10 }
 0x825   :  { %3653 = vmatpush1.bf16.msra.mxu0 %v8645_v11 }
 0x826   :  { %3694 = vmatpush1.bf16.msra.mxu1 %v8650_v12  ;;  %4016 = vmatprep.subr.bf16.mxu0 %v8467_v51 }
 0x827   :  { %4057 = vmatprep.subr.bf16.mxu1 %v8472_v52 }
 0x8c8   :  { %v3294_v34 = vpop.f32.mrf.mxu0 }
 0x8c9   :  { %v3335_v44 = vpop.f32.mrf.mxu1  ;;  %v3342_v47 = vadd.f32 %v6751_v33, %v3294_v34 }
 0x8ca   :  { %v3296_v46 = vpop.f32.mrf.mxu0  ;;  %v3344_v63 = vadd.f32 %v6753_v25, %v3335_v44 }
 0x8cb   :  { %v3337_v48 = vpop.f32.mrf.mxu1  ;;  %v6787_v49 = vmul.f32 -1.442695, %v3342_v47  ;;  %v3343_v50 = vadd.f32 %v6752_v45, %v3296_v46 }
 0x8cc   :  { %v3298_v13 = vpop.f32.mrf.mxu0  ;;  %v3345_v24 = vadd.f32 %v6754_v23, %v3337_v48 }
 0x8cd   :  { %v3339_v14 = vpop.f32.mrf.mxu1  ;;  %7462 = vpow2.f32 %v6787_v49  ;;  %v6788_v15 = vmul.f32 -1.442695, %v3343_v50 }
 0x8ce   :  { %v3299_v21 = vpop.f32.mrf.mxu0  ;;  %v6789_v60 = vmul.f32 -1.442695, %v3345_v24 }
 0x8cf   :  { %v3340_v22 = vpop.f32.mrf.mxu1  ;;  %7464 = vpow2.f32 %v6788_v15 }
 0x8d0   :  { %7466 = vpow2.f32 %v6789_v60 }
 0x8da   :  { %v7463_v61 = vpop.eup %7462 }
 0x8db   :  { %v3349_v62 = vadd.f32 1.0, %v7463_v61 }
 0x8dc   :  { %v7465_v26 = vpop.eup %7464 }
 0x8dd   :  { %7468 = vrcp.f32 %v3349_v62  ;;  %v3355_v27 = vadd.f32 1.0, %v7465_v26  ;;  %v7467_v28 = vpop.eup %7466 }
 0x8de   :  { %7470 = vtanh.f32 %v3344_v63  ;;  %v3362_v32 = vadd.f32 1.0, %v7467_v28  ;;  %v6794_v63 = vld [vmem:[%s9355_s0 + $0x120] sm:$0xff] }
 0x8df   :  { %7472 = vrcp.f32 %v3355_v27  ;;  %v6795_v27 = vld [vmem:[%s9355_s0 + $0x128] sm:$0xff] }
 0x8e0   :  { %7474 = vrcp.f32 %v3362_v32 }
 0x8ea   :  { %v7469_v29 = vpop.eup %7468 }
 0x8eb   :  { %v7471_v30 = vpop.eup %7470 }
 0x8ec   :  { %v7473_v31 = vpop.eup %7472  ;;  %v3366_v33 = vmul.f32 %v7471_v30, %v7469_v29 }
 0x8ed   :  { %v3365_v34 = vmul.f32 %v7473_v31, %v8671_v16  ;;  %v7475_v44 = vpop.eup %7474 }
 0x8ef   :  { %v8727_v45 = vadd.f32 %v3366_v33, %v3365_v34 }
 0x8f1   :  { %7476 = vtanh.f32 %v8727_v45 }
 0x8fe   :  { %v7477_v47 = vpop.eup %7476 }
 0x8ff   :  { %v3369_v46 = vmul.f32 %v7477_v47, %v7475_v44  ;;  %v6797_v47 = vld [vmem:[%s9355_s0 + $0x138] sm:$0xff] }
 0x901   :  { %v3373_v48 = vcombine.high %v3369_v46, %v3369_v46  ;;  %v3380_v49 = vrot.slane %v3369_v46, %v7960_v42  ;;  %v3445_v50 = vpack.c.bf16 %v3369_v46, %v3369_v46 }
 0x903   :  { %v3387_v13 = vrot.slane %v3373_v48, %v7960_v42  ;;  %v3388_v14 = vcombine.high %v3380_v49, %v3380_v49  ;;  %v3396_v15 = vrot.slane %v3380_v49, %v7960_v42  ;;  %6790 = vst.sshfl [vmem:[#allocation4 + $0x8] sm:$0x1 pattern:$0x73625140] %v3380_v49  ;;  %3671 = vmatmul.mubr.bf16.vlgmr.msra.gmra.mxu0 %v3445_v50  ;;  %v6796_v48 = vld [vmem:[%s9355_s0 + $0x130] sm:$0xff] }
 0x904   :  { %3712 = vmatmul.mubr.bf16.vlgmr.msra.gmra.mxu1 %v3445_v50  ;;  %4017 = vmatpush1.bf16.msra.mxu0 %v8477_v53 }
 0x905   :  { %4058 = vmatpush1.bf16.msra.mxu1 %v8482_v54  ;;  %v3389_v16 = vcombine.high %v3387_v13, %v3387_v13  ;;  %v3403_v21 = vrot.slane %v3387_v13, %v7960_v42  ;;  %v3410_v22 = vrot.slane %v3388_v14, %v7960_v42  ;;  %v3418_v23 = vcombine.high %v3396_v15, %v3396_v15 }
 0x906   :  { %6791 = vst.sshfl [vmem:[#allocation4 + $0x18] sm:$0x1 pattern:$0x73625140] %v3388_v14  ;;  %4018 = vmatprep.subr.bf16.mxu0 %v8491_v55  ;;  %4059 = vmatprep.subr.bf16.mxu1 %v8496_v58 }
 0x907   :  { %6792 = vst.sshfl [vmem:[#allocation4 + $0x48] sm:$0x1 pattern:$0x73625140] %v3387_v13  ;;  %4048 = vmatprep.mubr.bf16.mxu0 %v7654_v2  ;;  %v3417_v24 = vrot.slane %v3389_v16, %v7960_v42  ;;  %v3419_v25 = vcombine.high %v3403_v21, %v3403_v21  ;;  %v3420_v60 = vcombine.high %v3410_v22, %v3410_v22  ;;  %3432 = vst [vmem:[#allocation4 + $0x28] sm:$0x1] %v3418_v23 }
 0x908   :  { %6793 = vst.sshfl [vmem:[#allocation4 + $0x58] sm:$0x1 pattern:$0x73625140] %v3389_v16  ;;  %4089 = vmatprep.mubr.bf16.mxu1 %v7654_v2  ;;  %4019 = vmatpush1.bf16.msra.mxu0 %v8501_v56 }
 0x909   :  { %4060 = vmatpush1.bf16.msra.mxu1 %v8506_v20  ;;  %v3421_v61 = vcombine.high %v3417_v24, %v3417_v24  ;;  %3433 = vst [vmem:[#allocation4 + $0x38] sm:$0x1] %v3420_v60  ;;  %3436 = vst [vmem:[#allocation4 + $0x68] sm:$0x1] %v3419_v25  ;;  %4020 = vmatprep.subr.bf16.mxu0 %v8515_v35 }
 0x90a   :  { %4061 = vmatprep.subr.bf16.mxu1 %v8520_v57 }
 0x90b   :  { %3437 = vst [vmem:[#allocation4 + $0x78] sm:$0x1] %v3421_v61 }
 0x90c   :  { %4021 = vmatpush1.bf16.msra.mxu0 %v8525_v59 }
 0x90d   :  { %4062 = vmatpush1.bf16.msra.mxu1 %v8530_v36  ;;  %4022 = vmatprep.subr.bf16.mxu0 %v8539_v37 }
 0x90e   :  { %4063 = vmatprep.subr.bf16.mxu1 %v8544_v38 }
 0x910   :  { %4023 = vmatpush1.bf16.msra.mxu0 %v8549_v17 }
 0x911   :  { %4064 = vmatpush1.bf16.msra.mxu1 %v8554_v39  ;;  %4024 = vmatprep.subr.bf16.mxu0 %v8568_v18 }
 0x912   :  { %4065 = vmatprep.subr.bf16.mxu1 %v8578_v43 }
 0x914   :  { %4025 = vmatpush1.bf16.msra.mxu0 %v8563_v0 }
 0x915   :  { %4066 = vmatpush1.bf16.msra.mxu1 %v8573_v41  ;;  %4026 = vmatprep.subr.bf16.mxu0 %v8583_v1 }
 0x916   :  { %4067 = vmatprep.subr.bf16.mxu1 %v8589_v19 }
 0x918   :  { %4027 = vmatpush1.bf16.msra.mxu0 %v8597_v3 }
 0x919   :  { %4068 = vmatpush1.bf16.msra.mxu1 %v8602_v4  ;;  %4028 = vmatprep.subr.bf16.mxu0 %v8609_v5 }
 0x91a   :  { %4069 = vmatprep.subr.bf16.mxu1 %v8614_v6 }
 0x91c   :  { %4029 = vmatpush1.bf16.msra.mxu0 %v8621_v7 }
 0x91d   :  { %4070 = vmatpush1.bf16.msra.mxu1 %v8626_v8  ;;  %4030 = vmatprep.subr.bf16.mxu0 %v8633_v9 }
 0x91e   :  { %4071 = vmatprep.subr.bf16.mxu1 %v8638_v10 }
 0x920   :  { %4031 = vmatpush1.bf16.msra.mxu0 %v8645_v11 }
 0x921   :  { %4072 = vmatpush1.bf16.msra.mxu1 %v8650_v12  ;;  %4394 = vmatprep.subr.bf16.mxu0 %v8467_v51 }
 0x922   :  { %4435 = vmatprep.subr.bf16.mxu1 %v8472_v52 }
 0x9c3   :  { %v3672_v62 = vpop.f32.mrf.mxu0 }
 0x9c4   :  { %v3713_v26 = vpop.f32.mrf.mxu1  ;;  %v3720_v28 = vadd.f32 %v6794_v63, %v3672_v62 }
 0x9c5   :  { %v3674_v29 = vpop.f32.mrf.mxu0  ;;  %v3722_v13 = vadd.f32 %v6796_v48, %v3713_v26 }
 0x9c6   :  { %v3715_v30 = vpop.f32.mrf.mxu1  ;;  %v6830_v31 = vmul.f32 -1.442695, %v3720_v28  ;;  %v3721_v32 = vadd.f32 %v6795_v27, %v3674_v29 }
 0x9c7   :  { %v3676_v33 = vpop.f32.mrf.mxu0  ;;  %v3723_v46 = vadd.f32 %v6797_v47, %v3715_v30 }
 0x9c8   :  { %v3717_v34 = vpop.f32.mrf.mxu1  ;;  %7478 = vpow2.f32 %v6830_v31  ;;  %v6831_v51 = vmul.f32 -1.442695, %v3721_v32 }
 0x9c9   :  { %v3677_v52 = vpop.f32.mrf.mxu0  ;;  %v6832_v49 = vmul.f32 -1.442695, %v3723_v46 }
 0x9ca   :  { %v3718_v44 = vpop.f32.mrf.mxu1  ;;  %7480 = vpow2.f32 %v6831_v51 }
 0x9cb   :  { %7482 = vpow2.f32 %v6832_v49 }
 0x9d5   :  { %v7479_v50 = vpop.eup %7478 }
 0x9d6   :  { %v3727_v14 = vadd.f32 1.0, %v7479_v50 }
 0x9d7   :  { %v7481_v15 = vpop.eup %7480 }
 0x9d8   :  { %7484 = vrcp.f32 %v3727_v14  ;;  %v3733_v16 = vadd.f32 1.0, %v7481_v15  ;;  %v7483_v21 = vpop.eup %7482 }
 0x9d9   :  { %7486 = vtanh.f32 %v3722_v13  ;;  %v3740_v25 = vadd.f32 1.0, %v7483_v21 }
 0x9da   :  { %7488 = vrcp.f32 %v3733_v16 }
 0x9db   :  { %7490 = vrcp.f32 %v3740_v25 }
 0x9e5   :  { %v7485_v22 = vpop.eup %7484 }
 0x9e6   :  { %v7487_v23 = vpop.eup %7486 }
 0x9e7   :  { %v7489_v24 = vpop.eup %7488  ;;  %v3744_v60 = vmul.f32 %v7487_v23, %v7485_v22 }
 0x9e8   :  { %v3743_v61 = vmul.f32 %v7489_v24, %v8727_v45  ;;  %v7491_v62 = vpop.eup %7490 }
 0x9ea   :  { %v8783_v63 = vadd.f32 %v3744_v60, %v3743_v61 }
 0x9ec   :  { %7492 = vtanh.f32 %v8783_v63 }
 0x9f9   :  { %v7493_v26 = vpop.eup %7492 }
 0x9fa   :  { %v3747_v27 = vmul.f32 %v7493_v26, %v7491_v62 }
 0x9fc   :  { %v3751_v28 = vcombine.high %v3747_v27, %v3747_v27  ;;  %v3758_v29 = vrot.slane %v3747_v27, %v7960_v42  ;;  %v3823_v30 = vpack.c.bf16 %v3747_v27, %v3747_v27 }
 0x9fe   :  { %v3765_v31 = vrot.slane %v3751_v28, %v7960_v42  ;;  %v3766_v32 = vcombine.high %v3758_v29, %v3758_v29  ;;  %v3774_v33 = vrot.slane %v3758_v29, %v7960_v42  ;;  %6833 = vst.sshfl [vmem:[#allocation4 + $0x9] sm:$0x1 pattern:$0x73625140] %v3758_v29  ;;  %4049 = vmatmul.mubr.bf16.vlgmr.msra.gmra.mxu0 %v3823_v30  ;;  %v8851_v29 = vld [vmem:[%s9358_s3 + $0xe4] ss:$16 sps:$4 sm:$0xff]  }
 0x9ff   :  { %4090 = vmatmul.mubr.bf16.vlgmr.msra.gmra.mxu1 %v3823_v30  ;;  %4395 = vmatpush1.bf16.msra.mxu0 %v8477_v53  ;;  %v8856_v30 = vld [vmem:[%s9358_s3 + $0xec] ss:$16 sps:$4 sm:$0xff]  }
 0xa00   :  { %4436 = vmatpush1.bf16.msra.mxu1 %v8482_v54  ;;  %v3767_v45 = vcombine.high %v3765_v31, %v3765_v31  ;;  %v3781_v34 = vrot.slane %v3765_v31, %v7960_v42  ;;  %v3788_v51 = vrot.slane %v3766_v32, %v7960_v42  ;;  %v3796_v52 = vcombine.high %v3774_v33, %v3774_v33  ;;  %v8875_v33 = vld [vmem:[%s9358_s3 + $0xc4] ss:$16 sps:$4 sm:$0xff]  }
 0xa01   :  { %6834 = vst.sshfl [vmem:[#allocation4 + $0x19] sm:$0x1 pattern:$0x73625140] %v3766_v32  ;;  %4396 = vmatprep.subr.bf16.mxu0 %v8491_v55  ;;  %4437 = vmatprep.subr.bf16.mxu1 %v8496_v58  ;;  %v6837_v55 = vld [vmem:[%s9355_s0 + $0x140] sm:$0xff] }
 0xa02   :  { %6835 = vst.sshfl [vmem:[#allocation4 + $0x49] sm:$0x1 pattern:$0x73625140] %v3765_v31  ;;  %4426 = vmatprep.mubr.bf16.mxu0 %v7654_v2  ;;  %v3795_v44 = vrot.slane %v3767_v45, %v7960_v42  ;;  %v3797_v47 = vcombine.high %v3781_v34, %v3781_v34  ;;  %v3798_v53 = vcombine.high %v3788_v51, %v3788_v51  ;;  %3810 = vst [vmem:[#allocation4 + $0x29] sm:$0x1] %v3796_v52 }
 0xa03   :  { %6836 = vst.sshfl [vmem:[#allocation4 + $0x59] sm:$0x1 pattern:$0x73625140] %v3767_v45  ;;  %4467 = vmatprep.mubr.bf16.mxu1 %v7654_v2  ;;  %4397 = vmatpush1.bf16.msra.mxu0 %v8501_v56  ;;  %v8861_v31 = vld [vmem:[%s9358_s3 + $0xe0] ss:$16 sps:$4 sm:$0xff]  }
 0xa04   :  { %4438 = vmatpush1.bf16.msra.mxu1 %v8506_v20  ;;  %v3799_v54 = vcombine.high %v3795_v44, %v3795_v44  ;;  %3811 = vst [vmem:[#allocation4 + $0x39] sm:$0x1] %v3798_v53  ;;  %3814 = vst [vmem:[#allocation4 + $0x69] sm:$0x1] %v3797_v47  ;;  %4398 = vmatprep.subr.bf16.mxu0 %v8515_v35  ;;  %v6838_v20 = vld [vmem:[%s9355_s0 + $0x148] sm:$0xff] }
 0xa05   :  { %4439 = vmatprep.subr.bf16.mxu1 %v8520_v57  ;;  %v8866_v32 = vld [vmem:[%s9358_s3 + $0xe8] ss:$16 sps:$4 sm:$0xff]   ;;  %v8880_v45 = vld [vmem:[%s9358_s3 + $0xcc] ss:$16 sps:$4 sm:$0xff]   ;;  %v8885_v34 = vld [vmem:[%s9358_s3 + $0xc0] ss:$16 sps:$4 sm:$0xff]  }
 0xa06   :  { %3815 = vst [vmem:[#allocation4 + $0x79] sm:$0x1] %v3799_v54  ;;  %v8890_v51 = vld [vmem:[%s9358_s3 + $0xc8] ss:$16 sps:$4 sm:$0xff]   ;;  %v8899_v52 = vld [vmem:[%s9358_s3 + $0xa4] ss:$16 sps:$4 sm:$0xff]  }
 0xa07   :  { %4399 = vmatpush1.bf16.msra.mxu0 %v8525_v59  ;;  %v8904_v44 = vld [vmem:[%s9358_s3 + $0xac] ss:$16 sps:$4 sm:$0xff]   ;;  %v8909_v47 = vld [vmem:[%s9358_s3 + $0xa0] ss:$16 sps:$4 sm:$0xff]   ;;  %v8914_v53 = vld [vmem:[%s9358_s3 + $0xa8] ss:$16 sps:$4 sm:$0xff]  }
 0xa08   :  { %4440 = vmatpush1.bf16.msra.mxu1 %v8530_v36  ;;  %4400 = vmatprep.subr.bf16.mxu0 %v8539_v37  ;;  %v8923_v54 = vld [vmem:[%s9358_s3 + $0x84] ss:$16 sps:$4 sm:$0xff]  }
 0xa09   :  { %4441 = vmatprep.subr.bf16.mxu1 %v8544_v38 }
 0xa0b   :  { %4401 = vmatpush1.bf16.msra.mxu0 %v8549_v17 }
 0xa0c   :  { %4442 = vmatpush1.bf16.msra.mxu1 %v8554_v39  ;;  %4402 = vmatprep.subr.bf16.mxu0 %v8568_v18 }
 0xa0d   :  { %4443 = vmatprep.subr.bf16.mxu1 %v8578_v43 }
 0xa0f   :  { %4403 = vmatpush1.bf16.msra.mxu0 %v8563_v0 }
 0xa10   :  { %4444 = vmatpush1.bf16.msra.mxu1 %v8573_v41  ;;  %4404 = vmatprep.subr.bf16.mxu0 %v8583_v1  ;;  %v6840_v41 = vld [vmem:[%s9355_s0 + $0x158] sm:$0xff]  ;;  %v6839_v1 = vld [vmem:[%s9355_s0 + $0x150] sm:$0xff] }
 0xa11   :  { %4445 = vmatprep.subr.bf16.mxu1 %v8589_v19 }
 0xa13   :  { %4405 = vmatpush1.bf16.msra.mxu0 %v8597_v3 }
 0xa14   :  { %4446 = vmatpush1.bf16.msra.mxu1 %v8602_v4  ;;  %4406 = vmatprep.subr.bf16.mxu0 %v8609_v5 }
 0xa15   :  { %4447 = vmatprep.subr.bf16.mxu1 %v8614_v6 }
 0xa17   :  { %4407 = vmatpush1.bf16.msra.mxu0 %v8621_v7 }
 0xa18   :  { %4448 = vmatpush1.bf16.msra.mxu1 %v8626_v8  ;;  %4408 = vmatprep.subr.bf16.mxu0 %v8633_v9 }
 0xa19   :  { %4449 = vmatprep.subr.bf16.mxu1 %v8638_v10 }
 0xa1b   :  { %4409 = vmatpush1.bf16.msra.mxu0 %v8645_v11 }
 0xa1c   :  { %4450 = vmatpush1.bf16.msra.mxu1 %v8650_v12  ;;  %4772 = vmatprep.subr.bf16.mxu0 %v8851_v29 }
 0xa1d   :  { %4813 = vmatprep.subr.bf16.mxu1 %v8856_v30 }
 0xabe   :  { %v4050_v58 = vpop.f32.mrf.mxu0 }
 0xabf   :  { %v4091_v56 = vpop.f32.mrf.mxu1  ;;  %v4098_v35 = vadd.f32 %v6837_v55, %v4050_v58  ;;  %v8928_v55 = vld [vmem:[%s9358_s3 + $0x8c] ss:$16 sps:$4 sm:$0xff]   ;;  %v8933_v58 = vld [vmem:[%s9358_s3 + $0x80] ss:$16 sps:$4 sm:$0xff]  }
 0xac0   :  { %v4052_v57 = vpop.f32.mrf.mxu0  ;;  %v4100_v4 = vadd.f32 %v6839_v1, %v4091_v56  ;;  %v8938_v56 = vld [vmem:[%s9358_s3 + $0x88] ss:$16 sps:$4 sm:$0xff]   ;;  %v9022_v1 = vld [vmem:[%s9358_s3 + $0xc] ss:$16 sps:$4 sm:$0xff]  }
 0xac1   :  { %v4093_v59 = vpop.f32.mrf.mxu1  ;;  %v6873_v36 = vmul.f32 -1.442695, %v4098_v35  ;;  %v4099_v37 = vadd.f32 %v6838_v20, %v4052_v57  ;;  %v8947_v20 = vld [vmem:[%s9358_s3 + $0x60] ss:$16 sps:$4 sm:$0xff]   ;;  %v8952_v35 = vld [vmem:[%s9358_s3 + $0x64] ss:$16 sps:$4 sm:$0xff]  }
 0xac2   :  { %v4054_v38 = vpop.f32.mrf.mxu0  ;;  %v4101_v43 = vadd.f32 %v6840_v41, %v4093_v59  ;;  %v8957_v57 = vld [vmem:[%s9358_s3 + $0x68] ss:$16 sps:$4 sm:$0xff]   ;;  %v8962_v59 = vld [vmem:[%s9358_s3 + $0x6c] ss:$16 sps:$4 sm:$0xff]  }
 0xac3   :  { %v4095_v17 = vpop.f32.mrf.mxu1  ;;  %7494 = vpow2.f32 %v6873_v36  ;;  %v6874_v39 = vmul.f32 -1.442695, %v4099_v37  ;;  %v8967_v36 = vld [vmem:[%s9358_s3 + $0x44] ss:$16 sps:$4 sm:$0xff]   ;;  %v8973_v37 = vld [vmem:[%s9358_s3 + $0x4c] ss:$16 sps:$4 sm:$0xff]  }
 0xac4   :  { %v4055_v0 = vpop.f32.mrf.mxu0  ;;  %v6875_v19 = vmul.f32 -1.442695, %v4101_v43  ;;  %v8981_v38 = vld [vmem:[%s9358_s3 + $0x40] ss:$16 sps:$4 sm:$0xff]   ;;  %v8986_v17 = vld [vmem:[%s9358_s3 + $0x48] ss:$16 sps:$4 sm:$0xff]  }
 0xac5   :  { %v4096_v18 = vpop.f32.mrf.mxu1  ;;  %7496 = vpow2.f32 %v6874_v39  ;;  %v8993_v39 = vld [vmem:[%s9358_s3 + $0x24] ss:$16 sps:$4 sm:$0xff]   ;;  %v8998_v0 = vld [vmem:[%s9358_s3 + $0x2c] ss:$16 sps:$4 sm:$0xff]   ;;  %v9010_v41 = vld [vmem:[%s9358_s3 + $0x28] ss:$16 sps:$4 sm:$0xff]  }
 0xac6   :  { %7498 = vpow2.f32 %v6875_v19  ;;  %v9005_v18 = vld [vmem:[%s9358_s3 + $0x20] ss:$16 sps:$4 sm:$0xff]   ;;  %v9017_v43 = vld [vmem:[%s9358_s3 + $0x4] ss:$16 sps:$4 sm:$0xff]  }
 0xac7   :  { %v9029_v19 = vld [vmem:[%s9358_s3] ss:$16 sps:$4 sm:$0xff]  }
 0xad0   :  { %v7495_v3 = vpop.eup %7494 }
 0xad1   :  { %v4105_v5 = vadd.f32 1.0, %v7495_v3  ;;  %v9034_v3 = vld [vmem:[%s9358_s3 + $0x8] ss:$16 sps:$4 sm:$0xff]  }
 0xad2   :  { %v7497_v6 = vpop.eup %7496 }
 0xad3   :  { %7500 = vrcp.f32 %v4105_v5  ;;  %v4111_v7 = vadd.f32 1.0, %v7497_v6  ;;  %v7499_v8 = vpop.eup %7498 }
 0xad4   :  { %7502 = vtanh.f32 %v4100_v4  ;;  %v4118_v12 = vadd.f32 1.0, %v7499_v8  ;;  %v6880_v4 = vld [vmem:[%s9355_s0 + $0x160] sm:$0xff] }
 0xad5   :  { %7504 = vrcp.f32 %v4111_v7  ;;  %v6881_v7 = vld [vmem:[%s9355_s0 + $0x168] sm:$0xff] }
 0xad6   :  { %7506 = vrcp.f32 %v4118_v12 }
 0xae0   :  { %v7501_v9 = vpop.eup %7500 }
 0xae1   :  { %v7503_v10 = vpop.eup %7502 }
 0xae2   :  { %v7505_v11 = vpop.eup %7504  ;;  %v4122_v46 = vmul.f32 %v7503_v10, %v7501_v9 }
 0xae3   :  { %v4121_v48 = vmul.f32 %v7505_v11, %v8783_v63  ;;  %v7507_v50 = vpop.eup %7506 }
 0xae5   :  { %v8837_v49 = vadd.f32 %v4122_v46, %v4121_v48 }
 0xae7   :  { %7508 = vtanh.f32 %v8837_v49 }
 0xaf4   :  { %v7509_v13 = vpop.eup %7508 }
 0xaf5   :  { %v4125_v14 = vmul.f32 %v7509_v13, %v7507_v50 }
 0xaf7   :  { %v4129_v15 = vcombine.high %v4125_v14, %v4125_v14  ;;  %v4136_v16 = vrot.slane %v4125_v14, %v7960_v42  ;;  %v4201_v21 = vpack.c.bf16 %v4125_v14, %v4125_v14 }
 0xaf9   :  { %v4143_v22 = vrot.slane %v4129_v15, %v7960_v42  ;;  %v4144_v23 = vcombine.high %v4136_v16, %v4136_v16  ;;  %v4152_v24 = vrot.slane %v4136_v16, %v7960_v42  ;;  %6876 = vst.sshfl [vmem:[#allocation4 + $0xa] sm:$0x1 pattern:$0x73625140] %v4136_v16  ;;  %4427 = vmatmul.mubr.bf16.vlgmr.msra.gmra.mxu0 %v4201_v21  ;;  %v6883_v15 = vld [vmem:[%s9355_s0 + $0x178] sm:$0xff] }
 0xafa   :  { %4468 = vmatmul.mubr.bf16.vlgmr.msra.gmra.mxu1 %v4201_v21  ;;  %4804 = vmatprep.mubr.bf16.mxu0 %v7654_v2  ;;  %v6882_v21 = vld [vmem:[%s9355_s0 + $0x170] sm:$0xff] }
 0xafb   :  { %4845 = vmatprep.mubr.bf16.mxu1 %v7654_v2  ;;  %v4145_v25 = vcombine.high %v4143_v22, %v4143_v22  ;;  %v4159_v60 = vrot.slane %v4143_v22, %v7960_v42  ;;  %v4166_v61 = vrot.slane %v4144_v23, %v7960_v42  ;;  %v4174_v63 = vcombine.high %v4152_v24, %v4152_v24 }
 0xafc   :  { %6877 = vst.sshfl [vmem:[#allocation4 + $0x1a] sm:$0x1 pattern:$0x73625140] %v4144_v23  ;;  %4773 = vmatpush1.bf16.msra.mxu0 %v8861_v31  ;;  %4814 = vmatpush1.bf16.msra.mxu1 %v8866_v32 }
 0xafd   :  { %6878 = vst.sshfl [vmem:[#allocation4 + $0x4a] sm:$0x1 pattern:$0x73625140] %v4143_v22  ;;  %v4173_v62 = vrot.slane %v4145_v25, %v7960_v42  ;;  %v4175_v26 = vcombine.high %v4159_v60, %v4159_v60  ;;  %v4176_v27 = vcombine.high %v4166_v61, %v4166_v61  ;;  %4188 = vst [vmem:[#allocation4 + $0x2a] sm:$0x1] %v4174_v63  ;;  %4774 = vmatprep.subr.bf16.mxu0 %v8875_v33 }
 0xafe   :  { %6879 = vst.sshfl [vmem:[#allocation4 + $0x5a] sm:$0x1 pattern:$0x73625140] %v4145_v25  ;;  %4815 = vmatprep.subr.bf16.mxu1 %v8880_v45 }
 0xaff   :  { %v4177_v28 = vcombine.high %v4173_v62, %v4173_v62  ;;  %4189 = vst [vmem:[#allocation4 + $0x3a] sm:$0x1] %v4176_v27  ;;  %4192 = vst [vmem:[#allocation4 + $0x6a] sm:$0x1] %v4175_v26 }
 0xb00   :  { %4775 = vmatpush1.bf16.msra.mxu0 %v8885_v34  ;;  %4816 = vmatpush1.bf16.msra.mxu1 %v8890_v51 }
 0xb01   :  { %4193 = vst [vmem:[#allocation4 + $0x7a] sm:$0x1] %v4177_v28  ;;  %4776 = vmatprep.subr.bf16.mxu0 %v8899_v52  ;;  %4817 = vmatprep.subr.bf16.mxu1 %v8904_v44 }
 0xb04   :  { %4777 = vmatpush1.bf16.msra.mxu0 %v8909_v47  ;;  %4818 = vmatpush1.bf16.msra.mxu1 %v8914_v53 }
 0xb05   :  { %4778 = vmatprep.subr.bf16.mxu0 %v8923_v54  ;;  %4819 = vmatprep.subr.bf16.mxu1 %v8928_v55 }
 0xb08   :  { %4779 = vmatpush1.bf16.msra.mxu0 %v8933_v58  ;;  %4820 = vmatpush1.bf16.msra.mxu1 %v8938_v56 }
 0xb09   :  { %4780 = vmatprep.subr.bf16.mxu0 %v8952_v35  ;;  %4821 = vmatprep.subr.bf16.mxu1 %v8962_v59 }
 0xb0c   :  { %4781 = vmatpush1.bf16.msra.mxu0 %v8947_v20  ;;  %4822 = vmatpush1.bf16.msra.mxu1 %v8957_v57 }
 0xb0d   :  { %4782 = vmatprep.subr.bf16.mxu0 %v8967_v36  ;;  %4823 = vmatprep.subr.bf16.mxu1 %v8973_v37 }
 0xb10   :  { %4783 = vmatpush1.bf16.msra.mxu0 %v8981_v38  ;;  %4824 = vmatpush1.bf16.msra.mxu1 %v8986_v17 }
 0xb11   :  { %4784 = vmatprep.subr.bf16.mxu0 %v8993_v39  ;;  %4825 = vmatprep.subr.bf16.mxu1 %v8998_v0 }
 0xb14   :  { %4785 = vmatpush1.bf16.msra.mxu0 %v9005_v18  ;;  %4826 = vmatpush1.bf16.msra.mxu1 %v9010_v41 }
 0xb15   :  { %4786 = vmatprep.subr.bf16.mxu0 %v9017_v43  ;;  %4827 = vmatprep.subr.bf16.mxu1 %v9022_v1 }
 0xb18   :  { %4787 = vmatpush1.bf16.msra.mxu0 %v9029_v19  ;;  %4828 = vmatpush1.bf16.msra.mxu1 %v9034_v3 }
 0xb19   :  { %5150 = vmatprep.subr.bf16.mxu0 %v8851_v29  ;;  %5191 = vmatprep.subr.bf16.mxu1 %v8856_v30 }
 0xbb9   :  { %v4428_v5 = vpop.f32.mrf.mxu0 }
 0xbba   :  { %v4469_v6 = vpop.f32.mrf.mxu1  ;;  %v4476_v8 = vadd.f32 %v6880_v4, %v4428_v5 }
 0xbbb   :  { %v4430_v9 = vpop.f32.mrf.mxu0  ;;  %v4478_v24 = vadd.f32 %v6882_v21, %v4469_v6 }
 0xbbc   :  { %v4471_v10 = vpop.f32.mrf.mxu1  ;;  %v6916_v11 = vmul.f32 -1.442695, %v4476_v8  ;;  %v4477_v12 = vadd.f32 %v6881_v7, %v4430_v9 }
 0xbbd   :  { %v4432_v46 = vpop.f32.mrf.mxu0  ;;  %v4479_v16 = vadd.f32 %v6883_v15, %v4471_v10 }
 0xbbe   :  { %v4473_v48 = vpop.f32.mrf.mxu1  ;;  %7510 = vpow2.f32 %v6916_v11  ;;  %v6917_v50 = vmul.f32 -1.442695, %v4477_v12 }
 0xbbf   :  { %v4433_v13 = vpop.f32.mrf.mxu0  ;;  %v6918_v22 = vmul.f32 -1.442695, %v4479_v16 }
 0xbc0   :  { %v4474_v14 = vpop.f32.mrf.mxu1  ;;  %7512 = vpow2.f32 %v6917_v50 }
 0xbc1   :  { %7514 = vpow2.f32 %v6918_v22 }
 0xbcb   :  { %v7511_v23 = vpop.eup %7510 }
 0xbcc   :  { %v4483_v25 = vadd.f32 1.0, %v7511_v23 }
 0xbcd   :  { %v7513_v60 = vpop.eup %7512 }
 0xbce   :  { %7516 = vrcp.f32 %v4483_v25  ;;  %v4489_v61 = vadd.f32 1.0, %v7513_v60  ;;  %v7515_v63 = vpop.eup %7514 }
 0xbcf   :  { %7518 = vtanh.f32 %v4478_v24  ;;  %v4496_v28 = vadd.f32 1.0, %v7515_v63  ;;  %v6923_v24 = vld [vmem:[%s9355_s0 + $0x180] sm:$0xff] }
 0xbd0   :  { %7520 = vrcp.f32 %v4489_v61  ;;  %v6924_v61 = vld [vmem:[%s9355_s0 + $0x188] sm:$0xff] }
 0xbd1   :  { %7522 = vrcp.f32 %v4496_v28 }
 0xbdb   :  { %v7517_v62 = vpop.eup %7516 }
 0xbdc   :  { %v7519_v26 = vpop.eup %7518 }
 0xbdd   :  { %v7521_v27 = vpop.eup %7520  ;;  %v4500_v4 = vmul.f32 %v7519_v26, %v7517_v62 }
 0xbde   :  { %v4499_v5 = vmul.f32 %v7521_v27, %v8837_v49  ;;  %v7523_v6 = vpop.eup %7522 }
 0xbe0   :  { %v9055_v7 = vadd.f32 %v4500_v4, %v4499_v5 }
 0xbe2   :  { %7524 = vtanh.f32 %v9055_v7 }
 0xbef   :  { %v7525_v8 = vpop.eup %7524 }
 0xbf0   :  { %v4503_v9 = vmul.f32 %v7525_v8, %v7523_v6 }
 0xbf2   :  { %v4507_v10 = vcombine.high %v4503_v9, %v4503_v9  ;;  %v4514_v11 = vrot.slane %v4503_v9, %v7960_v42  ;;  %v4579_v12 = vpack.c.bf16 %v4503_v9, %v4503_v9 }
 0xbf4   :  { %v4521_v46 = vrot.slane %v4507_v10, %v7960_v42  ;;  %v4522_v48 = vcombine.high %v4514_v11, %v4514_v11  ;;  %v4530_v50 = vrot.slane %v4514_v11, %v7960_v42  ;;  %6919 = vst.sshfl [vmem:[#allocation4 + $0xb] sm:$0x1 pattern:$0x73625140] %v4514_v11  ;;  %4805 = vmatmul.mubr.bf16.vlgmr.msra.gmra.mxu0 %v4579_v12  ;;  %v6926_v10 = vld [vmem:[%s9355_s0 + $0x198] sm:$0xff] }
 0xbf5   :  { %4846 = vmatmul.mubr.bf16.vlgmr.msra.gmra.mxu1 %v4579_v12  ;;  %5151 = vmatpush1.bf16.msra.mxu0 %v8861_v31  ;;  %v6925_v12 = vld [vmem:[%s9355_s0 + $0x190] sm:$0xff] }
 0xbf6   :  { %5192 = vmatpush1.bf16.msra.mxu1 %v8866_v32  ;;  %v4523_v49 = vcombine.high %v4521_v46, %v4521_v46  ;;  %v4537_v13 = vrot.slane %v4521_v46, %v7960_v42  ;;  %v4544_v14 = vrot.slane %v4522_v48, %v7960_v42  ;;  %v4552_v15 = vcombine.high %v4530_v50, %v4530_v50 }
 0xbf7   :  { %6920 = vst.sshfl [vmem:[#allocation4 + $0x1b] sm:$0x1 pattern:$0x73625140] %v4522_v48  ;;  %5152 = vmatprep.subr.bf16.mxu0 %v8875_v33  ;;  %5193 = vmatprep.subr.bf16.mxu1 %v8880_v45 }
 0xbf8   :  { %6921 = vst.sshfl [vmem:[#allocation4 + $0x4b] sm:$0x1 pattern:$0x73625140] %v4521_v46  ;;  %5182 = vmatprep.mubr.bf16.mxu0 %v7654_v2  ;;  %v4551_v16 = vrot.slane %v4523_v49, %v7960_v42  ;;  %v4553_v21 = vcombine.high %v4537_v13, %v4537_v13  ;;  %v4554_v22 = vcombine.high %v4544_v14, %v4544_v14  ;;  %4566 = vst [vmem:[#allocation4 + $0x2b] sm:$0x1] %v4552_v15 }
 0xbf9   :  { %6922 = vst.sshfl [vmem:[#allocation4 + $0x5b] sm:$0x1 pattern:$0x73625140] %v4523_v49  ;;  %5223 = vmatprep.mubr.bf16.mxu1 %v7654_v2  ;;  %5153 = vmatpush1.bf16.msra.mxu0 %v8885_v34 }
 0xbfa   :  { %5194 = vmatpush1.bf16.msra.mxu1 %v8890_v51  ;;  %v4555_v23 = vcombine.high %v4551_v16, %v4551_v16  ;;  %4567 = vst [vmem:[#allocation4 + $0x3b] sm:$0x1] %v4554_v22  ;;  %4570 = vst [vmem:[#allocation4 + $0x6b] sm:$0x1] %v4553_v21  ;;  %5154 = vmatprep.subr.bf16.mxu0 %v8899_v52 }
 0xbfb   :  { %5195 = vmatprep.subr.bf16.mxu1 %v8904_v44 }
 0xbfc   :  { %4571 = vst [vmem:[#allocation4 + $0x7b] sm:$0x1] %v4555_v23 }
 0xbfd   :  { %5155 = vmatpush1.bf16.msra.mxu0 %v8909_v47 }
 0xbfe   :  { %5196 = vmatpush1.bf16.msra.mxu1 %v8914_v53  ;;  %5156 = vmatprep.subr.bf16.mxu0 %v8923_v54 }
 0xbff   :  { %5197 = vmatprep.subr.bf16.mxu1 %v8928_v55 }
 0xc01   :  { %5157 = vmatpush1.bf16.msra.mxu0 %v8933_v58 }
 0xc02   :  { %5198 = vmatpush1.bf16.msra.mxu1 %v8938_v56  ;;  %5158 = vmatprep.subr.bf16.mxu0 %v8952_v35 }
 0xc03   :  { %5199 = vmatprep.subr.bf16.mxu1 %v8962_v59 }
 0xc05   :  { %5159 = vmatpush1.bf16.msra.mxu0 %v8947_v20 }
 0xc06   :  { %5200 = vmatpush1.bf16.msra.mxu1 %v8957_v57  ;;  %5160 = vmatprep.subr.bf16.mxu0 %v8967_v36 }
 0xc07   :  { %5201 = vmatprep.subr.bf16.mxu1 %v8973_v37 }
 0xc09   :  { %5161 = vmatpush1.bf16.msra.mxu0 %v8981_v38 }
 0xc0a   :  { %5202 = vmatpush1.bf16.msra.mxu1 %v8986_v17  ;;  %5162 = vmatprep.subr.bf16.mxu0 %v8993_v39 }
 0xc0b   :  { %5203 = vmatprep.subr.bf16.mxu1 %v8998_v0 }
 0xc0d   :  { %5163 = vmatpush1.bf16.msra.mxu0 %v9005_v18 }
 0xc0e   :  { %5204 = vmatpush1.bf16.msra.mxu1 %v9010_v41  ;;  %5164 = vmatprep.subr.bf16.mxu0 %v9017_v43 }
 0xc0f   :  { %5205 = vmatprep.subr.bf16.mxu1 %v9022_v1 }
 0xc11   :  { %5165 = vmatpush1.bf16.msra.mxu0 %v9029_v19 }
 0xc12   :  { %5206 = vmatpush1.bf16.msra.mxu1 %v9034_v3  ;;  %5528 = vmatprep.subr.bf16.mxu0 %v8851_v29 }
 0xc13   :  { %5569 = vmatprep.subr.bf16.mxu1 %v8856_v30 }
 0xcb4   :  { %v4806_v25 = vpop.f32.mrf.mxu0 }
 0xcb5   :  { %v4847_v60 = vpop.f32.mrf.mxu1  ;;  %v4854_v63 = vadd.f32 %v6923_v24, %v4806_v25 }
 0xcb6   :  { %v4808_v62 = vpop.f32.mrf.mxu0  ;;  %v4856_v50 = vadd.f32 %v6925_v12, %v4847_v60 }
 0xcb7   :  { %v4849_v26 = vpop.f32.mrf.mxu1  ;;  %v6959_v27 = vmul.f32 -1.442695, %v4854_v63  ;;  %v4855_v28 = vadd.f32 %v6924_v61, %v4808_v62 }
 0xcb8   :  { %v4810_v4 = vpop.f32.mrf.mxu0  ;;  %v4857_v11 = vadd.f32 %v6926_v10, %v4849_v26 }
 0xcb9   :  { %v4851_v5 = vpop.f32.mrf.mxu1  ;;  %7526 = vpow2.f32 %v6959_v27  ;;  %v6960_v6 = vmul.f32 -1.442695, %v4855_v28 }
 0xcba   :  { %v4811_v8 = vpop.f32.mrf.mxu0  ;;  %v6961_v46 = vmul.f32 -1.442695, %v4857_v11 }
 0xcbb   :  { %v4852_v9 = vpop.f32.mrf.mxu1  ;;  %7528 = vpow2.f32 %v6960_v6 }
 0xcbc   :  { %7530 = vpow2.f32 %v6961_v46 }
 0xcc6   :  { %v7527_v48 = vpop.eup %7526 }
 0xcc7   :  { %v4861_v49 = vadd.f32 1.0, %v7527_v48 }
 0xcc8   :  { %v7529_v13 = vpop.eup %7528 }
 0xcc9   :  { %7532 = vrcp.f32 %v4861_v49  ;;  %v4867_v14 = vadd.f32 1.0, %v7529_v13  ;;  %v7531_v15 = vpop.eup %7530 }
 0xcca   :  { %7534 = vtanh.f32 %v4856_v50  ;;  %v4874_v23 = vadd.f32 1.0, %v7531_v15  ;;  %v6966_v50 = vld [vmem:[%s9355_s0 + $0x1a0] sm:$0xff] }
 0xccb   :  { %7536 = vrcp.f32 %v4867_v14  ;;  %v6967_v14 = vld [vmem:[%s9355_s0 + $0x1a8] sm:$0xff] }
 0xccc   :  { %7538 = vrcp.f32 %v4874_v23 }
 0xcd6   :  { %v7533_v16 = vpop.eup %7532 }
 0xcd7   :  { %v7535_v21 = vpop.eup %7534 }
 0xcd8   :  { %v7537_v22 = vpop.eup %7536  ;;  %v4878_v24 = vmul.f32 %v7535_v21, %v7533_v16 }
 0xcd9   :  { %v4877_v25 = vmul.f32 %v7537_v22, %v9055_v7  ;;  %v7539_v60 = vpop.eup %7538 }
 0xcdb   :  { %v9111_v61 = vadd.f32 %v4878_v24, %v4877_v25 }
 0xcdd   :  { %7540 = vtanh.f32 %v9111_v61 }
 0xcea   :  { %v7541_v63 = vpop.eup %7540 }
 0xceb   :  { %v4881_v62 = vmul.f32 %v7541_v63, %v7539_v60  ;;  %v6969_v63 = vld [vmem:[%s9355_s0 + $0x1b8] sm:$0xff] }
 0xced   :  { %v4885_v26 = vcombine.high %v4881_v62, %v4881_v62  ;;  %v4892_v27 = vrot.slane %v4881_v62, %v7960_v42  ;;  %v4957_v28 = vpack.c.bf16 %v4881_v62, %v4881_v62 }
 0xcef   :  { %v4899_v4 = vrot.slane %v4885_v26, %v7960_v42  ;;  %v4900_v5 = vcombine.high %v4892_v27, %v4892_v27  ;;  %v4908_v6 = vrot.slane %v4892_v27, %v7960_v42  ;;  %6962 = vst.sshfl [vmem:[#allocation4 + $0xc] sm:$0x1 pattern:$0x73625140] %v4892_v27  ;;  %5183 = vmatmul.mubr.bf16.vlgmr.msra.gmra.mxu0 %v4957_v28  ;;  %v6968_v26 = vld [vmem:[%s9355_s0 + $0x1b0] sm:$0xff] }
 0xcf0   :  { %5224 = vmatmul.mubr.bf16.vlgmr.msra.gmra.mxu1 %v4957_v28  ;;  %5529 = vmatpush1.bf16.msra.mxu0 %v8861_v31 }
 0xcf1   :  { %5570 = vmatpush1.bf16.msra.mxu1 %v8866_v32  ;;  %v4901_v7 = vcombine.high %v4899_v4, %v4899_v4  ;;  %v4915_v8 = vrot.slane %v4899_v4, %v7960_v42  ;;  %v4922_v9 = vrot.slane %v4900_v5, %v7960_v42  ;;  %v4930_v10 = vcombine.high %v4908_v6, %v4908_v6 }
 0xcf2   :  { %6963 = vst.sshfl [vmem:[#allocation4 + $0x1c] sm:$0x1 pattern:$0x73625140] %v4900_v5  ;;  %5530 = vmatprep.subr.bf16.mxu0 %v8875_v33  ;;  %5571 = vmatprep.subr.bf16.mxu1 %v8880_v45 }
 0xcf3   :  { %6964 = vst.sshfl [vmem:[#allocation4 + $0x4c] sm:$0x1 pattern:$0x73625140] %v4899_v4  ;;  %5560 = vmatprep.mubr.bf16.mxu0 %v7654_v2  ;;  %v4929_v11 = vrot.slane %v4901_v7, %v7960_v42  ;;  %v4931_v12 = vcombine.high %v4915_v8, %v4915_v8  ;;  %v4932_v46 = vcombine.high %v4922_v9, %v4922_v9  ;;  %4944 = vst [vmem:[#allocation4 + $0x2c] sm:$0x1] %v4930_v10 }
 0xcf4   :  { %6965 = vst.sshfl [vmem:[#allocation4 + $0x5c] sm:$0x1 pattern:$0x73625140] %v4901_v7  ;;  %5601 = vmatprep.mubr.bf16.mxu1 %v7654_v2  ;;  %5531 = vmatpush1.bf16.msra.mxu0 %v8885_v34 }
 0xcf5   :  { %5572 = vmatpush1.bf16.msra.mxu1 %v8890_v51  ;;  %v4933_v48 = vcombine.high %v4929_v11, %v4929_v11  ;;  %4945 = vst [vmem:[#allocation4 + $0x3c] sm:$0x1] %v4932_v46  ;;  %4948 = vst [vmem:[#allocation4 + $0x6c] sm:$0x1] %v4931_v12  ;;  %5532 = vmatprep.subr.bf16.mxu0 %v8899_v52 }
 0xcf6   :  { %5573 = vmatprep.subr.bf16.mxu1 %v8904_v44 }
 0xcf7   :  { %4949 = vst [vmem:[#allocation4 + $0x7c] sm:$0x1] %v4933_v48 }
 0xcf8   :  { %5533 = vmatpush1.bf16.msra.mxu0 %v8909_v47 }
 0xcf9   :  { %5574 = vmatpush1.bf16.msra.mxu1 %v8914_v53  ;;  %5534 = vmatprep.subr.bf16.mxu0 %v8923_v54 }
 0xcfa   :  { %5575 = vmatprep.subr.bf16.mxu1 %v8928_v55 }
 0xcfc   :  { %5535 = vmatpush1.bf16.msra.mxu0 %v8933_v58 }
 0xcfd   :  { %5576 = vmatpush1.bf16.msra.mxu1 %v8938_v56  ;;  %5536 = vmatprep.subr.bf16.mxu0 %v8952_v35 }
 0xcfe   :  { %5577 = vmatprep.subr.bf16.mxu1 %v8962_v59 }
 0xd00   :  { %5537 = vmatpush1.bf16.msra.mxu0 %v8947_v20 }
 0xd01   :  { %5578 = vmatpush1.bf16.msra.mxu1 %v8957_v57  ;;  %5538 = vmatprep.subr.bf16.mxu0 %v8967_v36 }
 0xd02   :  { %5579 = vmatprep.subr.bf16.mxu1 %v8973_v37 }
 0xd04   :  { %5539 = vmatpush1.bf16.msra.mxu0 %v8981_v38 }
 0xd05   :  { %5580 = vmatpush1.bf16.msra.mxu1 %v8986_v17  ;;  %5540 = vmatprep.subr.bf16.mxu0 %v8993_v39 }
 0xd06   :  { %5581 = vmatprep.subr.bf16.mxu1 %v8998_v0 }
 0xd08   :  { %5541 = vmatpush1.bf16.msra.mxu0 %v9005_v18 }
 0xd09   :  { %5582 = vmatpush1.bf16.msra.mxu1 %v9010_v41  ;;  %5542 = vmatprep.subr.bf16.mxu0 %v9017_v43 }
 0xd0a   :  { %5583 = vmatprep.subr.bf16.mxu1 %v9022_v1 }
 0xd0c   :  { %5543 = vmatpush1.bf16.msra.mxu0 %v9029_v19 }
 0xd0d   :  { %5584 = vmatpush1.bf16.msra.mxu1 %v9034_v3  ;;  %5906 = vmatprep.subr.bf16.mxu0 %v8851_v29 }
 0xd0e   :  { %5947 = vmatprep.subr.bf16.mxu1 %v8856_v30 }
 0xdaf   :  { %v5184_v49 = vpop.f32.mrf.mxu0 }
 0xdb0   :  { %v5225_v13 = vpop.f32.mrf.mxu1  ;;  %v5232_v15 = vadd.f32 %v6966_v50, %v5184_v49 }
 0xdb1   :  { %v5186_v16 = vpop.f32.mrf.mxu0  ;;  %v5234_v4 = vadd.f32 %v6968_v26, %v5225_v13 }
 0xdb2   :  { %v5227_v21 = vpop.f32.mrf.mxu1  ;;  %v7002_v22 = vmul.f32 -1.442695, %v5232_v15  ;;  %v5233_v23 = vadd.f32 %v6967_v14, %v5186_v16 }
 0xdb3   :  { %v5188_v24 = vpop.f32.mrf.mxu0  ;;  %v5235_v62 = vadd.f32 %v6969_v63, %v5227_v21 }
 0xdb4   :  { %v5229_v25 = vpop.f32.mrf.mxu1  ;;  %7542 = vpow2.f32 %v7002_v22  ;;  %v7003_v29 = vmul.f32 -1.442695, %v5233_v23 }
 0xdb5   :  { %v5189_v30 = vpop.f32.mrf.mxu0  ;;  %v7004_v27 = vmul.f32 -1.442695, %v5235_v62 }
 0xdb6   :  { %v5230_v60 = vpop.f32.mrf.mxu1  ;;  %7544 = vpow2.f32 %v7003_v29 }
 0xdb7   :  { %7546 = vpow2.f32 %v7004_v27 }
 0xdc1   :  { %v7543_v28 = vpop.eup %7542 }
 0xdc2   :  { %v5239_v5 = vadd.f32 1.0, %v7543_v28 }
 0xdc3   :  { %v7545_v6 = vpop.eup %7544 }
 0xdc4   :  { %7548 = vrcp.f32 %v5239_v5  ;;  %v5245_v7 = vadd.f32 1.0, %v7545_v6  ;;  %v7547_v8 = vpop.eup %7546 }
 0xdc5   :  { %7550 = vtanh.f32 %v5234_v4  ;;  %v5252_v12 = vadd.f32 1.0, %v7547_v8 }
 0xdc6   :  { %7552 = vrcp.f32 %v5245_v7 }
 0xdc7   :  { %7554 = vrcp.f32 %v5252_v12 }
 0xdd1   :  { %v7549_v9 = vpop.eup %7548 }
 0xdd2   :  { %v7551_v10 = vpop.eup %7550 }
 0xdd3   :  { %v7553_v11 = vpop.eup %7552  ;;  %v5256_v46 = vmul.f32 %v7551_v10, %v7549_v9 }
 0xdd4   :  { %v5255_v48 = vmul.f32 %v7553_v11, %v9111_v61  ;;  %v7555_v49 = vpop.eup %7554 }
 0xdd6   :  { %v9167_v50 = vadd.f32 %v5256_v46, %v5255_v48 }
 0xdd8   :  { %7556 = vtanh.f32 %v9167_v50 }
 0xde5   :  { %v7557_v13 = vpop.eup %7556 }
 0xde6   :  { %v5259_v14 = vmul.f32 %v7557_v13, %v7555_v49 }
 0xde8   :  { %v5263_v15 = vcombine.high %v5259_v14, %v5259_v14  ;;  %v5270_v16 = vrot.slane %v5259_v14, %v7960_v42  ;;  %v5335_v21 = vpack.c.bf16 %v5259_v14, %v5259_v14 }
 0xdea   :  { %v5277_v22 = vrot.slane %v5263_v15, %v7960_v42  ;;  %v5278_v23 = vcombine.high %v5270_v16, %v5270_v16  ;;  %v5286_v24 = vrot.slane %v5270_v16, %v7960_v42  ;;  %7005 = vst.sshfl [vmem:[#allocation4 + $0xd] sm:$0x1 pattern:$0x73625140] %v5270_v16  ;;  %5561 = vmatmul.mubr.bf16.vlgmr.msra.gmra.mxu0 %v5335_v21  ;;  %v7312_v16 = vld [vmem:[%s9359_s4 + $0x74] ss:$8 sps:$4 sm:$0xff]  }
 0xdeb   :  { %5602 = vmatmul.mubr.bf16.vlgmr.msra.gmra.mxu1 %v5335_v21  ;;  %5907 = vmatpush1.bf16.msra.mxu0 %v8861_v31  ;;  %v7310_v21 = vld [vmem:[%s9359_s4 + $0x70] ss:$8 sps:$4 sm:$0xff]  }
 0xdec   :  { %5948 = vmatpush1.bf16.msra.mxu1 %v8866_v32  ;;  %v5279_v61 = vcombine.high %v5277_v22, %v5277_v22  ;;  %v5293_v25 = vrot.slane %v5277_v22, %v7960_v42  ;;  %v5300_v29 = vrot.slane %v5278_v23, %v7960_v42  ;;  %v5308_v30 = vcombine.high %v5286_v24, %v5286_v24  ;;  %v7318_v24 = vld [vmem:[%s9359_s4 + $0x54] ss:$8 sps:$4 sm:$0xff]  }
 0xded   :  { %7006 = vst.sshfl [vmem:[#allocation4 + $0x1d] sm:$0x1 pattern:$0x73625140] %v5278_v23  ;;  %5908 = vmatprep.subr.bf16.mxu0 %v8875_v33  ;;  %5949 = vmatprep.subr.bf16.mxu1 %v8880_v45  ;;  %v7009_v33 = vld [vmem:[%s9355_s0 + $0x1c0] sm:$0xff] }
 0xdee   :  { %7007 = vst.sshfl [vmem:[#allocation4 + $0x4d] sm:$0x1 pattern:$0x73625140] %v5277_v22  ;;  %5938 = vmatprep.mubr.bf16.mxu0 %v7654_v2  ;;  %v5307_v60 = vrot.slane %v5279_v61, %v7960_v42  ;;  %v5309_v63 = vcombine.high %v5293_v25, %v5293_v25  ;;  %v5310_v31 = vcombine.high %v5300_v29, %v5300_v29  ;;  %5322 = vst [vmem:[#allocation4 + $0x2d] sm:$0x1] %v5308_v30 }
 0xdef   :  { %7008 = vst.sshfl [vmem:[#allocation4 + $0x5d] sm:$0x1 pattern:$0x73625140] %v5279_v61  ;;  %5979 = vmatprep.mubr.bf16.mxu1 %v7654_v2  ;;  %5909 = vmatpush1.bf16.msra.mxu0 %v8885_v34  ;;  %v7315_v22 = vld [vmem:[%s9359_s4 + $0x64] ss:$8 sps:$4 sm:$0xff]  }
 0xdf0   :  { %5950 = vmatpush1.bf16.msra.mxu1 %v8890_v51  ;;  %v5311_v32 = vcombine.high %v5307_v60, %v5307_v60  ;;  %5323 = vst [vmem:[#allocation4 + $0x3d] sm:$0x1] %v5310_v31  ;;  %5326 = vst [vmem:[#allocation4 + $0x6d] sm:$0x1] %v5309_v63  ;;  %5910 = vmatprep.subr.bf16.mxu0 %v8899_v52  ;;  %v7010_v51 = vld [vmem:[%s9355_s0 + $0x1c8] sm:$0xff] }
 0xdf1   :  { %5951 = vmatprep.subr.bf16.mxu1 %v8904_v44  ;;  %v7313_v23 = vld [vmem:[%s9359_s4 + $0x60] ss:$8 sps:$4 sm:$0xff]   ;;  %v7316_v61 = vld [vmem:[%s9359_s4 + $0x50] ss:$8 sps:$4 sm:$0xff]   ;;  %v7321_v25 = vld [vmem:[%s9359_s4 + $0x44] ss:$8 sps:$4 sm:$0xff]  }
 0xdf2   :  { %5327 = vst [vmem:[#allocation4 + $0x7d] sm:$0x1] %v5311_v32  ;;  %v7319_v29 = vld [vmem:[%s9359_s4 + $0x40] ss:$8 sps:$4 sm:$0xff]   ;;  %v7324_v30 = vld [vmem:[%s9359_s4 + $0x34] ss:$8 sps:$4 sm:$0xff]  }
 0xdf3   :  { %5911 = vmatpush1.bf16.msra.mxu0 %v8909_v47  ;;  %v7322_v60 = vld [vmem:[%s9359_s4 + $0x30] ss:$8 sps:$4 sm:$0xff]   ;;  %v7327_v63 = vld [vmem:[%s9359_s4 + $0x24] ss:$8 sps:$4 sm:$0xff]   ;;  %v7325_v31 = vld [vmem:[%s9359_s4 + $0x20] ss:$8 sps:$4 sm:$0xff]  }
 0xdf4   :  { %5952 = vmatpush1.bf16.msra.mxu1 %v8914_v53  ;;  %5912 = vmatprep.subr.bf16.mxu0 %v8923_v54  ;;  %v7330_v32 = vld [vmem:[%s9359_s4 + $0x14] ss:$8 sps:$4 sm:$0xff]  }
 0xdf5   :  { %5953 = vmatprep.subr.bf16.mxu1 %v8928_v55 }
 0xdf7   :  { %5913 = vmatpush1.bf16.msra.mxu0 %v8933_v58 }
 0xdf8   :  { %5954 = vmatpush1.bf16.msra.mxu1 %v8938_v56  ;;  %5914 = vmatprep.subr.bf16.mxu0 %v8952_v35 }
 0xdf9   :  { %5955 = vmatprep.subr.bf16.mxu1 %v8962_v59 }
 0xdfb   :  { %5915 = vmatpush1.bf16.msra.mxu0 %v8947_v20 }
 0xdfc   :  { %5956 = vmatpush1.bf16.msra.mxu1 %v8957_v57  ;;  %5916 = vmatprep.subr.bf16.mxu0 %v8967_v36  ;;  %v7012_v57 = vld [vmem:[%s9355_s0 + $0x1d8] sm:$0xff]  ;;  %v7011_v36 = vld [vmem:[%s9355_s0 + $0x1d0] sm:$0xff] }
 0xdfd   :  { %5957 = vmatprep.subr.bf16.mxu1 %v8973_v37 }
 0xdff   :  { %5917 = vmatpush1.bf16.msra.mxu0 %v8981_v38 }
 0xe00   :  { %5958 = vmatpush1.bf16.msra.mxu1 %v8986_v17  ;;  %5918 = vmatprep.subr.bf16.mxu0 %v8993_v39 }
 0xe01   :  { %5959 = vmatprep.subr.bf16.mxu1 %v8998_v0 }
 0xe03   :  { %5919 = vmatpush1.bf16.msra.mxu0 %v9005_v18 }
 0xe04   :  { %5960 = vmatpush1.bf16.msra.mxu1 %v9010_v41  ;;  %5920 = vmatprep.subr.bf16.mxu0 %v9017_v43 }
 0xe05   :  { %5961 = vmatprep.subr.bf16.mxu1 %v9022_v1 }
 0xe07   :  { %5921 = vmatpush1.bf16.msra.mxu0 %v9029_v19 }
 0xe08   :  { %5962 = vmatpush1.bf16.msra.mxu1 %v9034_v3  ;;  %6216 = vmatprep.subr.bf16.mxu0 %v7312_v16 }
 0xeaa   :  { %v5562_v45 = vpop.f32.mrf.mxu0 }
 0xeab   :  { %v5603_v34 = vpop.f32.mrf.mxu1  ;;  %v5610_v52 = vadd.f32 %v7009_v33, %v5562_v45  ;;  %v7328_v33 = vld [vmem:[%s9359_s4 + $0x10] ss:$8 sps:$4 sm:$0xff]   ;;  %v7333_v45 = vld [vmem:[%s9359_s4 + $0x4] ss:$8 sps:$4 sm:$0xff]  }
 0xeac   :  { %v5564_v44 = vpop.f32.mrf.mxu0  ;;  %v5612_v17 = vadd.f32 %v7011_v36, %v5603_v34  ;;  %v7331_v34 = vld [vmem:[%s9359_s4] ss:$8 sps:$4 sm:$0xff]  }
 0xead   :  { %v5605_v47 = vpop.f32.mrf.mxu1  ;;  %v7045_v53 = vmul.f32 -1.442695, %v5610_v52  ;;  %v5611_v54 = vadd.f32 %v7010_v51, %v5564_v44  ;;  %v7052_v51 = vld [vmem:[%s9355_s0 + $0x1e0] sm:$0xff] }
 0xeae   :  { %v5566_v55 = vpop.f32.mrf.mxu0  ;;  %v5613_v59 = vadd.f32 %v7012_v57, %v5605_v47  ;;  %v7053_v47 = vld [vmem:[%s9355_s0 + $0x1e8] sm:$0xff] }
 0xeaf   :  { %v5607_v58 = vpop.f32.mrf.mxu1  ;;  %7558 = vpow2.f32 %v7045_v53  ;;  %v7046_v56 = vmul.f32 -1.442695, %v5611_v54 }
 0xeb0   :  { %v5567_v20 = vpop.f32.mrf.mxu0  ;;  %v7047_v37 = vmul.f32 -1.442695, %v5613_v59 }
 0xeb1   :  { %v5608_v35 = vpop.f32.mrf.mxu1  ;;  %7560 = vpow2.f32 %v7046_v56 }
 0xeb2   :  { %7562 = vpow2.f32 %v7047_v37  ;;  %v7055_v37 = vld [vmem:[%s9355_s0 + $0x1f8] sm:$0xff] }
 0xebc   :  { %v7559_v38 = vpop.eup %7558 }
 0xebd   :  { %v5617_v39 = vadd.f32 1.0, %v7559_v38 }
 0xebe   :  { %v7561_v0 = vpop.eup %7560 }
 0xebf   :  { %7564 = vrcp.f32 %v5617_v39  ;;  %v5623_v18 = vadd.f32 1.0, %v7561_v0  ;;  %v7563_v41 = vpop.eup %7562 }
 0xec0   :  { %7566 = vtanh.f32 %v5612_v17  ;;  %v5630_v3 = vadd.f32 1.0, %v7563_v41  ;;  %v7054_v17 = vld [vmem:[%s9355_s0 + $0x1f0] sm:$0xff]  ;;  %s7656_s0 = smov [#allocation7]  }
 0xec1   :  { %7568 = vrcp.f32 %v5623_v18  ;;  %s6386_s16 = sshll.u32 %s7656_s0, 4  ;;  %s6387_s16 = int_to_ptr.vmem [resolvable:$true] %s6386_s16 }
 0xec2   :  { %7570 = vrcp.f32 %v5630_v3  ;;  %s7590_s17 = scalar_lea.vmem %s6387_s16, 128  ;;  %p7595_p1 = scmp.lt.s32.totalorder %s6387_s16, %s6387_s16 }
 0xec3   :  { %p7591_p0 = scmp.ne.s32.totalorder %s6387_s16, %s7590_s17  ;;  %p7596_p2 = scmp.lt.s32.totalorder %s7590_s17, %s7590_s17 }
 0xec5   :  { %p7597_p3 = por %p7596_p2, %p7595_p1 }
 0xec7   :  { %p7598_p4 = pnand %p7597_p3, %p7591_p0 }
 0xecc   :  { %v7565_v43 = vpop.eup %7564 }
 0xecd   :  { %v7567_v1 = vpop.eup %7566 }
 0xece   :  { %v7569_v19 = vpop.eup %7568  ;;  %v5634_v62 = vmul.f32 %v7567_v1, %v7565_v43 }
 0xecf   :  { %v5633_v26 = vmul.f32 %v7569_v19, %v9167_v50  ;;  %v7571_v28 = vpop.eup %7570 }
 0xed1   :  { %v9221_v27 = vadd.f32 %v5634_v62, %v5633_v26 }
 0xed3   :  { %7572 = vtanh.f32 %v9221_v27 }
 0xee0   :  { %v7573_v4 = vpop.eup %7572 }
 0xee1   :  { %v5637_v5 = vmul.f32 %v7573_v4, %v7571_v28 }
 0xee3   :  { %v5641_v6 = vcombine.high %v5637_v5, %v5637_v5  ;;  %v5648_v7 = vrot.slane %v5637_v5, %v7960_v42  ;;  %v5713_v8 = vpack.c.bf16 %v5637_v5, %v5637_v5 }
 0xee5   :  { %v5655_v9 = vrot.slane %v5641_v6, %v7960_v42  ;;  %v5656_v10 = vcombine.high %v5648_v7, %v5648_v7  ;;  %v5664_v11 = vrot.slane %v5648_v7, %v7960_v42  ;;  %7048 = vst.sshfl [vmem:[#allocation4 + $0xe] sm:$0x1 pattern:$0x73625140] %v5648_v7  ;;  %5939 = vmatmul.mubr.bf16.vlgmr.msra.gmra.mxu0 %v5713_v8 }
 0xee6   :  { %5980 = vmatmul.mubr.bf16.vlgmr.msra.gmra.mxu1 %v5713_v8  ;;  %6248 = vmatprep.mubr.bf16.mxu0 %v7654_v2 }
 0xee7   :  { %v5657_v12 = vcombine.high %v5655_v9, %v5655_v9  ;;  %v5671_v46 = vrot.slane %v5655_v9, %v7960_v42  ;;  %v5678_v48 = vrot.slane %v5656_v10, %v7960_v42  ;;  %v5686_v50 = vcombine.high %v5664_v11, %v5664_v11  ;;  %7049 = vst.sshfl [vmem:[#allocation4 + $0x1e] sm:$0x1 pattern:$0x73625140] %v5656_v10 }
 0xee8   :  { %7050 = vst.sshfl [vmem:[#allocation4 + $0x4e] sm:$0x1 pattern:$0x73625140] %v5655_v9  ;;  %6217 = vmatpush1.bf16.msra.mxu0 %v7310_v21 }
 0xee9   :  { %v5685_v49 = vrot.slane %v5657_v12, %v7960_v42  ;;  %v5687_v13 = vcombine.high %v5671_v46, %v5671_v46  ;;  %v5688_v14 = vcombine.high %v5678_v48, %v5678_v48  ;;  %5700 = vst [vmem:[#allocation4 + $0x2e] sm:$0x1] %v5686_v50  ;;  %7051 = vst.sshfl [vmem:[#allocation4 + $0x5e] sm:$0x1 pattern:$0x73625140] %v5657_v12  ;;  %6218 = vmatprep.subr.bf16.mxu0 %v7315_v22 }
 0xeea   :  { %v6084_v22 = vld [vmem:[#allocation4] sm:$0xff] }
 0xeeb   :  { %v5689_v15 = vcombine.high %v5685_v49, %v5685_v49  ;;  %5701 = vst [vmem:[#allocation4 + $0x3e] sm:$0x1] %v5688_v14  ;;  %5704 = vst [vmem:[#allocation4 + $0x6e] sm:$0x1] %v5687_v13 }
 0xeec   :  { %6219 = vmatpush1.bf16.msra.mxu0 %v7313_v23 }
 0xeed   :  { %5705 = vst [vmem:[#allocation4 + $0x7e] sm:$0x1] %v5689_v15  ;;  %6220 = vmatprep.subr.bf16.mxu0 %v7318_v24 }
 0xef0   :  { %6221 = vmatpush1.bf16.msra.mxu0 %v7316_v61 }
 0xef1   :  { %6222 = vmatprep.subr.bf16.mxu0 %v7321_v25  ;;  %v6086_v25 = vld [vmem:[#allocation4 + $0x10] sm:$0xff] }
 0xef4   :  { %6223 = vmatpush1.bf16.msra.mxu0 %v7319_v29 }
 0xef5   :  { %6224 = vmatprep.subr.bf16.mxu0 %v7324_v30  ;;  %v6088_v30 = vld [vmem:[#allocation4 + $0x20] sm:$0xff] }
 0xef8   :  { %6225 = vmatpush1.bf16.msra.mxu0 %v7322_v60 }
 0xef9   :  { %6226 = vmatprep.subr.bf16.mxu0 %v7327_v63 }
 0xefc   :  { %6227 = vmatpush1.bf16.msra.mxu0 %v7325_v31  ;;  %v6090_v31 = vld [vmem:[#allocation4 + $0x30] sm:$0xff] }
 0xefd   :  { %6228 = vmatprep.subr.bf16.mxu0 %v7330_v32 }
 0xf00   :  { %6229 = vmatpush1.bf16.msra.mxu0 %v7328_v33 }
 0xf01   :  { %6230 = vmatprep.subr.bf16.mxu0 %v7333_v45  ;;  %v6092_v45 = vld [vmem:[#allocation4 + $0x40] sm:$0xff] }
 0xf04   :  { %6231 = vmatpush1.bf16.msra.mxu0 %v7331_v34 }
 0xfa5   :  { %v5940_v52 = vpop.f32.mrf.mxu0 }
 0xfa6   :  { %v5981_v44 = vpop.f32.mrf.mxu1  ;;  %v5988_v53 = vadd.f32 %v7052_v51, %v5940_v52  ;;  %v6094_v52 = vld [vmem:[#allocation4 + $0x50] sm:$0xff] }
 0xfa7   :  { %v5942_v54 = vpop.f32.mrf.mxu0  ;;  %v5990_v18 = vadd.f32 %v7054_v17, %v5981_v44 }
 0xfa8   :  { %v5983_v55 = vpop.f32.mrf.mxu1  ;;  %v7088_v58 = vmul.f32 -1.442695, %v5988_v53  ;;  %v5989_v56 = vadd.f32 %v7053_v47, %v5942_v54  ;;  %v6096_v53 = vld [vmem:[#allocation4 + $0x60] sm:$0xff] }
 0xfa9   :  { %v5944_v20 = vpop.f32.mrf.mxu0  ;;  %v5991_v38 = vadd.f32 %v7055_v37, %v5983_v55 }
 0xfaa   :  { %v5985_v35 = vpop.f32.mrf.mxu1  ;;  %7574 = vpow2.f32 %v7088_v58  ;;  %v7089_v57 = vmul.f32 -1.442695, %v5989_v56  ;;  %v6098_v58 = vld [vmem:[#allocation4 + $0x70] sm:$0xff] }
 0xfab   :  { %v5945_v59 = vpop.f32.mrf.mxu0  ;;  %v7090_v39 = vmul.f32 -1.442695, %v5991_v38 }
 0xfac   :  { %v5986_v36 = vpop.f32.mrf.mxu1  ;;  %7576 = vpow2.f32 %v7089_v57 }
 0xfad   :  { %7578 = vpow2.f32 %v7090_v39 }
 0xfb7   :  { %v7575_v0 = vpop.eup %7574 }
 0xfb8   :  { %v5995_v41 = vadd.f32 1.0, %v7575_v0 }
 0xfb9   :  { %v7577_v43 = vpop.eup %7576 }
 0xfba   :  { %7580 = vrcp.f32 %v5995_v41  ;;  %v6001_v1 = vadd.f32 1.0, %v7577_v43  ;;  %v7579_v19 = vpop.eup %7578 }
 0xfbb   :  { %7582 = vtanh.f32 %v5990_v18  ;;  %v6008_v28 = vadd.f32 1.0, %v7579_v19 }
 0xfbc   :  { %7584 = vrcp.f32 %v6001_v1 }
 0xfbd   :  { %7586 = vrcp.f32 %v6008_v28 }
 0xfc7   :  { %v7581_v3 = vpop.eup %7580 }
 0xfc8   :  { %v7583_v62 = vpop.eup %7582 }
 0xfc9   :  { %v7585_v26 = vpop.eup %7584  ;;  %v6012_v4 = vmul.f32 %v7583_v62, %v7581_v3 }
 0xfca   :  { %v6011_v5 = vmul.f32 %v7585_v26, %v9221_v27  ;;  %v7587_v7 = vpop.eup %7586 }
 0xfcc   :  { %v6013_v6 = vadd.f32 %v6012_v4, %v6011_v5 }
 0xfce   :  { %7588 = vtanh.f32 %v6013_v6  ;;  %6367 = vst [vmem:[#allocation9] sm:$0xff] %v6013_v6 }
 0xfdb   :  { %v7589_v8 = vpop.eup %7588 }
 0xfdc   :  { %v6015_v9 = vmul.f32 %v7589_v8, %v7587_v7 }
 0xfde   :  { %v6019_v10 = vcombine.high %v6015_v9, %v6015_v9  ;;  %v6026_v11 = vrot.slane %v6015_v9, %v7960_v42  ;;  %6365 = vst [vmem:[#allocation7] sm:$0xff] %v6015_v9 }
 0xfe0   :  { %v6033_v12 = vrot.slane %v6019_v10, %v7960_v42  ;;  %v6034_v46 = vcombine.high %v6026_v11, %v6026_v11  ;;  %v6042_v48 = vrot.slane %v6026_v11, %v7960_v42  ;;  %7091 = vst.sshfl [vmem:[#allocation4 + $0xf] sm:$0x1 pattern:$0x73625140] %v6026_v11 }
 0xfe2   :  { %v6035_v50 = vcombine.high %v6033_v12, %v6033_v12  ;;  %v6049_v27 = vrot.slane %v6033_v12, %v7960_v42  ;;  %v6056_v49 = vrot.slane %v6034_v46, %v7960_v42  ;;  %v6064_v13 = vcombine.high %v6042_v48, %v6042_v48  ;;  %7092 = vst.sshfl [vmem:[#allocation4 + $0x1f] sm:$0x1 pattern:$0x73625140] %v6034_v46 }
 0xfe3   :  { %7093 = vst.sshfl [vmem:[#allocation4 + $0x4f] sm:$0x1 pattern:$0x73625140] %v6033_v12 }
 0xfe4   :  { %v6063_v14 = vrot.slane %v6035_v50, %v7960_v42  ;;  %v6065_v15 = vcombine.high %v6049_v27, %v6049_v27  ;;  %v6066_v16 = vcombine.high %v6056_v49, %v6056_v49  ;;  %6078 = vst [vmem:[#allocation4 + $0x2f] sm:$0x1] %v6064_v13  ;;  %7094 = vst.sshfl [vmem:[#allocation4 + $0x5f] sm:$0x1 pattern:$0x73625140] %v6035_v50 }
 0xfe6   :  { %v6067_v21 = vcombine.high %v6063_v14, %v6063_v14  ;;  %6079 = vst [vmem:[#allocation4 + $0x3f] sm:$0x1] %v6066_v16  ;;  %6082 = vst [vmem:[#allocation4 + $0x6f] sm:$0x1] %v6065_v15 }
 0xfe7   :  { %v6085_v23 = vld [vmem:[#allocation4 + $0x8] sm:$0xff] }
 0xfe8   :  { %6083 = vst [vmem:[#allocation4 + $0x7f] sm:$0x1] %v6067_v21  ;;  %v6100_v24 = vpack.c.bf16 %v6085_v23, %v6084_v22 }
 0xfe9   :  { %v6087_v61 = vld [vmem:[#allocation4 + $0x18] sm:$0xff] }
 0xfea   :  { %6249 = vmatmul.mubr.bf16.vlgmr.msra.gmra.mxu0 %v6100_v24  ;;  %v6101_v29 = vpack.c.bf16 %v6087_v61, %v6086_v25  ;;  %v6093_v33 = vld [vmem:[#allocation4 + $0x48] sm:$0xff] }
 0xfeb   :  { %6258 = vmatprep.mubr.bf16.mxu0 %v7654_v2  ;;  %v6089_v42 = vld [vmem:[#allocation4 + $0x28] sm:$0xff]  ;;  %v6104_v34 = vpack.c.bf16 %v6093_v33, %v6092_v45  ;;  %v6095_v51 = vld [vmem:[#allocation4 + $0x58] sm:$0xff] }
 0xfec   :  { %v6102_v60 = vpack.c.bf16 %v6089_v42, %v6088_v30  ;;  %v6105_v44 = vpack.c.bf16 %v6095_v51, %v6094_v52 }
 0xfed   :  { %v6091_v63 = vld [vmem:[#allocation4 + $0x38] sm:$0xff]  ;;  %v6097_v47 = vld [vmem:[#allocation4 + $0x68] sm:$0xff] }
 0xfee   :  { %v6103_v32 = vpack.c.bf16 %v6091_v63, %v6090_v31  ;;  %v6106_v54 = vpack.c.bf16 %v6097_v47, %v6096_v53 }
 0xfef   :  { %v6099_v55 = vld [vmem:[#allocation4 + $0x78] sm:$0xff] }
 0xff0   :  { %v6107_v56 = vpack.c.bf16 %v6099_v55, %v6098_v58 }
 0xff2   :  { %6259 = vmatmul.mubr.bf16.gmra.mxu0 %v6101_v29 }
 0xff3   :  { %6268 = vmatprep.mubr.bf16.mxu0 %v7654_v2 }
 0xffa   :  { %6269 = vmatmul.mubr.bf16.gmra.mxu0 %v6102_v60 }
 0xffb   :  { %6278 = vmatprep.mubr.bf16.mxu0 %v7654_v2 }
0x1002   :  { %6279 = vmatmul.mubr.bf16.gmra.mxu0 %v6103_v32 }
0x1003   :  { %6288 = vmatprep.mubr.bf16.mxu0 %v7654_v2 }
0x100a   :  { %6289 = vmatmul.mubr.bf16.gmra.mxu0 %v6104_v34 }
0x100b   :  { %6298 = vmatprep.mubr.bf16.mxu0 %v7654_v2 }
0x1012   :  { %6299 = vmatmul.mubr.bf16.gmra.mxu0 %v6105_v44 }
0x1013   :  { %6308 = vmatprep.mubr.bf16.mxu0 %v7654_v2 }
0x101a   :  { %6309 = vmatmul.mubr.bf16.gmra.mxu0 %v6106_v54 }
0x101b   :  { %6318 = vmatprep.mubr.bf16.mxu0 %v7654_v2 }
0x1022   :  { %6319 = vmatmul.mubr.bf16.gmra.mxu0 %v6107_v56 }
0x1023   :  { %7601 = shalt.err (!%p7598_p4)
}
0x1024   :  { %6389 = dma.vmem_to_hbm [thread:$0]  %s6387_s16, 128, %s9362_s7, [#allocation8]  }
0x1025   :  { %s7657_s20 = smov [#allocation9]  }
0x1026   :  { %s6396_s1 = sshll.u32 %s7657_s20, 4  ;;  %s6397_s1 = int_to_ptr.vmem [resolvable:$true] %s6396_s1 }
0x1027   :  { %s7610_s3 = scalar_lea.vmem %s6397_s1, 128  ;;  %p7615_p6 = scmp.lt.s32.totalorder %s6397_s1, %s6397_s1 }
0x1028   :  { %p7611_p5 = scmp.ne.s32.totalorder %s6397_s1, %s7610_s3  ;;  %p7616_p7 = scmp.lt.s32.totalorder %s7610_s3, %s7610_s3 }
0x102a   :  { %p7617_p8 = por %p7616_p7, %p7615_p6 }
0x102c   :  { %p7618_p9 = pnand %p7617_p8, %p7611_p5 }
0x102e   :  { %7621 = shalt.err (!%p7618_p9)
}
0x102f   :  { %6399 = dma.vmem_to_hbm [thread:$0]  %s6397_s1, 128, %s9363_s8, [#allocation8]   ;;  %v6128_v2 = vsub.s32 0, %v7957_v40  ;;  %v6124_v20 = vld [vmem:[%s9360_s5] sm:$0x3]  ;;  %v6132_v35 = vsub.s32 1, %v7957_v40 }
0x1030   :  { %s7658_s5 = smov [#allocation5]  }
0x1031   :  { %v9316_v57 = vrot.slane %v6124_v20, %v6128_v2  ;;  %v9318_v59 = vrot.slane %v6124_v20, %v6132_v35  ;;  %s6373_s7 = sshll.u32 %s7658_s5, 4  ;;  %s6374_s7 = int_to_ptr.vmem [resolvable:$true] %s6373_s7 }
0x1032   :  { %s7630_s8 = scalar_lea.vmem %s6374_s7, 4096  ;;  %p7635_p11 = scmp.lt.s32.totalorder %s6374_s7, %s6374_s7 }
0x1033   :  { %p7631_p10 = scmp.ne.s32.totalorder %s6374_s7, %s7630_s8  ;;  %p7636_p12 = scmp.lt.s32.totalorder %s7630_s8, %s7630_s8 }
0x1035   :  { %p7637_p13 = por %p7636_p12, %p7635_p11 }
0x1037   :  { %p7638_p0 = pnand %p7637_p13, %p7631_p10 }
0x10aa   :  { %v6250_v36 = vpop.f32.mrf.mxu0 }
0x10ab   :  { %v6251_v37 = vadd.f32 %v6250_v36, %v9316_v57 }
0x10ac   :  { %v6252_v38 = vpop.f32.mrf.mxu0 }
0x10ad   :  { %6329 = vst [vmem:[#allocation5] sm:$0xff] %v6251_v37  ;;  %v6253_v17 = vadd.f32 %v6252_v38, %v9318_v59 }
0x10ae   :  { %v6254_v39 = vpop.f32.mrf.mxu0 }
0x10af   :  { %6330 = vst [vmem:[#allocation5 + $0x8] sm:$0xff] %v6253_v17  ;;  %v6255_v0 = vadd.f32 %v6254_v39, %v9316_v57 }
0x10b0   :  { %v6256_v18 = vpop.f32.mrf.mxu0 }
0x10b1   :  { %6331 = vst [vmem:[#allocation5 + $0x10] sm:$0xff] %v6255_v0  ;;  %v6257_v41 = vadd.f32 %v6256_v18, %v9318_v59 }
0x10b2   :  { %v6260_v40 = vpop.f32.mrf.mxu0 }
0x10b3   :  { %6332 = vst [vmem:[#allocation5 + $0x18] sm:$0xff] %v6257_v41  ;;  %v6261_v43 = vadd.f32 %v6260_v40, %v9316_v57 }
0x10b4   :  { %v6262_v1 = vpop.f32.mrf.mxu0 }
0x10b5   :  { %6333 = vst [vmem:[#allocation5 + $0x20] sm:$0xff] %v6261_v43  ;;  %v6263_v19 = vadd.f32 %v6262_v1, %v9318_v59 }
0x10b6   :  { %v6264_v3 = vpop.f32.mrf.mxu0 }
0x10b7   :  { %6334 = vst [vmem:[#allocation5 + $0x28] sm:$0xff] %v6263_v19  ;;  %v6265_v62 = vadd.f32 %v6264_v3, %v9316_v57 }
0x10b8   :  { %v6266_v26 = vpop.f32.mrf.mxu0 }
0x10b9   :  { %6335 = vst [vmem:[#allocation5 + $0x30] sm:$0xff] %v6265_v62  ;;  %v6267_v28 = vadd.f32 %v6266_v26, %v9318_v59 }
0x10ba   :  { %v6270_v4 = vpop.f32.mrf.mxu0 }
0x10bb   :  { %6336 = vst [vmem:[#allocation5 + $0x38] sm:$0xff] %v6267_v28  ;;  %v6271_v5 = vadd.f32 %v6270_v4, %v9316_v57 }
0x10bc   :  { %v6272_v6 = vpop.f32.mrf.mxu0 }
0x10bd   :  { %6337 = vst [vmem:[#allocation5 + $0x40] sm:$0xff] %v6271_v5  ;;  %v6273_v7 = vadd.f32 %v6272_v6, %v9318_v59 }
0x10be   :  { %v6274_v8 = vpop.f32.mrf.mxu0 }
0x10bf   :  { %6338 = vst [vmem:[#allocation5 + $0x48] sm:$0xff] %v6273_v7  ;;  %v6275_v9 = vadd.f32 %v6274_v8, %v9316_v57 }
0x10c0   :  { %v6276_v10 = vpop.f32.mrf.mxu0 }
0x10c1   :  { %6339 = vst [vmem:[#allocation5 + $0x50] sm:$0xff] %v6275_v9  ;;  %v6277_v11 = vadd.f32 %v6276_v10, %v9318_v59 }
0x10c2   :  { %v6280_v12 = vpop.f32.mrf.mxu0 }
0x10c3   :  { %6340 = vst [vmem:[#allocation5 + $0x58] sm:$0xff] %v6277_v11  ;;  %v6281_v46 = vadd.f32 %v6280_v12, %v9316_v57 }
0x10c4   :  { %v6282_v48 = vpop.f32.mrf.mxu0 }
0x10c5   :  { %6341 = vst [vmem:[#allocation5 + $0x60] sm:$0xff] %v6281_v46  ;;  %v6283_v50 = vadd.f32 %v6282_v48, %v9318_v59 }
0x10c6   :  { %v6284_v27 = vpop.f32.mrf.mxu0 }
0x10c7   :  { %6342 = vst [vmem:[#allocation5 + $0x68] sm:$0xff] %v6283_v50  ;;  %v6285_v49 = vadd.f32 %v6284_v27, %v9316_v57 }
0x10c8   :  { %v6286_v13 = vpop.f32.mrf.mxu0 }
0x10c9   :  { %6343 = vst [vmem:[#allocation5 + $0x70] sm:$0xff] %v6285_v49  ;;  %v6287_v14 = vadd.f32 %v6286_v13, %v9318_v59 }
0x10ca   :  { %v6290_v15 = vpop.f32.mrf.mxu0 }
0x10cb   :  { %6344 = vst [vmem:[#allocation5 + $0x78] sm:$0xff] %v6287_v14  ;;  %v6291_v16 = vadd.f32 %v6290_v15, %v9316_v57 }
0x10cc   :  { %v6292_v21 = vpop.f32.mrf.mxu0 }
0x10cd   :  { %6345 = vst [vmem:[#allocation5 + $0x80] sm:$0xff] %v6291_v16  ;;  %v6293_v22 = vadd.f32 %v6292_v21, %v9318_v59 }
0x10ce   :  { %v6294_v23 = vpop.f32.mrf.mxu0 }
0x10cf   :  { %6346 = vst [vmem:[#allocation5 + $0x88] sm:$0xff] %v6293_v22  ;;  %v6295_v24 = vadd.f32 %v6294_v23, %v9316_v57 }
0x10d0   :  { %v6296_v61 = vpop.f32.mrf.mxu0 }
0x10d1   :  { %6347 = vst [vmem:[#allocation5 + $0x90] sm:$0xff] %v6295_v24  ;;  %v6297_v25 = vadd.f32 %v6296_v61, %v9318_v59 }
0x10d2   :  { %v6300_v29 = vpop.f32.mrf.mxu0 }
0x10d3   :  { %6348 = vst [vmem:[#allocation5 + $0x98] sm:$0xff] %v6297_v25  ;;  %v6301_v42 = vadd.f32 %v6300_v29, %v9316_v57 }
0x10d4   :  { %v6302_v30 = vpop.f32.mrf.mxu0 }
0x10d5   :  { %6349 = vst [vmem:[#allocation5 + $0xa0] sm:$0xff] %v6301_v42  ;;  %v6303_v60 = vadd.f32 %v6302_v30, %v9318_v59 }
0x10d6   :  { %v6304_v63 = vpop.f32.mrf.mxu0 }
0x10d7   :  { %6350 = vst [vmem:[#allocation5 + $0xa8] sm:$0xff] %v6303_v60  ;;  %v6305_v31 = vadd.f32 %v6304_v63, %v9316_v57 }
0x10d8   :  { %v6306_v32 = vpop.f32.mrf.mxu0 }
0x10d9   :  { %6351 = vst [vmem:[#allocation5 + $0xb0] sm:$0xff] %v6305_v31  ;;  %v6307_v33 = vadd.f32 %v6306_v32, %v9318_v59 }
0x10da   :  { %v6310_v45 = vpop.f32.mrf.mxu0 }
0x10db   :  { %6352 = vst [vmem:[#allocation5 + $0xb8] sm:$0xff] %v6307_v33  ;;  %v6311_v34 = vadd.f32 %v6310_v45, %v9316_v57 }
0x10dc   :  { %v6312_v51 = vpop.f32.mrf.mxu0 }
0x10dd   :  { %6353 = vst [vmem:[#allocation5 + $0xc0] sm:$0xff] %v6311_v34  ;;  %v6313_v52 = vadd.f32 %v6312_v51, %v9318_v59 }
0x10de   :  { %v6314_v44 = vpop.f32.mrf.mxu0 }
0x10df   :  { %6354 = vst [vmem:[#allocation5 + $0xc8] sm:$0xff] %v6313_v52  ;;  %v6315_v47 = vadd.f32 %v6314_v44, %v9316_v57 }
0x10e0   :  { %v6316_v53 = vpop.f32.mrf.mxu0 }
0x10e1   :  { %6355 = vst [vmem:[#allocation5 + $0xd0] sm:$0xff] %v6315_v47  ;;  %v6317_v54 = vadd.f32 %v6316_v53, %v9318_v59 }
0x10e2   :  { %v6320_v55 = vpop.f32.mrf.mxu0 }
0x10e3   :  { %6356 = vst [vmem:[#allocation5 + $0xd8] sm:$0xff] %v6317_v54  ;;  %v6321_v58 = vadd.f32 %v6320_v55, %v9316_v57 }
0x10e4   :  { %v6322_v56 = vpop.f32.mrf.mxu0 }
0x10e5   :  { %6357 = vst [vmem:[#allocation5 + $0xe0] sm:$0xff] %v6321_v58  ;;  %v6323_v2 = vadd.f32 %v6322_v56, %v9318_v59 }
0x10e6   :  { %v6324_v20 = vpop.f32.mrf.mxu0 }
0x10e7   :  { %6358 = vst [vmem:[#allocation5 + $0xe8] sm:$0xff] %v6323_v2  ;;  %v6325_v35 = vadd.f32 %v6324_v20, %v9316_v57 }
0x10e8   :  { %v6326_v36 = vpop.f32.mrf.mxu0 }
0x10e9   :  { %6359 = vst [vmem:[#allocation5 + $0xf0] sm:$0xff] %v6325_v35  ;;  %v6327_v37 = vadd.f32 %v6326_v36, %v9318_v59 }
0x10eb   :  { %6360 = vst [vmem:[#allocation5 + $0xf8] sm:$0xff] %v6327_v37 }
0x10ec   :  { %7641 = shalt.err (!%p7638_p0)
}
0x10ed   :  { %s7659_s25 = smov 256   ;;  %s7660_s26 = smov 16  }
0x10ee   :  { %6379 = dma.vmem_to_hbm [thread:$0]  %s6374_s7, 4096, %s9361_s6, [#allocation6], %s7659_s25, %s7659_s25, %s7660_s26  }
0x10ef   :  { %7650 = dma.done.wait [#allocation6], 4096  }
0x10f0   :  { %7651 = vsyncadd [#allocation6], 4294963200 }
0x10f1   :  { %7652 = dma.done.wait [#allocation8], 256  }
0x10f2   :  { %7653 = vsyncadd [#allocation8], 4294967040 }
0x10f3   :  { %6409 = vsyncpa [#allocation6], 1 }
0x10f4   :  { %6410 = vsyncpa [#allocation8], 1 }

</bundles_post_ra>
